<compile_context>
chip_gen: v6e
topology: v6e:2x2x1
jax: 0.10.0
libtpu: 0.0.40
codegen_flags: <defaults>
</compile_context>

<pallas_src>
import jax
import jax.numpy as jnp
from jax.experimental import pallas as pl
from jax.experimental.pallas import tpu as pltpu

# ----------------------------- model config ---------------------------------
LSTM_INPUT_DIM = 2
LSTM_HIDDEN = 32           # == TF_MODEL_DIM (embeddings feed the transformer)
LSTM_LAYERS = 2
TF_MODEL_DIM = 32
TF_HEADS = 4
TF_LAYERS = 2
TF_FF_DIM = 64
MDN_HIDDEN = 64
MDN_K = 3
MDN_OUT_DIM = 2
FORECAST_H = 5

B = 2                       # batch
A = 4                       # number of "other" agents
T = 8                       # trajectory length
S = A + 1                   # agent slots (slot 0 = target)
BS = B * S                  # flattened slot-major rows (row r -> slot r//B, batch r%B)

N_PI = FORECAST_H * MDN_K                      # 15
N_MU = FORECAST_H * MDN_K * MDN_OUT_DIM        # 30
N_OUT = N_PI + 2 * N_MU                        # 75 packed [pi | mu | log_sigma]

H4 = 4 * LSTM_HIDDEN                           # 128: gate width == doubled contraction

# ---- packed slab row layouts (all slabs are (…, 128) lane-aligned) ----------
LSTM_SLAB_ROWS = 144       # [0:128] stacked W, [128:128+BS] per-row bias, zero pad
TF_ROW_WQKV, TF_ROW_WO, TF_ROW_W1, TF_ROW_W2, TF_ROW_VEC = 0, 32, 64, 96, 224
TF_SLAB_ROWS = 232         # w2 zero-padded to 128 rows; 8 bias/LN vector rows at 224
MDN_ROW_WH, MDN_ROW_WOUT, MDN_ROW_VEC = 0, 32, 160
MDN_SLAB_ROWS = 168        # wout zero-padded to 128 rows; bh/bout rows at 160/161


# ----------------------------- fused kernel ----------------------------------
def fused_context_mdn_kernel(traj_ref, bias_ref, lstm_ref, tf_ref, mdn_ref, out_ref):
    H = LSTM_HIDDEN
    E = TF_MODEL_DIM
    hd = E // TF_HEADS

    bias2d = bias_ref[...]                                     # (BS, BS) additive attn bias

    # 0/1 selector for the doubled contraction: target rows (r < B) use the
    # first half (target-encoder weights), other rows the second half.
    row = jax.lax.broadcasted_iota(jnp.int32, (BS, H4), 0)
    lane = jax.lax.broadcasted_iota(jnp.int32, (BS, H4), 1)
    dbl_mask = jnp.where((row < B) == (lane < 2 * H), 1.0, 0.0)  # (BS, 128)

    # ---------------- trajectory encoders: 2-layer LSTM, unrolled over T -----
    w_l0 = lstm_ref[0, 0:H4, :]                 # (128,128) rows=[ih_t|hh_t|ih_o|hh_o]
    w_l1 = lstm_ref[1, 0:H4, :]
    b_l0 = lstm_ref[0, H4:H4 + BS, :]           # (BS,128) per-row blended bias
    b_l1 = lstm_ref[1, H4:H4 + BS, :]

    def lstm_cell(x_in, h, c, w, b):
        # one matmul per cell: z = [x*m, h*m, x*(1-m), h*(1-m)]   (m = target-row mask)
        z = jnp.tile(jnp.concatenate([x_in, h], axis=-1), (1, 2)) * dbl_mask
        g = jnp.dot(z, w, preferred_element_type=jnp.float32) + b      # (BS, 4H)
        sig = jax.nn.sigmoid(g[:, 0:3 * H])       # gate columns packed as [i | f | o | g]
        i = sig[:, 0:H]
        f = sig[:, H:2 * H]
        o = sig[:, 2 * H:3 * H]
        gg = jnp.tanh(g[:, 3 * H:4 * H])
        c_new = f * c + i * gg
        h_new = o * jnp.tanh(c_new)
        return h_new, c_new

    zero = jnp.zeros((BS, H), jnp.float32)
    h0, c0, h1, c1 = zero, zero, zero, zero
    for t in range(T):                              # T = 8, fully unrolled recurrence
        h0, c0 = lstm_cell(traj_ref[t], h0, c0, w_l0, b_l0)
        h1, c1 = lstm_cell(h0, h1, c1, w_l1, b_l1)
    x = h1                                          # (BS, E): last top-layer hidden

    # ---------------- transformer encoder (post-LN, ReLU FFN) ----------------
    def layer_norm(y, gamma, beta):
        mu = jnp.mean(y, axis=-1, keepdims=True)
        d = y - mu
        var = jnp.mean(d * d, axis=-1, keepdims=True)
        return d * jax.lax.rsqrt(var + 1e-5) * gamma + beta

    for l in range(TF_LAYERS):                      # 2 layers, unrolled
        wqkv = tf_ref[l, TF_ROW_WQKV:TF_ROW_WQKV + E, :]      # (32,128): qkv, q pre-scaled
        wo = tf_ref[l, TF_ROW_WO:TF_ROW_WO + E, :]            # (32,128): lanes >=32 zero
        w1 = tf_ref[l, TF_ROW_W1:TF_ROW_W1 + E, :]            # (32,128): lanes >=64 zero
        w2 = tf_ref[l, TF_ROW_W2:TF_ROW_W2 + 2 * TF_FF_DIM, :]  # (128,128): rows>=64 zero
        vec = tf_ref[l, TF_ROW_VEC:TF_ROW_VEC + 8, :]         # (8,128) bias/LN vectors
        bqkv = vec[0:1, :]
        bo = vec[1:2, 0:E]
        g1, be1 = vec[2:3, 0:E], vec[3:4, 0:E]
        bf1 = vec[4:5, :]
        bf2 = vec[5:6, 0:E]
        g2, be2 = vec[6:7, 0:E], vec[7:8, 0:E]

        qkv = jnp.dot(x, wqkv, preferred_element_type=jnp.float32) + bqkv   # (BS,128)
        q, k, v = qkv[:, 0:E], qkv[:, E:2 * E], qkv[:, 2 * E:3 * E]

        ctx_parts = []
        for hi in range(TF_HEADS):
            sl = slice(hi * hd, (hi + 1) * hd)
            s = jnp.einsum('nd,md->nm', q[:, sl], k[:, sl],
                           preferred_element_type=jnp.float32) + bias2d
            s = s - jnp.max(s, axis=-1, keepdims=True)
            p = jnp.exp(s)
            # approx reciprocal (EUP) — tiny relative error vs. exact divide.
            p = p * pl.reciprocal(jnp.sum(p, axis=-1, keepdims=True), approx=True)
            ctx_parts.append(jnp.dot(p, v[:, sl], preferred_element_type=jnp.float32))
        ctx = jnp.concatenate(ctx_parts, axis=-1)                           # (BS, E)

        attn = jnp.dot(ctx, wo, preferred_element_type=jnp.float32)[:, 0:E] + bo
        x = layer_norm(x + attn, g1, be1)
        hmid = jnp.maximum(jnp.dot(x, w1, preferred_element_type=jnp.float32) + bf1, 0.0)
        ff = jnp.dot(hmid, w2, preferred_element_type=jnp.float32)[:, 0:E] + bf2
        x = layer_norm(x + ff, g2, be2)

    # ---------------- MDN head on the target rows (rows 0..B-1) --------------
    xt = x[0:B, :]                                             # (B, E)
    wh = mdn_ref[MDN_ROW_WH:MDN_ROW_WH + E, :]                 # (32,128) lanes>=64 zero
    wout = mdn_ref[MDN_ROW_WOUT:MDN_ROW_WOUT + 2 * MDN_HIDDEN, :]  # (128,128) rows>=64 zero
    mvec = mdn_ref[MDN_ROW_VEC:MDN_ROW_VEC + 8, :]
    hm = jnp.maximum(jnp.dot(xt, wh, preferred_element_type=jnp.float32) + mvec[0:1, :], 0.0)
    # single lane-dense store: raw [pi_logits | mu | log_sigma | 0-pad] (B, 128)
    out_ref[...] = jnp.dot(hm, wout, preferred_element_type=jnp.float32) + mvec[1:2, :]


# ------------------------------ full forward --------------------------------
@jax.jit
def context_mdn_forward(target_traj, other_trajs, others_padding_mask,
                        lstm_slab, tf_slab, mdn_slab):
    Bn, An, Tn, Dn = other_trajs.shape
    assert (Bn, An, Tn, Dn) == (B, A, T, LSTM_INPUT_DIM)
    Sn = An + 1

    # Slot-major flattened trajectories, input dim zero-padded to LSTM_HIDDEN
    # so every LSTM cell shares the same (BS,128)x(128,128) gate matmul.
    all_traj = jnp.concatenate([target_traj[:, None, :, :], other_trajs], axis=1)  # (B,S,T,D)
    tm = jnp.transpose(all_traj, (2, 1, 0, 3)).reshape(Tn, Sn * Bn, Dn)            # (T,BS,D)
    traj = jnp.pad(tm.astype(jnp.float32),
                   ((0, 0), (0, 0), (0, LSTM_HIDDEN - Dn)))                        # (T,BS,32)

    # Block-diagonal additive attention bias over the flattened rows:
    # queries only see keys of the same batch, padded keys are masked out.
    bidx = jnp.arange(Bn * Sn, dtype=jnp.int32) % Bn
    same_batch = bidx[:, None] == bidx[None, :]
    padded_keys = jnp.transpose(others_padding_mask).reshape(Bn * Sn)              # key j padded?
    bias2d = jnp.where(same_batch & (~padded_keys)[None, :], 0.0, -1e9).astype(jnp.float32)

    vmem = pltpu.MemorySpace.VMEM
    raw = pl.pallas_call(
        fused_context_mdn_kernel,
        out_shape=jax.ShapeDtypeStruct((Bn, 128), jnp.float32),
        in_specs=[pl.BlockSpec(memory_space=vmem)] * 5,
        out_specs=pl.BlockSpec(memory_space=vmem),
        cost_estimate=pl.CostEstimate(flops=7_000_000, transcendentals=30_000,
                                      bytes_accessed=500_000),
    )(traj, bias2d, lstm_slab, tf_slab, mdn_slab)

    # tiny MDN epilogue (grouped softmax / exp / reshape) stays in XLA.
    head = raw[:, :N_OUT]
    pi = jax.nn.softmax(head[:, :N_PI].reshape(Bn, FORECAST_H, MDN_K), axis=-1)
    mu = head[:, N_PI:N_PI + N_MU].reshape(Bn, FORECAST_H, MDN_K, MDN_OUT_DIM)
    sigma = jnp.exp(head[:, N_PI + N_MU:N_OUT]).reshape(Bn, FORECAST_H, MDN_K, MDN_OUT_DIM)
    return pi, mu, sigma


# ---------------------------- parameter init / packing -----------------------
def _normal(key, shape, scale=0.1):
    return (scale * jax.random.normal(key, shape)).astype(jnp.float32)


def init_logical_params(key):
    """Logical weights mirroring the PyTorch module layout (i,f,g,o gate order)."""
    keys = iter(jax.random.split(key, 64))
    H, E, F = LSTM_HIDDEN, TF_MODEL_DIM, TF_FF_DIM

    def lstm_encoder():
        layers = []
        for l in range(LSTM_LAYERS):
            in_dim = LSTM_INPUT_DIM if l == 0 else H
            layers.append(dict(
                w_ih=_normal(next(keys), (in_dim, 4 * H)),
                w_hh=_normal(next(keys), (H, 4 * H)),
                b=_normal(next(keys), (1, 4 * H), scale=0.01),   # b_ih + b_hh combined
            ))
        return layers

    tf_layers = []
    for _ in range(TF_LAYERS):
        tf_layers.append(dict(
            wqkv=_normal(next(keys), (E, 3 * E)), bqkv=_normal(next(keys), (3 * E,), 0.01),
            wo=_normal(next(keys), (E, E)), bo=_normal(next(keys), (E,), 0.01),
            ln1_g=jnp.ones((E,), jnp.float32), ln1_b=jnp.zeros((E,), jnp.float32),
            w1=_normal(next(keys), (E, F)), b1=_normal(next(keys), (F,), 0.01),
            w2=_normal(next(keys), (F, E)), b2=_normal(next(keys), (E,), 0.01),
            ln2_g=jnp.ones((E,), jnp.float32), ln2_b=jnp.zeros((E,), jnp.float32),
        ))

    mdn = dict(
        wh=_normal(next(keys), (E, MDN_HIDDEN)), bh=_normal(next(keys), (MDN_HIDDEN,), 0.01),
        w_pi=_normal(next(keys), (MDN_HIDDEN, N_PI)), b_pi=_normal(next(keys), (N_PI,), 0.01),
        w_mu=_normal(next(keys), (MDN_HIDDEN, N_MU)), b_mu=_normal(next(keys), (N_MU,), 0.01),
        w_sg=_normal(next(keys), (MDN_HIDDEN, N_MU)), b_sg=_normal(next(keys), (N_MU,), 0.01),
    )
    return dict(lstm_target=lstm_encoder(), lstm_others=lstm_encoder(),
                tf=tf_layers, mdn=mdn)


def pack_params(p):
    """Pack logical params into 3 lane-128 kernel slabs (done once, outside jit)."""
    H, E, F = LSTM_HIDDEN, TF_MODEL_DIM, TF_FF_DIM

    def reorder(w):                  # gate columns [i|f|g|o] -> [i|f|o|g]
        i_, f_, g_, o_ = jnp.split(w, 4, axis=-1)
        return jnp.concatenate([i_, f_, o_, g_], axis=-1)

    # LSTM slab: per layer, rows [Wih_t(pad 32); Whh_t; Wih_o(pad 32); Whh_o] + per-row bias.
    lstm = jnp.zeros((LSTM_LAYERS, LSTM_SLAB_ROWS, 128), jnp.float32)
    row_is_target = (jnp.arange(BS) < B)[:, None]
    for l in range(LSTM_LAYERS):
        in_dim = LSTM_INPUT_DIM if l == 0 else H
        wih_t = jnp.pad(reorder(p['lstm_target'][l]['w_ih']), ((0, H - in_dim), (0, 0)))
        wih_o = jnp.pad(reorder(p['lstm_others'][l]['w_ih']), ((0, H - in_dim), (0, 0)))
        whh_t = reorder(p['lstm_target'][l]['w_hh'])
        whh_o = reorder(p['lstm_others'][l]['w_hh'])
        W = jnp.concatenate([wih_t, whh_t, wih_o, whh_o], axis=0)        # (128,128)
        b_rows = jnp.where(row_is_target,
                           reorder(p['lstm_target'][l]['b']),
                           reorder(p['lstm_others'][l]['b']))            # (BS,128)
        lstm = lstm.at[l, 0:H4, :].set(W)
        lstm = lstm.at[l, H4:H4 + BS, :].set(b_rows)

    # Transformer slab (Q scale folded into wqkv / bqkv).
    qscale = float(E // TF_HEADS) ** -0.5
    tf = jnp.zeros((TF_LAYERS, TF_SLAB_ROWS, 128), jnp.float32)
    for l, lp in enumerate(p['tf']):
        wqkv = lp['wqkv'].at[:, :E].multiply(qscale)
        bqkv = lp['bqkv'].at[:E].multiply(qscale)
        tf = tf.at[l, TF_ROW_WQKV:TF_ROW_WQKV + E, 0:3 * E].set(wqkv)
        tf = tf.at[l, TF_ROW_WO:TF_ROW_WO + E, 0:E].set(lp['wo'])
        tf = tf.at[l, TF_ROW_W1:TF_ROW_W1 + E, 0:F].set(lp['w1'])
        tf = tf.at[l, TF_ROW_W2:TF_ROW_W2 + F, 0:E].set(lp['w2'])
        tf = tf.at[l, TF_ROW_VEC + 0, 0:3 * E].set(bqkv)
        tf = tf.at[l, TF_ROW_VEC + 1, 0:E].set(lp['bo'])
        tf = tf.at[l, TF_ROW_VEC + 2, 0:E].set(lp['ln1_g'])
        tf = tf.at[l, TF_ROW_VEC + 3, 0:E].set(lp['ln1_b'])
        tf = tf.at[l, TF_ROW_VEC + 4, 0:F].set(lp['b1'])
        tf = tf.at[l, TF_ROW_VEC + 5, 0:E].set(lp['b2'])
        tf = tf.at[l, TF_ROW_VEC + 6, 0:E].set(lp['ln2_g'])
        tf = tf.at[l, TF_ROW_VEC + 7, 0:E].set(lp['ln2_b'])

    # MDN slab: hidden layer + packed [pi | mu | log_sigma] output head.
    wout = jnp.concatenate([p['mdn']['w_pi'], p['mdn']['w_mu'], p['mdn']['w_sg']], axis=1)
    bout = jnp.concatenate([p['mdn']['b_pi'], p['mdn']['b_mu'], p['mdn']['b_sg']])
    mdn = jnp.zeros((MDN_SLAB_ROWS, 128), jnp.float32)
    mdn = mdn.at[MDN_ROW_WH:MDN_ROW_WH + E, 0:MDN_HIDDEN].set(p['mdn']['wh'])
    mdn = mdn.at[MDN_ROW_WOUT:MDN_ROW_WOUT + MDN_HIDDEN, 0:N_OUT].set(wout)
    mdn = mdn.at[MDN_ROW_VEC + 0, 0:MDN_HIDDEN].set(p['mdn']['bh'])
    mdn = mdn.at[MDN_ROW_VEC + 1, 0:N_OUT].set(bout)

    return lstm, tf, mdn


# --------------------------------- main --------------------------------------
if __name__ == "__main__":
    key = jax.random.PRNGKey(0)
    k_p, k_t, k_o = jax.random.split(key, 3)

    logical = init_logical_params(k_p)
    lstm_slab, tf_slab, mdn_slab = pack_params(logical)

    target_traj = jax.random.normal(k_t, (B, T, LSTM_INPUT_DIM), dtype=jnp.float32)
    other_trajs = jax.random.normal(k_o, (B, A, T, LSTM_INPUT_DIM), dtype=jnp.float32)

    # (B, A+1) key padding mask; target (slot 0) never padded, pad last agent of batch 0.
    others_padding_mask = jnp.zeros((B, A + 1), dtype=bool).at[0, A].set(True)

    pi, mu, sigma = context_mdn_forward(target_traj, other_trajs, others_padding_mask,
                                        lstm_slab, tf_slab, mdn_slab)
    jax.block_until_ready((pi, mu, sigma))

    assert pi.shape == (B, FORECAST_H, MDN_K)
    assert mu.shape == (B, FORECAST_H, MDN_K, MDN_OUT_DIM)
    assert sigma.shape == (B, FORECAST_H, MDN_K, MDN_OUT_DIM)
    assert bool(jnp.all(jnp.isfinite(pi))) and bool(jnp.all(sigma > 0))
    assert bool(jnp.allclose(jnp.sum(pi, axis=-1), 1.0, atol=1e-5))

    print("KERNEL_OK")
</pallas_src>

<mosaic_0001>
module attributes {stable_mosaic.version = 11 : i64} {
  func.func @fused_context_mdn_kernel(%arg0: memref<8x10x32xf32, #tpu.memory_space<vmem>>, %arg1: memref<10x10xf32, #tpu.memory_space<vmem>>, %arg2: memref<2x144x128xf32, #tpu.memory_space<vmem>>, %arg3: memref<2x232x128xf32, #tpu.memory_space<vmem>>, %arg4: memref<168x128xf32, #tpu.memory_space<vmem>>, %arg5: memref<2x128xf32, #tpu.memory_space<vmem>>) attributes {dimension_semantics = [], scalar_prefetch = 0 : i64, scratch_operands = 0 : i64, tpu.core_type = #tpu.core_type<tc>} {
    %c0 = arith.constant 0 : index
    %c0_0 = arith.constant 0 : index
    %0 = vector.load %arg1[%c0, %c0_0] : memref<10x10xf32, #tpu.memory_space<vmem>>, vector<10x10xf32>
    %1 = tpu.iota {dimensions = array<i32: 0>} : vector<10x128xi32>
    %2 = tpu.iota {dimensions = array<i32: 1>} : vector<10x128xi32>
    %c2_i32 = arith.constant 2 : i32
    %3 = vector.broadcast %c2_i32 : i32 to vector<10x128xi32>
    %4 = arith.cmpi slt, %1, %3 : vector<10x128xi32>
    %c64_i32 = arith.constant 64 : i32
    %5 = vector.broadcast %c64_i32 : i32 to vector<10x128xi32>
    %6 = arith.cmpi slt, %2, %5 : vector<10x128xi32>
    %7 = arith.xori %4, %6 : vector<10x128xi1>
    %cst = arith.constant dense<true> : vector<10x128xi1>
    %8 = arith.xori %7, %cst : vector<10x128xi1>
    %cst_1 = arith.constant 1.000000e+00 : f32
    %cst_2 = arith.constant 0.000000e+00 : f32
    %9 = vector.broadcast %cst_1 : f32 to vector<10x128xf32>
    %10 = vector.broadcast %cst_2 : f32 to vector<10x128xf32>
    %11 = arith.select %8, %9, %10 : vector<10x128xi1>, vector<10x128xf32>
    %c0_3 = arith.constant 0 : index
    %c0_4 = arith.constant 0 : index
    %c0_5 = arith.constant 0 : index
    %12 = vector.load %arg2[%c0_3, %c0_4, %c0_5] : memref<2x144x128xf32, #tpu.memory_space<vmem>>, vector<1x128x128xf32>
    %13 = vector.shape_cast %12 : vector<1x128x128xf32> to vector<128x128xf32>
    %c1 = arith.constant 1 : index
    %c0_6 = arith.constant 0 : index
    %c0_7 = arith.constant 0 : index
    %14 = vector.load %arg2[%c1, %c0_6, %c0_7] : memref<2x144x128xf32, #tpu.memory_space<vmem>>, vector<1x128x128xf32>
    %15 = vector.shape_cast %14 : vector<1x128x128xf32> to vector<128x128xf32>
    %c0_8 = arith.constant 0 : index
    %c128 = arith.constant 128 : index
    %c0_9 = arith.constant 0 : index
    %16 = vector.load %arg2[%c0_8, %c128, %c0_9] : memref<2x144x128xf32, #tpu.memory_space<vmem>>, vector<1x10x128xf32>
    %17 = vector.shape_cast %16 : vector<1x10x128xf32> to vector<10x128xf32>
    %c1_10 = arith.constant 1 : index
    %c128_11 = arith.constant 128 : index
    %c0_12 = arith.constant 0 : index
    %18 = vector.load %arg2[%c1_10, %c128_11, %c0_12] : memref<2x144x128xf32, #tpu.memory_space<vmem>>, vector<1x10x128xf32>
    %19 = vector.shape_cast %18 : vector<1x10x128xf32> to vector<10x128xf32>
    %cst_13 = arith.constant 0.000000e+00 : f32
    %20 = vector.broadcast %cst_13 : f32 to vector<10x32xf32>
    %c0_14 = arith.constant 0 : index
    %c0_15 = arith.constant 0 : index
    %c0_16 = arith.constant 0 : index
    %21 = vector.load %arg0[%c0_14, %c0_15, %c0_16] : memref<8x10x32xf32, #tpu.memory_space<vmem>>, vector<1x10x32xf32>
    %22 = vector.shape_cast %21 : vector<1x10x32xf32> to vector<10x32xf32>
    %23 = tpu.concatenate %22, %20 in 1 : vector<10x32xf32>, vector<10x32xf32> -> vector<10x64xf32>
    %24 = tpu.concatenate %23, %23 in 1 : vector<10x64xf32>, vector<10x64xf32> -> vector<10x128xf32>
    %25 = arith.mulf %24, %11 : vector<10x128xf32>
    %cst_17 = arith.constant dense<0.000000e+00> : vector<10x128xf32>
    %26 = tpu.matmul %25, %13, %cst_17 {dimension_numbers = #tpu.dot_dimension_numbers<[1], [0], [0], [1], [0, 0, 1, 1], [], []>} : vector<10x128xf32>, vector<128x128xf32>, vector<10x128xf32> -> vector<10x128xf32>
    %27 = arith.addf %26, %17 : vector<10x128xf32>
    %28 = vector.extract_strided_slice %27 {offsets = [0, 0], sizes = [10, 96], strides = [1, 1]} : vector<10x128xf32> to vector<10x96xf32>
    %29 = arith.negf %28 : vector<10x96xf32>
    %30 = math.exp %29 : vector<10x96xf32>
    %cst_18 = arith.constant 1.000000e+00 : f32
    %31 = vector.broadcast %cst_18 : f32 to vector<10x96xf32>
    %32 = arith.addf %31, %30 : vector<10x96xf32>
    %33 = arith.divf %31, %32 : vector<10x96xf32>
    %34 = vector.extract_strided_slice %33 {offsets = [0, 0], sizes = [10, 32], strides = [1, 1]} : vector<10x96xf32> to vector<10x32xf32>
    %35 = vector.extract_strided_slice %33 {offsets = [0, 32], sizes = [10, 32], strides = [1, 1]} : vector<10x96xf32> to vector<10x32xf32>
    %36 = vector.extract_strided_slice %33 {offsets = [0, 64], sizes = [10, 32], strides = [1, 1]} : vector<10x96xf32> to vector<10x32xf32>
    %37 = vector.extract_strided_slice %27 {offsets = [0, 96], sizes = [10, 32], strides = [1, 1]} : vector<10x128xf32> to vector<10x32xf32>
    %38 = math.tanh %37 : vector<10x32xf32>
    %39 = arith.mulf %35, %20 : vector<10x32xf32>
    %40 = arith.mulf %34, %38 : vector<10x32xf32>
    %41 = arith.addf %39, %40 : vector<10x32xf32>
    %42 = math.tanh %41 : vector<10x32xf32>
    %43 = arith.mulf %36, %42 : vector<10x32xf32>
    %44 = tpu.concatenate %43, %20 in 1 : vector<10x32xf32>, vector<10x32xf32> -> vector<10x64xf32>
    %45 = tpu.concatenate %44, %44 in 1 : vector<10x64xf32>, vector<10x64xf32> -> vector<10x128xf32>
    %46 = arith.mulf %45, %11 : vector<10x128xf32>
    %cst_19 = arith.constant dense<0.000000e+00> : vector<10x128xf32>
    %47 = tpu.matmul %46, %15, %cst_19 {dimension_numbers = #tpu.dot_dimension_numbers<[1], [0], [0], [1], [0, 0, 1, 1], [], []>} : vector<10x128xf32>, vector<128x128xf32>, vector<10x128xf32> -> vector<10x128xf32>
    %48 = arith.addf %47, %19 : vector<10x128xf32>
    %49 = vector.extract_strided_slice %48 {offsets = [0, 0], sizes = [10, 96], strides = [1, 1]} : vector<10x128xf32> to vector<10x96xf32>
    %50 = arith.negf %49 : vector<10x96xf32>
    %51 = math.exp %50 : vector<10x96xf32>
    %cst_20 = arith.constant 1.000000e+00 : f32
    %52 = vector.broadcast %cst_20 : f32 to vector<10x96xf32>
    %53 = arith.addf %52, %51 : vector<10x96xf32>
    %54 = arith.divf %52, %53 : vector<10x96xf32>
    %55 = vector.extract_strided_slice %54 {offsets = [0, 0], sizes = [10, 32], strides = [1, 1]} : vector<10x96xf32> to vector<10x32xf32>
    %56 = vector.extract_strided_slice %54 {offsets = [0, 32], sizes = [10, 32], strides = [1, 1]} : vector<10x96xf32> to vector<10x32xf32>
    %57 = vector.extract_strided_slice %54 {offsets = [0, 64], sizes = [10, 32], strides = [1, 1]} : vector<10x96xf32> to vector<10x32xf32>
    %58 = vector.extract_strided_slice %48 {offsets = [0, 96], sizes = [10, 32], strides = [1, 1]} : vector<10x128xf32> to vector<10x32xf32>
    %59 = math.tanh %58 : vector<10x32xf32>
    %60 = arith.mulf %56, %20 : vector<10x32xf32>
    %61 = arith.mulf %55, %59 : vector<10x32xf32>
    %62 = arith.addf %60, %61 : vector<10x32xf32>
    %63 = math.tanh %62 : vector<10x32xf32>
    %64 = arith.mulf %57, %63 : vector<10x32xf32>
    %c1_21 = arith.constant 1 : index
    %c0_22 = arith.constant 0 : index
    %c0_23 = arith.constant 0 : index
    %65 = vector.load %arg0[%c1_21, %c0_22, %c0_23] : memref<8x10x32xf32, #tpu.memory_space<vmem>>, vector<1x10x32xf32>
    %66 = vector.shape_cast %65 : vector<1x10x32xf32> to vector<10x32xf32>
    %67 = tpu.concatenate %66, %43 in 1 : vector<10x32xf32>, vector<10x32xf32> -> vector<10x64xf32>
    %68 = tpu.concatenate %67, %67 in 1 : vector<10x64xf32>, vector<10x64xf32> -> vector<10x128xf32>
    %69 = arith.mulf %68, %11 : vector<10x128xf32>
    %cst_24 = arith.constant dense<0.000000e+00> : vector<10x128xf32>
    %70 = tpu.matmul %69, %13, %cst_24 {dimension_numbers = #tpu.dot_dimension_numbers<[1], [0], [0], [1], [0, 0, 1, 1], [], []>} : vector<10x128xf32>, vector<128x128xf32>, vector<10x128xf32> -> vector<10x128xf32>
    %71 = arith.addf %70, %17 : vector<10x128xf32>
    %72 = vector.extract_strided_slice %71 {offsets = [0, 0], sizes = [10, 96], strides = [1, 1]} : vector<10x128xf32> to vector<10x96xf32>
    %73 = arith.negf %72 : vector<10x96xf32>
    %74 = math.exp %73 : vector<10x96xf32>
    %cst_25 = arith.constant 1.000000e+00 : f32
    %75 = vector.broadcast %cst_25 : f32 to vector<10x96xf32>
    %76 = arith.addf %75, %74 : vector<10x96xf32>
    %77 = arith.divf %75, %76 : vector<10x96xf32>
    %78 = vector.extract_strided_slice %77 {offsets = [0, 0], sizes = [10, 32], strides = [1, 1]} : vector<10x96xf32> to vector<10x32xf32>
    %79 = vector.extract_strided_slice %77 {offsets = [0, 32], sizes = [10, 32], strides = [1, 1]} : vector<10x96xf32> to vector<10x32xf32>
    %80 = vector.extract_strided_slice %77 {offsets = [0, 64], sizes = [10, 32], strides = [1, 1]} : vector<10x96xf32> to vector<10x32xf32>
    %81 = vector.extract_strided_slice %71 {offsets = [0, 96], sizes = [10, 32], strides = [1, 1]} : vector<10x128xf32> to vector<10x32xf32>
    %82 = math.tanh %81 : vector<10x32xf32>
    %83 = arith.mulf %79, %41 : vector<10x32xf32>
    %84 = arith.mulf %78, %82 : vector<10x32xf32>
    %85 = arith.addf %83, %84 : vector<10x32xf32>
    %86 = math.tanh %85 : vector<10x32xf32>
    %87 = arith.mulf %80, %86 : vector<10x32xf32>
    %88 = tpu.concatenate %87, %64 in 1 : vector<10x32xf32>, vector<10x32xf32> -> vector<10x64xf32>
    %89 = tpu.concatenate %88, %88 in 1 : vector<10x64xf32>, vector<10x64xf32> -> vector<10x128xf32>
    %90 = arith.mulf %89, %11 : vector<10x128xf32>
    %cst_26 = arith.constant dense<0.000000e+00> : vector<10x128xf32>
    %91 = tpu.matmul %90, %15, %cst_26 {dimension_numbers = #tpu.dot_dimension_numbers<[1], [0], [0], [1], [0, 0, 1, 1], [], []>} : vector<10x128xf32>, vector<128x128xf32>, vector<10x128xf32> -> vector<10x128xf32>
    %92 = arith.addf %91, %19 : vector<10x128xf32>
    %93 = vector.extract_strided_slice %92 {offsets = [0, 0], sizes = [10, 96], strides = [1, 1]} : vector<10x128xf32> to vector<10x96xf32>
    %94 = arith.negf %93 : vector<10x96xf32>
    %95 = math.exp %94 : vector<10x96xf32>
    %cst_27 = arith.constant 1.000000e+00 : f32
    %96 = vector.broadcast %cst_27 : f32 to vector<10x96xf32>
    %97 = arith.addf %96, %95 : vector<10x96xf32>
    %98 = arith.divf %96, %97 : vector<10x96xf32>
    %99 = vector.extract_strided_slice %98 {offsets = [0, 0], sizes = [10, 32], strides = [1, 1]} : vector<10x96xf32> to vector<10x32xf32>
    %100 = vector.extract_strided_slice %98 {offsets = [0, 32], sizes = [10, 32], strides = [1, 1]} : vector<10x96xf32> to vector<10x32xf32>
    %101 = vector.extract_strided_slice %98 {offsets = [0, 64], sizes = [10, 32], strides = [1, 1]} : vector<10x96xf32> to vector<10x32xf32>
    %102 = vector.extract_strided_slice %92 {offsets = [0, 96], sizes = [10, 32], strides = [1, 1]} : vector<10x128xf32> to vector<10x32xf32>
    %103 = math.tanh %102 : vector<10x32xf32>
    %104 = arith.mulf %100, %62 : vector<10x32xf32>
    %105 = arith.mulf %99, %103 : vector<10x32xf32>
    %106 = arith.addf %104, %105 : vector<10x32xf32>
    %107 = math.tanh %106 : vector<10x32xf32>
    %108 = arith.mulf %101, %107 : vector<10x32xf32>
    %c2 = arith.constant 2 : index
    %c0_28 = arith.constant 0 : index
    %c0_29 = arith.constant 0 : index
    %109 = vector.load %arg0[%c2, %c0_28, %c0_29] : memref<8x10x32xf32, #tpu.memory_space<vmem>>, vector<1x10x32xf32>
    %110 = vector.shape_cast %109 : vector<1x10x32xf32> to vector<10x32xf32>
    %111 = tpu.concatenate %110, %87 in 1 : vector<10x32xf32>, vector<10x32xf32> -> vector<10x64xf32>
    %112 = tpu.concatenate %111, %111 in 1 : vector<10x64xf32>, vector<10x64xf32> -> vector<10x128xf32>
    %113 = arith.mulf %112, %11 : vector<10x128xf32>
    %cst_30 = arith.constant dense<0.000000e+00> : vector<10x128xf32>
    %114 = tpu.matmul %113, %13, %cst_30 {dimension_numbers = #tpu.dot_dimension_numbers<[1], [0], [0], [1], [0, 0, 1, 1], [], []>} : vector<10x128xf32>, vector<128x128xf32>, vector<10x128xf32> -> vector<10x128xf32>
    %115 = arith.addf %114, %17 : vector<10x128xf32>
    %116 = vector.extract_strided_slice %115 {offsets = [0, 0], sizes = [10, 96], strides = [1, 1]} : vector<10x128xf32> to vector<10x96xf32>
    %117 = arith.negf %116 : vector<10x96xf32>
    %118 = math.exp %117 : vector<10x96xf32>
    %cst_31 = arith.constant 1.000000e+00 : f32
    %119 = vector.broadcast %cst_31 : f32 to vector<10x96xf32>
    %120 = arith.addf %119, %118 : vector<10x96xf32>
    %121 = arith.divf %119, %120 : vector<10x96xf32>
    %122 = vector.extract_strided_slice %121 {offsets = [0, 0], sizes = [10, 32], strides = [1, 1]} : vector<10x96xf32> to vector<10x32xf32>
    %123 = vector.extract_strided_slice %121 {offsets = [0, 32], sizes = [10, 32], strides = [1, 1]} : vector<10x96xf32> to vector<10x32xf32>
    %124 = vector.extract_strided_slice %121 {offsets = [0, 64], sizes = [10, 32], strides = [1, 1]} : vector<10x96xf32> to vector<10x32xf32>
    %125 = vector.extract_strided_slice %115 {offsets = [0, 96], sizes = [10, 32], strides = [1, 1]} : vector<10x128xf32> to vector<10x32xf32>
    %126 = math.tanh %125 : vector<10x32xf32>
    %127 = arith.mulf %123, %85 : vector<10x32xf32>
    %128 = arith.mulf %122, %126 : vector<10x32xf32>
    %129 = arith.addf %127, %128 : vector<10x32xf32>
    %130 = math.tanh %129 : vector<10x32xf32>
    %131 = arith.mulf %124, %130 : vector<10x32xf32>
    %132 = tpu.concatenate %131, %108 in 1 : vector<10x32xf32>, vector<10x32xf32> -> vector<10x64xf32>
    %133 = tpu.concatenate %132, %132 in 1 : vector<10x64xf32>, vector<10x64xf32> -> vector<10x128xf32>
    %134 = arith.mulf %133, %11 : vector<10x128xf32>
    %cst_32 = arith.constant dense<0.000000e+00> : vector<10x128xf32>
    %135 = tpu.matmul %134, %15, %cst_32 {dimension_numbers = #tpu.dot_dimension_numbers<[1], [0], [0], [1], [0, 0, 1, 1], [], []>} : vector<10x128xf32>, vector<128x128xf32>, vector<10x128xf32> -> vector<10x128xf32>
    %136 = arith.addf %135, %19 : vector<10x128xf32>
    %137 = vector.extract_strided_slice %136 {offsets = [0, 0], sizes = [10, 96], strides = [1, 1]} : vector<10x128xf32> to vector<10x96xf32>
    %138 = arith.negf %137 : vector<10x96xf32>
    %139 = math.exp %138 : vector<10x96xf32>
    %cst_33 = arith.constant 1.000000e+00 : f32
    %140 = vector.broadcast %cst_33 : f32 to vector<10x96xf32>
    %141 = arith.addf %140, %139 : vector<10x96xf32>
    %142 = arith.divf %140, %141 : vector<10x96xf32>
    %143 = vector.extract_strided_slice %142 {offsets = [0, 0], sizes = [10, 32], strides = [1, 1]} : vector<10x96xf32> to vector<10x32xf32>
    %144 = vector.extract_strided_slice %142 {offsets = [0, 32], sizes = [10, 32], strides = [1, 1]} : vector<10x96xf32> to vector<10x32xf32>
    %145 = vector.extract_strided_slice %142 {offsets = [0, 64], sizes = [10, 32], strides = [1, 1]} : vector<10x96xf32> to vector<10x32xf32>
    %146 = vector.extract_strided_slice %136 {offsets = [0, 96], sizes = [10, 32], strides = [1, 1]} : vector<10x128xf32> to vector<10x32xf32>
    %147 = math.tanh %146 : vector<10x32xf32>
    %148 = arith.mulf %144, %106 : vector<10x32xf32>
    %149 = arith.mulf %143, %147 : vector<10x32xf32>
    %150 = arith.addf %148, %149 : vector<10x32xf32>
    %151 = math.tanh %150 : vector<10x32xf32>
    %152 = arith.mulf %145, %151 : vector<10x32xf32>
    %c3 = arith.constant 3 : index
    %c0_34 = arith.constant 0 : index
    %c0_35 = arith.constant 0 : index
    %153 = vector.load %arg0[%c3, %c0_34, %c0_35] : memref<8x10x32xf32, #tpu.memory_space<vmem>>, vector<1x10x32xf32>
    %154 = vector.shape_cast %153 : vector<1x10x32xf32> to vector<10x32xf32>
    %155 = tpu.concatenate %154, %131 in 1 : vector<10x32xf32>, vector<10x32xf32> -> vector<10x64xf32>
    %156 = tpu.concatenate %155, %155 in 1 : vector<10x64xf32>, vector<10x64xf32> -> vector<10x128xf32>
    %157 = arith.mulf %156, %11 : vector<10x128xf32>
    %cst_36 = arith.constant dense<0.000000e+00> : vector<10x128xf32>
    %158 = tpu.matmul %157, %13, %cst_36 {dimension_numbers = #tpu.dot_dimension_numbers<[1], [0], [0], [1], [0, 0, 1, 1], [], []>} : vector<10x128xf32>, vector<128x128xf32>, vector<10x128xf32> -> vector<10x128xf32>
    %159 = arith.addf %158, %17 : vector<10x128xf32>
    %160 = vector.extract_strided_slice %159 {offsets = [0, 0], sizes = [10, 96], strides = [1, 1]} : vector<10x128xf32> to vector<10x96xf32>
    %161 = arith.negf %160 : vector<10x96xf32>
    %162 = math.exp %161 : vector<10x96xf32>
    %cst_37 = arith.constant 1.000000e+00 : f32
    %163 = vector.broadcast %cst_37 : f32 to vector<10x96xf32>
    %164 = arith.addf %163, %162 : vector<10x96xf32>
    %165 = arith.divf %163, %164 : vector<10x96xf32>
    %166 = vector.extract_strided_slice %165 {offsets = [0, 0], sizes = [10, 32], strides = [1, 1]} : vector<10x96xf32> to vector<10x32xf32>
    %167 = vector.extract_strided_slice %165 {offsets = [0, 32], sizes = [10, 32], strides = [1, 1]} : vector<10x96xf32> to vector<10x32xf32>
    %168 = vector.extract_strided_slice %165 {offsets = [0, 64], sizes = [10, 32], strides = [1, 1]} : vector<10x96xf32> to vector<10x32xf32>
    %169 = vector.extract_strided_slice %159 {offsets = [0, 96], sizes = [10, 32], strides = [1, 1]} : vector<10x128xf32> to vector<10x32xf32>
    %170 = math.tanh %169 : vector<10x32xf32>
    %171 = arith.mulf %167, %129 : vector<10x32xf32>
    %172 = arith.mulf %166, %170 : vector<10x32xf32>
    %173 = arith.addf %171, %172 : vector<10x32xf32>
    %174 = math.tanh %173 : vector<10x32xf32>
    %175 = arith.mulf %168, %174 : vector<10x32xf32>
    %176 = tpu.concatenate %175, %152 in 1 : vector<10x32xf32>, vector<10x32xf32> -> vector<10x64xf32>
    %177 = tpu.concatenate %176, %176 in 1 : vector<10x64xf32>, vector<10x64xf32> -> vector<10x128xf32>
    %178 = arith.mulf %177, %11 : vector<10x128xf32>
    %cst_38 = arith.constant dense<0.000000e+00> : vector<10x128xf32>
    %179 = tpu.matmul %178, %15, %cst_38 {dimension_numbers = #tpu.dot_dimension_numbers<[1], [0], [0], [1], [0, 0, 1, 1], [], []>} : vector<10x128xf32>, vector<128x128xf32>, vector<10x128xf32> -> vector<10x128xf32>
    %180 = arith.addf %179, %19 : vector<10x128xf32>
    %181 = vector.extract_strided_slice %180 {offsets = [0, 0], sizes = [10, 96], strides = [1, 1]} : vector<10x128xf32> to vector<10x96xf32>
    %182 = arith.negf %181 : vector<10x96xf32>
    %183 = math.exp %182 : vector<10x96xf32>
    %cst_39 = arith.constant 1.000000e+00 : f32
    %184 = vector.broadcast %cst_39 : f32 to vector<10x96xf32>
    %185 = arith.addf %184, %183 : vector<10x96xf32>
    %186 = arith.divf %184, %185 : vector<10x96xf32>
    %187 = vector.extract_strided_slice %186 {offsets = [0, 0], sizes = [10, 32], strides = [1, 1]} : vector<10x96xf32> to vector<10x32xf32>
    %188 = vector.extract_strided_slice %186 {offsets = [0, 32], sizes = [10, 32], strides = [1, 1]} : vector<10x96xf32> to vector<10x32xf32>
    %189 = vector.extract_strided_slice %186 {offsets = [0, 64], sizes = [10, 32], strides = [1, 1]} : vector<10x96xf32> to vector<10x32xf32>
    %190 = vector.extract_strided_slice %180 {offsets = [0, 96], sizes = [10, 32], strides = [1, 1]} : vector<10x128xf32> to vector<10x32xf32>
    %191 = math.tanh %190 : vector<10x32xf32>
    %192 = arith.mulf %188, %150 : vector<10x32xf32>
    %193 = arith.mulf %187, %191 : vector<10x32xf32>
    %194 = arith.addf %192, %193 : vector<10x32xf32>
    %195 = math.tanh %194 : vector<10x32xf32>
    %196 = arith.mulf %189, %195 : vector<10x32xf32>
    %c4 = arith.constant 4 : index
    %c0_40 = arith.constant 0 : index
    %c0_41 = arith.constant 0 : index
    %197 = vector.load %arg0[%c4, %c0_40, %c0_41] : memref<8x10x32xf32, #tpu.memory_space<vmem>>, vector<1x10x32xf32>
    %198 = vector.shape_cast %197 : vector<1x10x32xf32> to vector<10x32xf32>
    %199 = tpu.concatenate %198, %175 in 1 : vector<10x32xf32>, vector<10x32xf32> -> vector<10x64xf32>
    %200 = tpu.concatenate %199, %199 in 1 : vector<10x64xf32>, vector<10x64xf32> -> vector<10x128xf32>
    %201 = arith.mulf %200, %11 : vector<10x128xf32>
    %cst_42 = arith.constant dense<0.000000e+00> : vector<10x128xf32>
    %202 = tpu.matmul %201, %13, %cst_42 {dimension_numbers = #tpu.dot_dimension_numbers<[1], [0], [0], [1], [0, 0, 1, 1], [], []>} : vector<10x128xf32>, vector<128x128xf32>, vector<10x128xf32> -> vector<10x128xf32>
    %203 = arith.addf %202, %17 : vector<10x128xf32>
    %204 = vector.extract_strided_slice %203 {offsets = [0, 0], sizes = [10, 96], strides = [1, 1]} : vector<10x128xf32> to vector<10x96xf32>
    %205 = arith.negf %204 : vector<10x96xf32>
    %206 = math.exp %205 : vector<10x96xf32>
    %cst_43 = arith.constant 1.000000e+00 : f32
    %207 = vector.broadcast %cst_43 : f32 to vector<10x96xf32>
    %208 = arith.addf %207, %206 : vector<10x96xf32>
    %209 = arith.divf %207, %208 : vector<10x96xf32>
    %210 = vector.extract_strided_slice %209 {offsets = [0, 0], sizes = [10, 32], strides = [1, 1]} : vector<10x96xf32> to vector<10x32xf32>
    %211 = vector.extract_strided_slice %209 {offsets = [0, 32], sizes = [10, 32], strides = [1, 1]} : vector<10x96xf32> to vector<10x32xf32>
    %212 = vector.extract_strided_slice %209 {offsets = [0, 64], sizes = [10, 32], strides = [1, 1]} : vector<10x96xf32> to vector<10x32xf32>
    %213 = vector.extract_strided_slice %203 {offsets = [0, 96], sizes = [10, 32], strides = [1, 1]} : vector<10x128xf32> to vector<10x32xf32>
    %214 = math.tanh %213 : vector<10x32xf32>
    %215 = arith.mulf %211, %173 : vector<10x32xf32>
    %216 = arith.mulf %210, %214 : vector<10x32xf32>
    %217 = arith.addf %215, %216 : vector<10x32xf32>
    %218 = math.tanh %217 : vector<10x32xf32>
    %219 = arith.mulf %212, %218 : vector<10x32xf32>
    %220 = tpu.concatenate %219, %196 in 1 : vector<10x32xf32>, vector<10x32xf32> -> vector<10x64xf32>
    %221 = tpu.concatenate %220, %220 in 1 : vector<10x64xf32>, vector<10x64xf32> -> vector<10x128xf32>
    %222 = arith.mulf %221, %11 : vector<10x128xf32>
    %cst_44 = arith.constant dense<0.000000e+00> : vector<10x128xf32>
    %223 = tpu.matmul %222, %15, %cst_44 {dimension_numbers = #tpu.dot_dimension_numbers<[1], [0], [0], [1], [0, 0, 1, 1], [], []>} : vector<10x128xf32>, vector<128x128xf32>, vector<10x128xf32> -> vector<10x128xf32>
    %224 = arith.addf %223, %19 : vector<10x128xf32>
    %225 = vector.extract_strided_slice %224 {offsets = [0, 0], sizes = [10, 96], strides = [1, 1]} : vector<10x128xf32> to vector<10x96xf32>
    %226 = arith.negf %225 : vector<10x96xf32>
    %227 = math.exp %226 : vector<10x96xf32>
    %cst_45 = arith.constant 1.000000e+00 : f32
    %228 = vector.broadcast %cst_45 : f32 to vector<10x96xf32>
    %229 = arith.addf %228, %227 : vector<10x96xf32>
    %230 = arith.divf %228, %229 : vector<10x96xf32>
    %231 = vector.extract_strided_slice %230 {offsets = [0, 0], sizes = [10, 32], strides = [1, 1]} : vector<10x96xf32> to vector<10x32xf32>
    %232 = vector.extract_strided_slice %230 {offsets = [0, 32], sizes = [10, 32], strides = [1, 1]} : vector<10x96xf32> to vector<10x32xf32>
    %233 = vector.extract_strided_slice %230 {offsets = [0, 64], sizes = [10, 32], strides = [1, 1]} : vector<10x96xf32> to vector<10x32xf32>
    %234 = vector.extract_strided_slice %224 {offsets = [0, 96], sizes = [10, 32], strides = [1, 1]} : vector<10x128xf32> to vector<10x32xf32>
    %235 = math.tanh %234 : vector<10x32xf32>
    %236 = arith.mulf %232, %194 : vector<10x32xf32>
    %237 = arith.mulf %231, %235 : vector<10x32xf32>
    %238 = arith.addf %236, %237 : vector<10x32xf32>
    %239 = math.tanh %238 : vector<10x32xf32>
    %240 = arith.mulf %233, %239 : vector<10x32xf32>
    %c5 = arith.constant 5 : index
    %c0_46 = arith.constant 0 : index
    %c0_47 = arith.constant 0 : index
    %241 = vector.load %arg0[%c5, %c0_46, %c0_47] : memref<8x10x32xf32, #tpu.memory_space<vmem>>, vector<1x10x32xf32>
    %242 = vector.shape_cast %241 : vector<1x10x32xf32> to vector<10x32xf32>
    %243 = tpu.concatenate %242, %219 in 1 : vector<10x32xf32>, vector<10x32xf32> -> vector<10x64xf32>
    %244 = tpu.concatenate %243, %243 in 1 : vector<10x64xf32>, vector<10x64xf32> -> vector<10x128xf32>
    %245 = arith.mulf %244, %11 : vector<10x128xf32>
    %cst_48 = arith.constant dense<0.000000e+00> : vector<10x128xf32>
    %246 = tpu.matmul %245, %13, %cst_48 {dimension_numbers = #tpu.dot_dimension_numbers<[1], [0], [0], [1], [0, 0, 1, 1], [], []>} : vector<10x128xf32>, vector<128x128xf32>, vector<10x128xf32> -> vector<10x128xf32>
    %247 = arith.addf %246, %17 : vector<10x128xf32>
    %248 = vector.extract_strided_slice %247 {offsets = [0, 0], sizes = [10, 96], strides = [1, 1]} : vector<10x128xf32> to vector<10x96xf32>
    %249 = arith.negf %248 : vector<10x96xf32>
    %250 = math.exp %249 : vector<10x96xf32>
    %cst_49 = arith.constant 1.000000e+00 : f32
    %251 = vector.broadcast %cst_49 : f32 to vector<10x96xf32>
    %252 = arith.addf %251, %250 : vector<10x96xf32>
    %253 = arith.divf %251, %252 : vector<10x96xf32>
    %254 = vector.extract_strided_slice %253 {offsets = [0, 0], sizes = [10, 32], strides = [1, 1]} : vector<10x96xf32> to vector<10x32xf32>
    %255 = vector.extract_strided_slice %253 {offsets = [0, 32], sizes = [10, 32], strides = [1, 1]} : vector<10x96xf32> to vector<10x32xf32>
    %256 = vector.extract_strided_slice %253 {offsets = [0, 64], sizes = [10, 32], strides = [1, 1]} : vector<10x96xf32> to vector<10x32xf32>
    %257 = vector.extract_strided_slice %247 {offsets = [0, 96], sizes = [10, 32], strides = [1, 1]} : vector<10x128xf32> to vector<10x32xf32>
    %258 = math.tanh %257 : vector<10x32xf32>
    %259 = arith.mulf %255, %217 : vector<10x32xf32>
    %260 = arith.mulf %254, %258 : vector<10x32xf32>
    %261 = arith.addf %259, %260 : vector<10x32xf32>
    %262 = math.tanh %261 : vector<10x32xf32>
    %263 = arith.mulf %256, %262 : vector<10x32xf32>
    %264 = tpu.concatenate %263, %240 in 1 : vector<10x32xf32>, vector<10x32xf32> -> vector<10x64xf32>
    %265 = tpu.concatenate %264, %264 in 1 : vector<10x64xf32>, vector<10x64xf32> -> vector<10x128xf32>
    %266 = arith.mulf %265, %11 : vector<10x128xf32>
    %cst_50 = arith.constant dense<0.000000e+00> : vector<10x128xf32>
    %267 = tpu.matmul %266, %15, %cst_50 {dimension_numbers = #tpu.dot_dimension_numbers<[1], [0], [0], [1], [0, 0, 1, 1], [], []>} : vector<10x128xf32>, vector<128x128xf32>, vector<10x128xf32> -> vector<10x128xf32>
    %268 = arith.addf %267, %19 : vector<10x128xf32>
    %269 = vector.extract_strided_slice %268 {offsets = [0, 0], sizes = [10, 96], strides = [1, 1]} : vector<10x128xf32> to vector<10x96xf32>
    %270 = arith.negf %269 : vector<10x96xf32>
    %271 = math.exp %270 : vector<10x96xf32>
    %cst_51 = arith.constant 1.000000e+00 : f32
    %272 = vector.broadcast %cst_51 : f32 to vector<10x96xf32>
    %273 = arith.addf %272, %271 : vector<10x96xf32>
    %274 = arith.divf %272, %273 : vector<10x96xf32>
    %275 = vector.extract_strided_slice %274 {offsets = [0, 0], sizes = [10, 32], strides = [1, 1]} : vector<10x96xf32> to vector<10x32xf32>
    %276 = vector.extract_strided_slice %274 {offsets = [0, 32], sizes = [10, 32], strides = [1, 1]} : vector<10x96xf32> to vector<10x32xf32>
    %277 = vector.extract_strided_slice %274 {offsets = [0, 64], sizes = [10, 32], strides = [1, 1]} : vector<10x96xf32> to vector<10x32xf32>
    %278 = vector.extract_strided_slice %268 {offsets = [0, 96], sizes = [10, 32], strides = [1, 1]} : vector<10x128xf32> to vector<10x32xf32>
    %279 = math.tanh %278 : vector<10x32xf32>
    %280 = arith.mulf %276, %238 : vector<10x32xf32>
    %281 = arith.mulf %275, %279 : vector<10x32xf32>
    %282 = arith.addf %280, %281 : vector<10x32xf32>
    %283 = math.tanh %282 : vector<10x32xf32>
    %284 = arith.mulf %277, %283 : vector<10x32xf32>
    %c6 = arith.constant 6 : index
    %c0_52 = arith.constant 0 : index
    %c0_53 = arith.constant 0 : index
    %285 = vector.load %arg0[%c6, %c0_52, %c0_53] : memref<8x10x32xf32, #tpu.memory_space<vmem>>, vector<1x10x32xf32>
    %286 = vector.shape_cast %285 : vector<1x10x32xf32> to vector<10x32xf32>
    %287 = tpu.concatenate %286, %263 in 1 : vector<10x32xf32>, vector<10x32xf32> -> vector<10x64xf32>
    %288 = tpu.concatenate %287, %287 in 1 : vector<10x64xf32>, vector<10x64xf32> -> vector<10x128xf32>
    %289 = arith.mulf %288, %11 : vector<10x128xf32>
    %cst_54 = arith.constant dense<0.000000e+00> : vector<10x128xf32>
    %290 = tpu.matmul %289, %13, %cst_54 {dimension_numbers = #tpu.dot_dimension_numbers<[1], [0], [0], [1], [0, 0, 1, 1], [], []>} : vector<10x128xf32>, vector<128x128xf32>, vector<10x128xf32> -> vector<10x128xf32>
    %291 = arith.addf %290, %17 : vector<10x128xf32>
    %292 = vector.extract_strided_slice %291 {offsets = [0, 0], sizes = [10, 96], strides = [1, 1]} : vector<10x128xf32> to vector<10x96xf32>
    %293 = arith.negf %292 : vector<10x96xf32>
    %294 = math.exp %293 : vector<10x96xf32>
    %cst_55 = arith.constant 1.000000e+00 : f32
    %295 = vector.broadcast %cst_55 : f32 to vector<10x96xf32>
    %296 = arith.addf %295, %294 : vector<10x96xf32>
    %297 = arith.divf %295, %296 : vector<10x96xf32>
    %298 = vector.extract_strided_slice %297 {offsets = [0, 0], sizes = [10, 32], strides = [1, 1]} : vector<10x96xf32> to vector<10x32xf32>
    %299 = vector.extract_strided_slice %297 {offsets = [0, 32], sizes = [10, 32], strides = [1, 1]} : vector<10x96xf32> to vector<10x32xf32>
    %300 = vector.extract_strided_slice %297 {offsets = [0, 64], sizes = [10, 32], strides = [1, 1]} : vector<10x96xf32> to vector<10x32xf32>
    %301 = vector.extract_strided_slice %291 {offsets = [0, 96], sizes = [10, 32], strides = [1, 1]} : vector<10x128xf32> to vector<10x32xf32>
    %302 = math.tanh %301 : vector<10x32xf32>
    %303 = arith.mulf %299, %261 : vector<10x32xf32>
    %304 = arith.mulf %298, %302 : vector<10x32xf32>
    %305 = arith.addf %303, %304 : vector<10x32xf32>
    %306 = math.tanh %305 : vector<10x32xf32>
    %307 = arith.mulf %300, %306 : vector<10x32xf32>
    %308 = tpu.concatenate %307, %284 in 1 : vector<10x32xf32>, vector<10x32xf32> -> vector<10x64xf32>
    %309 = tpu.concatenate %308, %308 in 1 : vector<10x64xf32>, vector<10x64xf32> -> vector<10x128xf32>
    %310 = arith.mulf %309, %11 : vector<10x128xf32>
    %cst_56 = arith.constant dense<0.000000e+00> : vector<10x128xf32>
    %311 = tpu.matmul %310, %15, %cst_56 {dimension_numbers = #tpu.dot_dimension_numbers<[1], [0], [0], [1], [0, 0, 1, 1], [], []>} : vector<10x128xf32>, vector<128x128xf32>, vector<10x128xf32> -> vector<10x128xf32>
    %312 = arith.addf %311, %19 : vector<10x128xf32>
    %313 = vector.extract_strided_slice %312 {offsets = [0, 0], sizes = [10, 96], strides = [1, 1]} : vector<10x128xf32> to vector<10x96xf32>
    %314 = arith.negf %313 : vector<10x96xf32>
    %315 = math.exp %314 : vector<10x96xf32>
    %cst_57 = arith.constant 1.000000e+00 : f32
    %316 = vector.broadcast %cst_57 : f32 to vector<10x96xf32>
    %317 = arith.addf %316, %315 : vector<10x96xf32>
    %318 = arith.divf %316, %317 : vector<10x96xf32>
    %319 = vector.extract_strided_slice %318 {offsets = [0, 0], sizes = [10, 32], strides = [1, 1]} : vector<10x96xf32> to vector<10x32xf32>
    %320 = vector.extract_strided_slice %318 {offsets = [0, 32], sizes = [10, 32], strides = [1, 1]} : vector<10x96xf32> to vector<10x32xf32>
    %321 = vector.extract_strided_slice %318 {offsets = [0, 64], sizes = [10, 32], strides = [1, 1]} : vector<10x96xf32> to vector<10x32xf32>
    %322 = vector.extract_strided_slice %312 {offsets = [0, 96], sizes = [10, 32], strides = [1, 1]} : vector<10x128xf32> to vector<10x32xf32>
    %323 = math.tanh %322 : vector<10x32xf32>
    %324 = arith.mulf %320, %282 : vector<10x32xf32>
    %325 = arith.mulf %319, %323 : vector<10x32xf32>
    %326 = arith.addf %324, %325 : vector<10x32xf32>
    %327 = math.tanh %326 : vector<10x32xf32>
    %328 = arith.mulf %321, %327 : vector<10x32xf32>
    %c7 = arith.constant 7 : index
    %c0_58 = arith.constant 0 : index
    %c0_59 = arith.constant 0 : index
    %329 = vector.load %arg0[%c7, %c0_58, %c0_59] : memref<8x10x32xf32, #tpu.memory_space<vmem>>, vector<1x10x32xf32>
    %330 = vector.shape_cast %329 : vector<1x10x32xf32> to vector<10x32xf32>
    %331 = tpu.concatenate %330, %307 in 1 : vector<10x32xf32>, vector<10x32xf32> -> vector<10x64xf32>
    %332 = tpu.concatenate %331, %331 in 1 : vector<10x64xf32>, vector<10x64xf32> -> vector<10x128xf32>
    %333 = arith.mulf %332, %11 : vector<10x128xf32>
    %cst_60 = arith.constant dense<0.000000e+00> : vector<10x128xf32>
    %334 = tpu.matmul %333, %13, %cst_60 {dimension_numbers = #tpu.dot_dimension_numbers<[1], [0], [0], [1], [0, 0, 1, 1], [], []>} : vector<10x128xf32>, vector<128x128xf32>, vector<10x128xf32> -> vector<10x128xf32>
    %335 = arith.addf %334, %17 : vector<10x128xf32>
    %336 = vector.extract_strided_slice %335 {offsets = [0, 0], sizes = [10, 96], strides = [1, 1]} : vector<10x128xf32> to vector<10x96xf32>
    %337 = arith.negf %336 : vector<10x96xf32>
    %338 = math.exp %337 : vector<10x96xf32>
    %cst_61 = arith.constant 1.000000e+00 : f32
    %339 = vector.broadcast %cst_61 : f32 to vector<10x96xf32>
    %340 = arith.addf %339, %338 : vector<10x96xf32>
    %341 = arith.divf %339, %340 : vector<10x96xf32>
    %342 = vector.extract_strided_slice %341 {offsets = [0, 0], sizes = [10, 32], strides = [1, 1]} : vector<10x96xf32> to vector<10x32xf32>
    %343 = vector.extract_strided_slice %341 {offsets = [0, 32], sizes = [10, 32], strides = [1, 1]} : vector<10x96xf32> to vector<10x32xf32>
    %344 = vector.extract_strided_slice %341 {offsets = [0, 64], sizes = [10, 32], strides = [1, 1]} : vector<10x96xf32> to vector<10x32xf32>
    %345 = vector.extract_strided_slice %335 {offsets = [0, 96], sizes = [10, 32], strides = [1, 1]} : vector<10x128xf32> to vector<10x32xf32>
    %346 = math.tanh %345 : vector<10x32xf32>
    %347 = arith.mulf %343, %305 : vector<10x32xf32>
    %348 = arith.mulf %342, %346 : vector<10x32xf32>
    %349 = arith.addf %347, %348 : vector<10x32xf32>
    %350 = math.tanh %349 : vector<10x32xf32>
    %351 = arith.mulf %344, %350 : vector<10x32xf32>
    %352 = tpu.concatenate %351, %328 in 1 : vector<10x32xf32>, vector<10x32xf32> -> vector<10x64xf32>
    %353 = tpu.concatenate %352, %352 in 1 : vector<10x64xf32>, vector<10x64xf32> -> vector<10x128xf32>
    %354 = arith.mulf %353, %11 : vector<10x128xf32>
    %cst_62 = arith.constant dense<0.000000e+00> : vector<10x128xf32>
    %355 = tpu.matmul %354, %15, %cst_62 {dimension_numbers = #tpu.dot_dimension_numbers<[1], [0], [0], [1], [0, 0, 1, 1], [], []>} : vector<10x128xf32>, vector<128x128xf32>, vector<10x128xf32> -> vector<10x128xf32>
    %356 = arith.addf %355, %19 : vector<10x128xf32>
    %357 = vector.extract_strided_slice %356 {offsets = [0, 0], sizes = [10, 96], strides = [1, 1]} : vector<10x128xf32> to vector<10x96xf32>
    %358 = arith.negf %357 : vector<10x96xf32>
    %359 = math.exp %358 : vector<10x96xf32>
    %cst_63 = arith.constant 1.000000e+00 : f32
    %360 = vector.broadcast %cst_63 : f32 to vector<10x96xf32>
    %361 = arith.addf %360, %359 : vector<10x96xf32>
    %362 = arith.divf %360, %361 : vector<10x96xf32>
    %363 = vector.extract_strided_slice %362 {offsets = [0, 0], sizes = [10, 32], strides = [1, 1]} : vector<10x96xf32> to vector<10x32xf32>
    %364 = vector.extract_strided_slice %362 {offsets = [0, 32], sizes = [10, 32], strides = [1, 1]} : vector<10x96xf32> to vector<10x32xf32>
    %365 = vector.extract_strided_slice %362 {offsets = [0, 64], sizes = [10, 32], strides = [1, 1]} : vector<10x96xf32> to vector<10x32xf32>
    %366 = vector.extract_strided_slice %356 {offsets = [0, 96], sizes = [10, 32], strides = [1, 1]} : vector<10x128xf32> to vector<10x32xf32>
    %367 = math.tanh %366 : vector<10x32xf32>
    %368 = arith.mulf %364, %326 : vector<10x32xf32>
    %369 = arith.mulf %363, %367 : vector<10x32xf32>
    %370 = arith.addf %368, %369 : vector<10x32xf32>
    %371 = math.tanh %370 : vector<10x32xf32>
    %372 = arith.mulf %365, %371 : vector<10x32xf32>
    %c0_64 = arith.constant 0 : index
    %c0_65 = arith.constant 0 : index
    %c0_66 = arith.constant 0 : index
    %373 = vector.load %arg3[%c0_64, %c0_65, %c0_66] : memref<2x232x128xf32, #tpu.memory_space<vmem>>, vector<1x32x128xf32>
    %374 = vector.shape_cast %373 : vector<1x32x128xf32> to vector<32x128xf32>
    %c0_67 = arith.constant 0 : index
    %c32 = arith.constant 32 : index
    %c0_68 = arith.constant 0 : index
    %375 = vector.load %arg3[%c0_67, %c32, %c0_68] : memref<2x232x128xf32, #tpu.memory_space<vmem>>, vector<1x32x128xf32>
    %376 = vector.shape_cast %375 : vector<1x32x128xf32> to vector<32x128xf32>
    %c0_69 = arith.constant 0 : index
    %c64 = arith.constant 64 : index
    %c0_70 = arith.constant 0 : index
    %377 = vector.load %arg3[%c0_69, %c64, %c0_70] : memref<2x232x128xf32, #tpu.memory_space<vmem>>, vector<1x32x128xf32>
    %378 = vector.shape_cast %377 : vector<1x32x128xf32> to vector<32x128xf32>
    %c0_71 = arith.constant 0 : index
    %c96 = arith.constant 96 : index
    %c0_72 = arith.constant 0 : index
    %379 = vector.load %arg3[%c0_71, %c96, %c0_72] : memref<2x232x128xf32, #tpu.memory_space<vmem>>, vector<1x128x128xf32>
    %380 = vector.shape_cast %379 : vector<1x128x128xf32> to vector<128x128xf32>
    %c0_73 = arith.constant 0 : index
    %c224 = arith.constant 224 : index
    %c0_74 = arith.constant 0 : index
    %381 = vector.load %arg3[%c0_73, %c224, %c0_74] : memref<2x232x128xf32, #tpu.memory_space<vmem>>, vector<1x8x128xf32>
    %382 = vector.shape_cast %381 : vector<1x8x128xf32> to vector<8x128xf32>
    %383 = vector.extract_strided_slice %382 {offsets = [0, 0], sizes = [1, 128], strides = [1, 1]} : vector<8x128xf32> to vector<1x128xf32>
    %384 = vector.extract_strided_slice %382 {offsets = [1, 0], sizes = [1, 32], strides = [1, 1]} : vector<8x128xf32> to vector<1x32xf32>
    %385 = vector.extract_strided_slice %382 {offsets = [2, 0], sizes = [1, 32], strides = [1, 1]} : vector<8x128xf32> to vector<1x32xf32>
    %386 = vector.extract_strided_slice %382 {offsets = [3, 0], sizes = [1, 32], strides = [1, 1]} : vector<8x128xf32> to vector<1x32xf32>
    %387 = vector.extract_strided_slice %382 {offsets = [4, 0], sizes = [1, 128], strides = [1, 1]} : vector<8x128xf32> to vector<1x128xf32>
    %388 = vector.extract_strided_slice %382 {offsets = [5, 0], sizes = [1, 32], strides = [1, 1]} : vector<8x128xf32> to vector<1x32xf32>
    %389 = vector.extract_strided_slice %382 {offsets = [6, 0], sizes = [1, 32], strides = [1, 1]} : vector<8x128xf32> to vector<1x32xf32>
    %390 = vector.extract_strided_slice %382 {offsets = [7, 0], sizes = [1, 32], strides = [1, 1]} : vector<8x128xf32> to vector<1x32xf32>
    %cst_75 = arith.constant dense<0.000000e+00> : vector<10x128xf32>
    %391 = tpu.matmul %372, %374, %cst_75 {dimension_numbers = #tpu.dot_dimension_numbers<[1], [0], [0], [1], [0, 0, 1, 1], [], []>} : vector<10x32xf32>, vector<32x128xf32>, vector<10x128xf32> -> vector<10x128xf32>
    %392 = vector.broadcast %383 : vector<1x128xf32> to vector<10x128xf32>
    %393 = arith.addf %391, %392 : vector<10x128xf32>
    %394 = vector.extract_strided_slice %393 {offsets = [0, 0], sizes = [10, 32], strides = [1, 1]} : vector<10x128xf32> to vector<10x32xf32>
    %395 = vector.extract_strided_slice %393 {offsets = [0, 32], sizes = [10, 32], strides = [1, 1]} : vector<10x128xf32> to vector<10x32xf32>
    %396 = vector.extract_strided_slice %393 {offsets = [0, 64], sizes = [10, 32], strides = [1, 1]} : vector<10x128xf32> to vector<10x32xf32>
    %397 = vector.extract_strided_slice %394 {offsets = [0, 0], sizes = [10, 8], strides = [1, 1]} : vector<10x32xf32> to vector<10x8xf32>
    %398 = vector.extract_strided_slice %395 {offsets = [0, 0], sizes = [10, 8], strides = [1, 1]} : vector<10x32xf32> to vector<10x8xf32>
    "tpu.trace_start"() <{level = 10 : i32, message = "nd,md->nm"}> : () -> ()
    %cst_76 = arith.constant dense<0.000000e+00> : vector<10x10xf32>
    %399 = tpu.matmul %397, %398, %cst_76 {dimension_numbers = #tpu.dot_dimension_numbers<[1], [1], [0], [0], [0, 0, 1, 0], [], []>} : vector<10x8xf32>, vector<10x8xf32>, vector<10x10xf32> -> vector<10x10xf32>
    "tpu.trace_stop"() : () -> ()
    %400 = arith.addf %399, %0 : vector<10x10xf32>
    %cst_77 = arith.constant dense<0xFF800000> : vector<10xf32>
    %401 = vector.multi_reduction <maximumf>, %400, %cst_77 [1] : vector<10x10xf32> to vector<10xf32>
    %402 = vector.shape_cast %401 : vector<10xf32> to vector<10x1xf32>
    %403 = vector.broadcast %402 : vector<10x1xf32> to vector<10x10xf32>
    %404 = arith.subf %400, %403 : vector<10x10xf32>
    %405 = math.exp %404 : vector<10x10xf32>
    %cst_78 = arith.constant dense<0.000000e+00> : vector<10xf32>
    %406 = vector.multi_reduction <add>, %405, %cst_78 [1] : vector<10x10xf32> to vector<10xf32>
    %407 = vector.shape_cast %406 : vector<10xf32> to vector<10x1xf32>
    %408 = tpu.reciprocal %407 {approx = true} : vector<10x1xf32> -> vector<10x1xf32>
    %409 = vector.broadcast %408 : vector<10x1xf32> to vector<10x10xf32>
    %410 = arith.mulf %405, %409 : vector<10x10xf32>
    %411 = vector.extract_strided_slice %396 {offsets = [0, 0], sizes = [10, 8], strides = [1, 1]} : vector<10x32xf32> to vector<10x8xf32>
    %cst_79 = arith.constant dense<0.000000e+00> : vector<10x8xf32>
    %412 = tpu.matmul %410, %411, %cst_79 {dimension_numbers = #tpu.dot_dimension_numbers<[1], [0], [0], [1], [0, 0, 1, 1], [], []>} : vector<10x10xf32>, vector<10x8xf32>, vector<10x8xf32> -> vector<10x8xf32>
    %413 = vector.extract_strided_slice %394 {offsets = [0, 8], sizes = [10, 8], strides = [1, 1]} : vector<10x32xf32> to vector<10x8xf32>
    %414 = vector.extract_strided_slice %395 {offsets = [0, 8], sizes = [10, 8], strides = [1, 1]} : vector<10x32xf32> to vector<10x8xf32>
    "tpu.trace_start"() <{level = 10 : i32, message = "nd,md->nm"}> : () -> ()
    %cst_80 = arith.constant dense<0.000000e+00> : vector<10x10xf32>
    %415 = tpu.matmul %413, %414, %cst_80 {dimension_numbers = #tpu.dot_dimension_numbers<[1], [1], [0], [0], [0, 0, 1, 0], [], []>} : vector<10x8xf32>, vector<10x8xf32>, vector<10x10xf32> -> vector<10x10xf32>
    "tpu.trace_stop"() : () -> ()
    %416 = arith.addf %415, %0 : vector<10x10xf32>
    %cst_81 = arith.constant dense<0xFF800000> : vector<10xf32>
    %417 = vector.multi_reduction <maximumf>, %416, %cst_81 [1] : vector<10x10xf32> to vector<10xf32>
    %418 = vector.shape_cast %417 : vector<10xf32> to vector<10x1xf32>
    %419 = vector.broadcast %418 : vector<10x1xf32> to vector<10x10xf32>
    %420 = arith.subf %416, %419 : vector<10x10xf32>
    %421 = math.exp %420 : vector<10x10xf32>
    %cst_82 = arith.constant dense<0.000000e+00> : vector<10xf32>
    %422 = vector.multi_reduction <add>, %421, %cst_82 [1] : vector<10x10xf32> to vector<10xf32>
    %423 = vector.shape_cast %422 : vector<10xf32> to vector<10x1xf32>
    %424 = tpu.reciprocal %423 {approx = true} : vector<10x1xf32> -> vector<10x1xf32>
    %425 = vector.broadcast %424 : vector<10x1xf32> to vector<10x10xf32>
    %426 = arith.mulf %421, %425 : vector<10x10xf32>
    %427 = vector.extract_strided_slice %396 {offsets = [0, 8], sizes = [10, 8], strides = [1, 1]} : vector<10x32xf32> to vector<10x8xf32>
    %cst_83 = arith.constant dense<0.000000e+00> : vector<10x8xf32>
    %428 = tpu.matmul %426, %427, %cst_83 {dimension_numbers = #tpu.dot_dimension_numbers<[1], [0], [0], [1], [0, 0, 1, 1], [], []>} : vector<10x10xf32>, vector<10x8xf32>, vector<10x8xf32> -> vector<10x8xf32>
    %429 = vector.extract_strided_slice %394 {offsets = [0, 16], sizes = [10, 8], strides = [1, 1]} : vector<10x32xf32> to vector<10x8xf32>
    %430 = vector.extract_strided_slice %395 {offsets = [0, 16], sizes = [10, 8], strides = [1, 1]} : vector<10x32xf32> to vector<10x8xf32>
    "tpu.trace_start"() <{level = 10 : i32, message = "nd,md->nm"}> : () -> ()
    %cst_84 = arith.constant dense<0.000000e+00> : vector<10x10xf32>
    %431 = tpu.matmul %429, %430, %cst_84 {dimension_numbers = #tpu.dot_dimension_numbers<[1], [1], [0], [0], [0, 0, 1, 0], [], []>} : vector<10x8xf32>, vector<10x8xf32>, vector<10x10xf32> -> vector<10x10xf32>
    "tpu.trace_stop"() : () -> ()
    %432 = arith.addf %431, %0 : vector<10x10xf32>
    %cst_85 = arith.constant dense<0xFF800000> : vector<10xf32>
    %433 = vector.multi_reduction <maximumf>, %432, %cst_85 [1] : vector<10x10xf32> to vector<10xf32>
    %434 = vector.shape_cast %433 : vector<10xf32> to vector<10x1xf32>
    %435 = vector.broadcast %434 : vector<10x1xf32> to vector<10x10xf32>
    %436 = arith.subf %432, %435 : vector<10x10xf32>
    %437 = math.exp %436 : vector<10x10xf32>
    %cst_86 = arith.constant dense<0.000000e+00> : vector<10xf32>
    %438 = vector.multi_reduction <add>, %437, %cst_86 [1] : vector<10x10xf32> to vector<10xf32>
    %439 = vector.shape_cast %438 : vector<10xf32> to vector<10x1xf32>
    %440 = tpu.reciprocal %439 {approx = true} : vector<10x1xf32> -> vector<10x1xf32>
    %441 = vector.broadcast %440 : vector<10x1xf32> to vector<10x10xf32>
    %442 = arith.mulf %437, %441 : vector<10x10xf32>
    %443 = vector.extract_strided_slice %396 {offsets = [0, 16], sizes = [10, 8], strides = [1, 1]} : vector<10x32xf32> to vector<10x8xf32>
    %cst_87 = arith.constant dense<0.000000e+00> : vector<10x8xf32>
    %444 = tpu.matmul %442, %443, %cst_87 {dimension_numbers = #tpu.dot_dimension_numbers<[1], [0], [0], [1], [0, 0, 1, 1], [], []>} : vector<10x10xf32>, vector<10x8xf32>, vector<10x8xf32> -> vector<10x8xf32>
    %445 = vector.extract_strided_slice %394 {offsets = [0, 24], sizes = [10, 8], strides = [1, 1]} : vector<10x32xf32> to vector<10x8xf32>
    %446 = vector.extract_strided_slice %395 {offsets = [0, 24], sizes = [10, 8], strides = [1, 1]} : vector<10x32xf32> to vector<10x8xf32>
    "tpu.trace_start"() <{level = 10 : i32, message = "nd,md->nm"}> : () -> ()
    %cst_88 = arith.constant dense<0.000000e+00> : vector<10x10xf32>
    %447 = tpu.matmul %445, %446, %cst_88 {dimension_numbers = #tpu.dot_dimension_numbers<[1], [1], [0], [0], [0, 0, 1, 0], [], []>} : vector<10x8xf32>, vector<10x8xf32>, vector<10x10xf32> -> vector<10x10xf32>
    "tpu.trace_stop"() : () -> ()
    %448 = arith.addf %447, %0 : vector<10x10xf32>
    %cst_89 = arith.constant dense<0xFF800000> : vector<10xf32>
    %449 = vector.multi_reduction <maximumf>, %448, %cst_89 [1] : vector<10x10xf32> to vector<10xf32>
    %450 = vector.shape_cast %449 : vector<10xf32> to vector<10x1xf32>
    %451 = vector.broadcast %450 : vector<10x1xf32> to vector<10x10xf32>
    %452 = arith.subf %448, %451 : vector<10x10xf32>
    %453 = math.exp %452 : vector<10x10xf32>
    %cst_90 = arith.constant dense<0.000000e+00> : vector<10xf32>
    %454 = vector.multi_reduction <add>, %453, %cst_90 [1] : vector<10x10xf32> to vector<10xf32>
    %455 = vector.shape_cast %454 : vector<10xf32> to vector<10x1xf32>
    %456 = tpu.reciprocal %455 {approx = true} : vector<10x1xf32> -> vector<10x1xf32>
    %457 = vector.broadcast %456 : vector<10x1xf32> to vector<10x10xf32>
    %458 = arith.mulf %453, %457 : vector<10x10xf32>
    %459 = vector.extract_strided_slice %396 {offsets = [0, 24], sizes = [10, 8], strides = [1, 1]} : vector<10x32xf32> to vector<10x8xf32>
    %cst_91 = arith.constant dense<0.000000e+00> : vector<10x8xf32>
    %460 = tpu.matmul %458, %459, %cst_91 {dimension_numbers = #tpu.dot_dimension_numbers<[1], [0], [0], [1], [0, 0, 1, 1], [], []>} : vector<10x10xf32>, vector<10x8xf32>, vector<10x8xf32> -> vector<10x8xf32>
    %461 = tpu.concatenate %412, %428, %444, %460 in 1 : vector<10x8xf32>, vector<10x8xf32>, vector<10x8xf32>, vector<10x8xf32> -> vector<10x32xf32>
    %cst_92 = arith.constant dense<0.000000e+00> : vector<10x128xf32>
    %462 = tpu.matmul %461, %376, %cst_92 {dimension_numbers = #tpu.dot_dimension_numbers<[1], [0], [0], [1], [0, 0, 1, 1], [], []>} : vector<10x32xf32>, vector<32x128xf32>, vector<10x128xf32> -> vector<10x128xf32>
    %463 = vector.extract_strided_slice %462 {offsets = [0, 0], sizes = [10, 32], strides = [1, 1]} : vector<10x128xf32> to vector<10x32xf32>
    %464 = vector.broadcast %384 : vector<1x32xf32> to vector<10x32xf32>
    %465 = arith.addf %463, %464 : vector<10x32xf32>
    %466 = arith.addf %372, %465 : vector<10x32xf32>
    %cst_93 = arith.constant dense<0.000000e+00> : vector<10xf32>
    %467 = vector.multi_reduction <add>, %466, %cst_93 [1] : vector<10x32xf32> to vector<10xf32>
    %468 = vector.shape_cast %467 : vector<10xf32> to vector<10x1xf32>
    %cst_94 = arith.constant 3.200000e+01 : f32
    %469 = vector.broadcast %cst_94 : f32 to vector<10x1xf32>
    %470 = arith.divf %468, %469 : vector<10x1xf32>
    %471 = vector.broadcast %470 : vector<10x1xf32> to vector<10x32xf32>
    %472 = arith.subf %466, %471 : vector<10x32xf32>
    %473 = arith.mulf %472, %472 : vector<10x32xf32>
    %cst_95 = arith.constant dense<0.000000e+00> : vector<10xf32>
    %474 = vector.multi_reduction <add>, %473, %cst_95 [1] : vector<10x32xf32> to vector<10xf32>
    %475 = vector.shape_cast %474 : vector<10xf32> to vector<10x1xf32>
    %cst_96 = arith.constant 3.200000e+01 : f32
    %476 = vector.broadcast %cst_96 : f32 to vector<10x1xf32>
    %477 = arith.divf %475, %476 : vector<10x1xf32>
    %cst_97 = arith.constant 9.99999974E-6 : f32
    %478 = vector.broadcast %cst_97 : f32 to vector<10x1xf32>
    %479 = arith.addf %477, %478 : vector<10x1xf32>
    %480 = math.rsqrt %479 : vector<10x1xf32>
    %481 = vector.broadcast %480 : vector<10x1xf32> to vector<10x32xf32>
    %482 = arith.mulf %472, %481 : vector<10x32xf32>
    %483 = vector.broadcast %385 : vector<1x32xf32> to vector<10x32xf32>
    %484 = arith.mulf %482, %483 : vector<10x32xf32>
    %485 = vector.broadcast %386 : vector<1x32xf32> to vector<10x32xf32>
    %486 = arith.addf %484, %485 : vector<10x32xf32>
    %cst_98 = arith.constant dense<0.000000e+00> : vector<10x128xf32>
    %487 = tpu.matmul %486, %378, %cst_98 {dimension_numbers = #tpu.dot_dimension_numbers<[1], [0], [0], [1], [0, 0, 1, 1], [], []>} : vector<10x32xf32>, vector<32x128xf32>, vector<10x128xf32> -> vector<10x128xf32>
    %488 = vector.broadcast %387 : vector<1x128xf32> to vector<10x128xf32>
    %489 = arith.addf %487, %488 : vector<10x128xf32>
    %cst_99 = arith.constant 0.000000e+00 : f32
    %490 = vector.broadcast %cst_99 : f32 to vector<10x128xf32>
    %491 = arith.maximumf %489, %490 : vector<10x128xf32>
    %cst_100 = arith.constant dense<0.000000e+00> : vector<10x128xf32>
    %492 = tpu.matmul %491, %380, %cst_100 {dimension_numbers = #tpu.dot_dimension_numbers<[1], [0], [0], [1], [0, 0, 1, 1], [], []>} : vector<10x128xf32>, vector<128x128xf32>, vector<10x128xf32> -> vector<10x128xf32>
    %493 = vector.extract_strided_slice %492 {offsets = [0, 0], sizes = [10, 32], strides = [1, 1]} : vector<10x128xf32> to vector<10x32xf32>
    %494 = vector.broadcast %388 : vector<1x32xf32> to vector<10x32xf32>
    %495 = arith.addf %493, %494 : vector<10x32xf32>
    %496 = arith.addf %486, %495 : vector<10x32xf32>
    %cst_101 = arith.constant dense<0.000000e+00> : vector<10xf32>
    %497 = vector.multi_reduction <add>, %496, %cst_101 [1] : vector<10x32xf32> to vector<10xf32>
    %498 = vector.shape_cast %497 : vector<10xf32> to vector<10x1xf32>
    %cst_102 = arith.constant 3.200000e+01 : f32
    %499 = vector.broadcast %cst_102 : f32 to vector<10x1xf32>
    %500 = arith.divf %498, %499 : vector<10x1xf32>
    %501 = vector.broadcast %500 : vector<10x1xf32> to vector<10x32xf32>
    %502 = arith.subf %496, %501 : vector<10x32xf32>
    %503 = arith.mulf %502, %502 : vector<10x32xf32>
    %cst_103 = arith.constant dense<0.000000e+00> : vector<10xf32>
    %504 = vector.multi_reduction <add>, %503, %cst_103 [1] : vector<10x32xf32> to vector<10xf32>
    %505 = vector.shape_cast %504 : vector<10xf32> to vector<10x1xf32>
    %cst_104 = arith.constant 3.200000e+01 : f32
    %506 = vector.broadcast %cst_104 : f32 to vector<10x1xf32>
    %507 = arith.divf %505, %506 : vector<10x1xf32>
    %cst_105 = arith.constant 9.99999974E-6 : f32
    %508 = vector.broadcast %cst_105 : f32 to vector<10x1xf32>
    %509 = arith.addf %507, %508 : vector<10x1xf32>
    %510 = math.rsqrt %509 : vector<10x1xf32>
    %511 = vector.broadcast %510 : vector<10x1xf32> to vector<10x32xf32>
    %512 = arith.mulf %502, %511 : vector<10x32xf32>
    %513 = vector.broadcast %389 : vector<1x32xf32> to vector<10x32xf32>
    %514 = arith.mulf %512, %513 : vector<10x32xf32>
    %515 = vector.broadcast %390 : vector<1x32xf32> to vector<10x32xf32>
    %516 = arith.addf %514, %515 : vector<10x32xf32>
    %c1_106 = arith.constant 1 : index
    %c0_107 = arith.constant 0 : index
    %c0_108 = arith.constant 0 : index
    %517 = vector.load %arg3[%c1_106, %c0_107, %c0_108] : memref<2x232x128xf32, #tpu.memory_space<vmem>>, vector<1x32x128xf32>
    %518 = vector.shape_cast %517 : vector<1x32x128xf32> to vector<32x128xf32>
    %c1_109 = arith.constant 1 : index
    %c32_110 = arith.constant 32 : index
    %c0_111 = arith.constant 0 : index
    %519 = vector.load %arg3[%c1_109, %c32_110, %c0_111] : memref<2x232x128xf32, #tpu.memory_space<vmem>>, vector<1x32x128xf32>
    %520 = vector.shape_cast %519 : vector<1x32x128xf32> to vector<32x128xf32>
    %c1_112 = arith.constant 1 : index
    %c64_113 = arith.constant 64 : index
    %c0_114 = arith.constant 0 : index
    %521 = vector.load %arg3[%c1_112, %c64_113, %c0_114] : memref<2x232x128xf32, #tpu.memory_space<vmem>>, vector<1x32x128xf32>
    %522 = vector.shape_cast %521 : vector<1x32x128xf32> to vector<32x128xf32>
    %c1_115 = arith.constant 1 : index
    %c96_116 = arith.constant 96 : index
    %c0_117 = arith.constant 0 : index
    %523 = vector.load %arg3[%c1_115, %c96_116, %c0_117] : memref<2x232x128xf32, #tpu.memory_space<vmem>>, vector<1x128x128xf32>
    %524 = vector.shape_cast %523 : vector<1x128x128xf32> to vector<128x128xf32>
    %c1_118 = arith.constant 1 : index
    %c224_119 = arith.constant 224 : index
    %c0_120 = arith.constant 0 : index
    %525 = vector.load %arg3[%c1_118, %c224_119, %c0_120] : memref<2x232x128xf32, #tpu.memory_space<vmem>>, vector<1x8x128xf32>
    %526 = vector.shape_cast %525 : vector<1x8x128xf32> to vector<8x128xf32>
    %527 = vector.extract_strided_slice %526 {offsets = [0, 0], sizes = [1, 128], strides = [1, 1]} : vector<8x128xf32> to vector<1x128xf32>
    %528 = vector.extract_strided_slice %526 {offsets = [1, 0], sizes = [1, 32], strides = [1, 1]} : vector<8x128xf32> to vector<1x32xf32>
    %529 = vector.extract_strided_slice %526 {offsets = [2, 0], sizes = [1, 32], strides = [1, 1]} : vector<8x128xf32> to vector<1x32xf32>
    %530 = vector.extract_strided_slice %526 {offsets = [3, 0], sizes = [1, 32], strides = [1, 1]} : vector<8x128xf32> to vector<1x32xf32>
    %531 = vector.extract_strided_slice %526 {offsets = [4, 0], sizes = [1, 128], strides = [1, 1]} : vector<8x128xf32> to vector<1x128xf32>
    %532 = vector.extract_strided_slice %526 {offsets = [5, 0], sizes = [1, 32], strides = [1, 1]} : vector<8x128xf32> to vector<1x32xf32>
    %533 = vector.extract_strided_slice %526 {offsets = [6, 0], sizes = [1, 32], strides = [1, 1]} : vector<8x128xf32> to vector<1x32xf32>
    %534 = vector.extract_strided_slice %526 {offsets = [7, 0], sizes = [1, 32], strides = [1, 1]} : vector<8x128xf32> to vector<1x32xf32>
    %cst_121 = arith.constant dense<0.000000e+00> : vector<10x128xf32>
    %535 = tpu.matmul %516, %518, %cst_121 {dimension_numbers = #tpu.dot_dimension_numbers<[1], [0], [0], [1], [0, 0, 1, 1], [], []>} : vector<10x32xf32>, vector<32x128xf32>, vector<10x128xf32> -> vector<10x128xf32>
    %536 = vector.broadcast %527 : vector<1x128xf32> to vector<10x128xf32>
    %537 = arith.addf %535, %536 : vector<10x128xf32>
    %538 = vector.extract_strided_slice %537 {offsets = [0, 0], sizes = [10, 32], strides = [1, 1]} : vector<10x128xf32> to vector<10x32xf32>
    %539 = vector.extract_strided_slice %537 {offsets = [0, 32], sizes = [10, 32], strides = [1, 1]} : vector<10x128xf32> to vector<10x32xf32>
    %540 = vector.extract_strided_slice %537 {offsets = [0, 64], sizes = [10, 32], strides = [1, 1]} : vector<10x128xf32> to vector<10x32xf32>
    %541 = vector.extract_strided_slice %538 {offsets = [0, 0], sizes = [10, 8], strides = [1, 1]} : vector<10x32xf32> to vector<10x8xf32>
    %542 = vector.extract_strided_slice %539 {offsets = [0, 0], sizes = [10, 8], strides = [1, 1]} : vector<10x32xf32> to vector<10x8xf32>
    "tpu.trace_start"() <{level = 10 : i32, message = "nd,md->nm"}> : () -> ()
    %cst_122 = arith.constant dense<0.000000e+00> : vector<10x10xf32>
    %543 = tpu.matmul %541, %542, %cst_122 {dimension_numbers = #tpu.dot_dimension_numbers<[1], [1], [0], [0], [0, 0, 1, 0], [], []>} : vector<10x8xf32>, vector<10x8xf32>, vector<10x10xf32> -> vector<10x10xf32>
    "tpu.trace_stop"() : () -> ()
    %544 = arith.addf %543, %0 : vector<10x10xf32>
    %cst_123 = arith.constant dense<0xFF800000> : vector<10xf32>
    %545 = vector.multi_reduction <maximumf>, %544, %cst_123 [1] : vector<10x10xf32> to vector<10xf32>
    %546 = vector.shape_cast %545 : vector<10xf32> to vector<10x1xf32>
    %547 = vector.broadcast %546 : vector<10x1xf32> to vector<10x10xf32>
    %548 = arith.subf %544, %547 : vector<10x10xf32>
    %549 = math.exp %548 : vector<10x10xf32>
    %cst_124 = arith.constant dense<0.000000e+00> : vector<10xf32>
    %550 = vector.multi_reduction <add>, %549, %cst_124 [1] : vector<10x10xf32> to vector<10xf32>
    %551 = vector.shape_cast %550 : vector<10xf32> to vector<10x1xf32>
    %552 = tpu.reciprocal %551 {approx = true} : vector<10x1xf32> -> vector<10x1xf32>
    %553 = vector.broadcast %552 : vector<10x1xf32> to vector<10x10xf32>
    %554 = arith.mulf %549, %553 : vector<10x10xf32>
    %555 = vector.extract_strided_slice %540 {offsets = [0, 0], sizes = [10, 8], strides = [1, 1]} : vector<10x32xf32> to vector<10x8xf32>
    %cst_125 = arith.constant dense<0.000000e+00> : vector<10x8xf32>
    %556 = tpu.matmul %554, %555, %cst_125 {dimension_numbers = #tpu.dot_dimension_numbers<[1], [0], [0], [1], [0, 0, 1, 1], [], []>} : vector<10x10xf32>, vector<10x8xf32>, vector<10x8xf32> -> vector<10x8xf32>
    %557 = vector.extract_strided_slice %538 {offsets = [0, 8], sizes = [10, 8], strides = [1, 1]} : vector<10x32xf32> to vector<10x8xf32>
    %558 = vector.extract_strided_slice %539 {offsets = [0, 8], sizes = [10, 8], strides = [1, 1]} : vector<10x32xf32> to vector<10x8xf32>
    "tpu.trace_start"() <{level = 10 : i32, message = "nd,md->nm"}> : () -> ()
    %cst_126 = arith.constant dense<0.000000e+00> : vector<10x10xf32>
    %559 = tpu.matmul %557, %558, %cst_126 {dimension_numbers = #tpu.dot_dimension_numbers<[1], [1], [0], [0], [0, 0, 1, 0], [], []>} : vector<10x8xf32>, vector<10x8xf32>, vector<10x10xf32> -> vector<10x10xf32>
    "tpu.trace_stop"() : () -> ()
    %560 = arith.addf %559, %0 : vector<10x10xf32>
    %cst_127 = arith.constant dense<0xFF800000> : vector<10xf32>
    %561 = vector.multi_reduction <maximumf>, %560, %cst_127 [1] : vector<10x10xf32> to vector<10xf32>
    %562 = vector.shape_cast %561 : vector<10xf32> to vector<10x1xf32>
    %563 = vector.broadcast %562 : vector<10x1xf32> to vector<10x10xf32>
    %564 = arith.subf %560, %563 : vector<10x10xf32>
    %565 = math.exp %564 : vector<10x10xf32>
    %cst_128 = arith.constant dense<0.000000e+00> : vector<10xf32>
    %566 = vector.multi_reduction <add>, %565, %cst_128 [1] : vector<10x10xf32> to vector<10xf32>
    %567 = vector.shape_cast %566 : vector<10xf32> to vector<10x1xf32>
    %568 = tpu.reciprocal %567 {approx = true} : vector<10x1xf32> -> vector<10x1xf32>
    %569 = vector.broadcast %568 : vector<10x1xf32> to vector<10x10xf32>
    %570 = arith.mulf %565, %569 : vector<10x10xf32>
    %571 = vector.extract_strided_slice %540 {offsets = [0, 8], sizes = [10, 8], strides = [1, 1]} : vector<10x32xf32> to vector<10x8xf32>
    %cst_129 = arith.constant dense<0.000000e+00> : vector<10x8xf32>
    %572 = tpu.matmul %570, %571, %cst_129 {dimension_numbers = #tpu.dot_dimension_numbers<[1], [0], [0], [1], [0, 0, 1, 1], [], []>} : vector<10x10xf32>, vector<10x8xf32>, vector<10x8xf32> -> vector<10x8xf32>
    %573 = vector.extract_strided_slice %538 {offsets = [0, 16], sizes = [10, 8], strides = [1, 1]} : vector<10x32xf32> to vector<10x8xf32>
    %574 = vector.extract_strided_slice %539 {offsets = [0, 16], sizes = [10, 8], strides = [1, 1]} : vector<10x32xf32> to vector<10x8xf32>
    "tpu.trace_start"() <{level = 10 : i32, message = "nd,md->nm"}> : () -> ()
    %cst_130 = arith.constant dense<0.000000e+00> : vector<10x10xf32>
    %575 = tpu.matmul %573, %574, %cst_130 {dimension_numbers = #tpu.dot_dimension_numbers<[1], [1], [0], [0], [0, 0, 1, 0], [], []>} : vector<10x8xf32>, vector<10x8xf32>, vector<10x10xf32> -> vector<10x10xf32>
    "tpu.trace_stop"() : () -> ()
    %576 = arith.addf %575, %0 : vector<10x10xf32>
    %cst_131 = arith.constant dense<0xFF800000> : vector<10xf32>
    %577 = vector.multi_reduction <maximumf>, %576, %cst_131 [1] : vector<10x10xf32> to vector<10xf32>
    %578 = vector.shape_cast %577 : vector<10xf32> to vector<10x1xf32>
    %579 = vector.broadcast %578 : vector<10x1xf32> to vector<10x10xf32>
    %580 = arith.subf %576, %579 : vector<10x10xf32>
    %581 = math.exp %580 : vector<10x10xf32>
    %cst_132 = arith.constant dense<0.000000e+00> : vector<10xf32>
    %582 = vector.multi_reduction <add>, %581, %cst_132 [1] : vector<10x10xf32> to vector<10xf32>
    %583 = vector.shape_cast %582 : vector<10xf32> to vector<10x1xf32>
    %584 = tpu.reciprocal %583 {approx = true} : vector<10x1xf32> -> vector<10x1xf32>
    %585 = vector.broadcast %584 : vector<10x1xf32> to vector<10x10xf32>
    %586 = arith.mulf %581, %585 : vector<10x10xf32>
    %587 = vector.extract_strided_slice %540 {offsets = [0, 16], sizes = [10, 8], strides = [1, 1]} : vector<10x32xf32> to vector<10x8xf32>
    %cst_133 = arith.constant dense<0.000000e+00> : vector<10x8xf32>
    %588 = tpu.matmul %586, %587, %cst_133 {dimension_numbers = #tpu.dot_dimension_numbers<[1], [0], [0], [1], [0, 0, 1, 1], [], []>} : vector<10x10xf32>, vector<10x8xf32>, vector<10x8xf32> -> vector<10x8xf32>
    %589 = vector.extract_strided_slice %538 {offsets = [0, 24], sizes = [10, 8], strides = [1, 1]} : vector<10x32xf32> to vector<10x8xf32>
    %590 = vector.extract_strided_slice %539 {offsets = [0, 24], sizes = [10, 8], strides = [1, 1]} : vector<10x32xf32> to vector<10x8xf32>
    "tpu.trace_start"() <{level = 10 : i32, message = "nd,md->nm"}> : () -> ()
    %cst_134 = arith.constant dense<0.000000e+00> : vector<10x10xf32>
    %591 = tpu.matmul %589, %590, %cst_134 {dimension_numbers = #tpu.dot_dimension_numbers<[1], [1], [0], [0], [0, 0, 1, 0], [], []>} : vector<10x8xf32>, vector<10x8xf32>, vector<10x10xf32> -> vector<10x10xf32>
    "tpu.trace_stop"() : () -> ()
    %592 = arith.addf %591, %0 : vector<10x10xf32>
    %cst_135 = arith.constant dense<0xFF800000> : vector<10xf32>
    %593 = vector.multi_reduction <maximumf>, %592, %cst_135 [1] : vector<10x10xf32> to vector<10xf32>
    %594 = vector.shape_cast %593 : vector<10xf32> to vector<10x1xf32>
    %595 = vector.broadcast %594 : vector<10x1xf32> to vector<10x10xf32>
    %596 = arith.subf %592, %595 : vector<10x10xf32>
    %597 = math.exp %596 : vector<10x10xf32>
    %cst_136 = arith.constant dense<0.000000e+00> : vector<10xf32>
    %598 = vector.multi_reduction <add>, %597, %cst_136 [1] : vector<10x10xf32> to vector<10xf32>
    %599 = vector.shape_cast %598 : vector<10xf32> to vector<10x1xf32>
    %600 = tpu.reciprocal %599 {approx = true} : vector<10x1xf32> -> vector<10x1xf32>
    %601 = vector.broadcast %600 : vector<10x1xf32> to vector<10x10xf32>
    %602 = arith.mulf %597, %601 : vector<10x10xf32>
    %603 = vector.extract_strided_slice %540 {offsets = [0, 24], sizes = [10, 8], strides = [1, 1]} : vector<10x32xf32> to vector<10x8xf32>
    %cst_137 = arith.constant dense<0.000000e+00> : vector<10x8xf32>
    %604 = tpu.matmul %602, %603, %cst_137 {dimension_numbers = #tpu.dot_dimension_numbers<[1], [0], [0], [1], [0, 0, 1, 1], [], []>} : vector<10x10xf32>, vector<10x8xf32>, vector<10x8xf32> -> vector<10x8xf32>
    %605 = tpu.concatenate %556, %572, %588, %604 in 1 : vector<10x8xf32>, vector<10x8xf32>, vector<10x8xf32>, vector<10x8xf32> -> vector<10x32xf32>
    %cst_138 = arith.constant dense<0.000000e+00> : vector<10x128xf32>
    %606 = tpu.matmul %605, %520, %cst_138 {dimension_numbers = #tpu.dot_dimension_numbers<[1], [0], [0], [1], [0, 0, 1, 1], [], []>} : vector<10x32xf32>, vector<32x128xf32>, vector<10x128xf32> -> vector<10x128xf32>
    %607 = vector.extract_strided_slice %606 {offsets = [0, 0], sizes = [10, 32], strides = [1, 1]} : vector<10x128xf32> to vector<10x32xf32>
    %608 = vector.broadcast %528 : vector<1x32xf32> to vector<10x32xf32>
    %609 = arith.addf %607, %608 : vector<10x32xf32>
    %610 = arith.addf %516, %609 : vector<10x32xf32>
    %cst_139 = arith.constant dense<0.000000e+00> : vector<10xf32>
    %611 = vector.multi_reduction <add>, %610, %cst_139 [1] : vector<10x32xf32> to vector<10xf32>
    %612 = vector.shape_cast %611 : vector<10xf32> to vector<10x1xf32>
    %cst_140 = arith.constant 3.200000e+01 : f32
    %613 = vector.broadcast %cst_140 : f32 to vector<10x1xf32>
    %614 = arith.divf %612, %613 : vector<10x1xf32>
    %615 = vector.broadcast %614 : vector<10x1xf32> to vector<10x32xf32>
    %616 = arith.subf %610, %615 : vector<10x32xf32>
    %617 = arith.mulf %616, %616 : vector<10x32xf32>
    %cst_141 = arith.constant dense<0.000000e+00> : vector<10xf32>
    %618 = vector.multi_reduction <add>, %617, %cst_141 [1] : vector<10x32xf32> to vector<10xf32>
    %619 = vector.shape_cast %618 : vector<10xf32> to vector<10x1xf32>
    %cst_142 = arith.constant 3.200000e+01 : f32
    %620 = vector.broadcast %cst_142 : f32 to vector<10x1xf32>
    %621 = arith.divf %619, %620 : vector<10x1xf32>
    %cst_143 = arith.constant 9.99999974E-6 : f32
    %622 = vector.broadcast %cst_143 : f32 to vector<10x1xf32>
    %623 = arith.addf %621, %622 : vector<10x1xf32>
    %624 = math.rsqrt %623 : vector<10x1xf32>
    %625 = vector.broadcast %624 : vector<10x1xf32> to vector<10x32xf32>
    %626 = arith.mulf %616, %625 : vector<10x32xf32>
    %627 = vector.broadcast %529 : vector<1x32xf32> to vector<10x32xf32>
    %628 = arith.mulf %626, %627 : vector<10x32xf32>
    %629 = vector.broadcast %530 : vector<1x32xf32> to vector<10x32xf32>
    %630 = arith.addf %628, %629 : vector<10x32xf32>
    %cst_144 = arith.constant dense<0.000000e+00> : vector<10x128xf32>
    %631 = tpu.matmul %630, %522, %cst_144 {dimension_numbers = #tpu.dot_dimension_numbers<[1], [0], [0], [1], [0, 0, 1, 1], [], []>} : vector<10x32xf32>, vector<32x128xf32>, vector<10x128xf32> -> vector<10x128xf32>
    %632 = vector.broadcast %531 : vector<1x128xf32> to vector<10x128xf32>
    %633 = arith.addf %631, %632 : vector<10x128xf32>
    %cst_145 = arith.constant 0.000000e+00 : f32
    %634 = vector.broadcast %cst_145 : f32 to vector<10x128xf32>
    %635 = arith.maximumf %633, %634 : vector<10x128xf32>
    %cst_146 = arith.constant dense<0.000000e+00> : vector<10x128xf32>
    %636 = tpu.matmul %635, %524, %cst_146 {dimension_numbers = #tpu.dot_dimension_numbers<[1], [0], [0], [1], [0, 0, 1, 1], [], []>} : vector<10x128xf32>, vector<128x128xf32>, vector<10x128xf32> -> vector<10x128xf32>
    %637 = vector.extract_strided_slice %636 {offsets = [0, 0], sizes = [10, 32], strides = [1, 1]} : vector<10x128xf32> to vector<10x32xf32>
    %638 = vector.broadcast %532 : vector<1x32xf32> to vector<10x32xf32>
    %639 = arith.addf %637, %638 : vector<10x32xf32>
    %640 = arith.addf %630, %639 : vector<10x32xf32>
    %cst_147 = arith.constant dense<0.000000e+00> : vector<10xf32>
    %641 = vector.multi_reduction <add>, %640, %cst_147 [1] : vector<10x32xf32> to vector<10xf32>
    %642 = vector.shape_cast %641 : vector<10xf32> to vector<10x1xf32>
    %cst_148 = arith.constant 3.200000e+01 : f32
    %643 = vector.broadcast %cst_148 : f32 to vector<10x1xf32>
    %644 = arith.divf %642, %643 : vector<10x1xf32>
    %645 = vector.broadcast %644 : vector<10x1xf32> to vector<10x32xf32>
    %646 = arith.subf %640, %645 : vector<10x32xf32>
    %647 = arith.mulf %646, %646 : vector<10x32xf32>
    %cst_149 = arith.constant dense<0.000000e+00> : vector<10xf32>
    %648 = vector.multi_reduction <add>, %647, %cst_149 [1] : vector<10x32xf32> to vector<10xf32>
    %649 = vector.shape_cast %648 : vector<10xf32> to vector<10x1xf32>
    %cst_150 = arith.constant 3.200000e+01 : f32
    %650 = vector.broadcast %cst_150 : f32 to vector<10x1xf32>
    %651 = arith.divf %649, %650 : vector<10x1xf32>
    %cst_151 = arith.constant 9.99999974E-6 : f32
    %652 = vector.broadcast %cst_151 : f32 to vector<10x1xf32>
    %653 = arith.addf %651, %652 : vector<10x1xf32>
    %654 = math.rsqrt %653 : vector<10x1xf32>
    %655 = vector.broadcast %654 : vector<10x1xf32> to vector<10x32xf32>
    %656 = arith.mulf %646, %655 : vector<10x32xf32>
    %657 = vector.broadcast %533 : vector<1x32xf32> to vector<10x32xf32>
    %658 = arith.mulf %656, %657 : vector<10x32xf32>
    %659 = vector.broadcast %534 : vector<1x32xf32> to vector<10x32xf32>
    %660 = arith.addf %658, %659 : vector<10x32xf32>
    %661 = vector.extract_strided_slice %660 {offsets = [0, 0], sizes = [2, 32], strides = [1, 1]} : vector<10x32xf32> to vector<2x32xf32>
    %c0_152 = arith.constant 0 : index
    %c0_153 = arith.constant 0 : index
    %662 = vector.load %arg4[%c0_152, %c0_153] : memref<168x128xf32, #tpu.memory_space<vmem>>, vector<32x128xf32>
    %c32_154 = arith.constant 32 : index
    %c0_155 = arith.constant 0 : index
    %663 = vector.load %arg4[%c32_154, %c0_155] : memref<168x128xf32, #tpu.memory_space<vmem>>, vector<128x128xf32>
    %c160 = arith.constant 160 : index
    %c0_156 = arith.constant 0 : index
    %664 = vector.load %arg4[%c160, %c0_156] : memref<168x128xf32, #tpu.memory_space<vmem>>, vector<8x128xf32>
    %cst_157 = arith.constant dense<0.000000e+00> : vector<2x128xf32>
    %665 = tpu.matmul %661, %662, %cst_157 {dimension_numbers = #tpu.dot_dimension_numbers<[1], [0], [0], [1], [0, 0, 1, 1], [], []>} : vector<2x32xf32>, vector<32x128xf32>, vector<2x128xf32> -> vector<2x128xf32>
    %666 = vector.extract_strided_slice %664 {offsets = [0, 0], sizes = [1, 128], strides = [1, 1]} : vector<8x128xf32> to vector<1x128xf32>
    %667 = vector.broadcast %666 : vector<1x128xf32> to vector<2x128xf32>
    %668 = arith.addf %665, %667 : vector<2x128xf32>
    %cst_158 = arith.constant 0.000000e+00 : f32
    %669 = vector.broadcast %cst_158 : f32 to vector<2x128xf32>
    %670 = arith.maximumf %668, %669 : vector<2x128xf32>
    %cst_159 = arith.constant dense<0.000000e+00> : vector<2x128xf32>
    %671 = tpu.matmul %670, %663, %cst_159 {dimension_numbers = #tpu.dot_dimension_numbers<[1], [0], [0], [1], [0, 0, 1, 1], [], []>} : vector<2x128xf32>, vector<128x128xf32>, vector<2x128xf32> -> vector<2x128xf32>
    %672 = vector.extract_strided_slice %664 {offsets = [1, 0], sizes = [1, 128], strides = [1, 1]} : vector<8x128xf32> to vector<1x128xf32>
    %673 = vector.broadcast %672 : vector<1x128xf32> to vector<2x128xf32>
    %674 = arith.addf %671, %673 : vector<2x128xf32>
    %c0_160 = arith.constant 0 : index
    %c0_161 = arith.constant 0 : index
    %675 = vector.load %arg5[%c0_160, %c0_161] : memref<2x128xf32, #tpu.memory_space<vmem>>, vector<2x128xf32>
    tpu.vector_store %arg5[%c0_160, %c0_161], %674 {strides = array<i32>} : memref<2x128xf32, #tpu.memory_space<vmem>>, vector<2x128xf32>,
    return
  }
}

</mosaic_0001>

<bundles_post_ra>
// kernel: context_mdn_forward.1
= control target key start
LH: loop header
LB: loop body
LE: loop exit
PB: predicated region body
PF: predicated region fallthrough
CT: control target
= control target key end

     0   :  { %10 = vsyncpa [#allocation3], 0  ;;  %s9037_s0 = inlined_call_operand.vmem [shape: f32[8,10,32], index: 0, kind: input, shape index: {}]   ;;  %s9038_s1 = inlined_call_operand.vmem [shape: f32[10,10], index: 1, kind: input, shape index: {}]   ;;  %s9039_s2 = inlined_call_operand.hbm [shape: f32[2,144,128], index: 2, kind: input, shape index: {}]   ;;  %s9040_s3 = inlined_call_operand.vmem [shape: f32[2,232,128], index: 3, kind: input, shape index: {}]   ;;  %s9041_s4 = inlined_call_operand.hbm [shape: f32[168,128], index: 4, kind: input, shape index: {}]   ;;  %s9042_s5 = inlined_call_operand.vmem [shape: f32[2,128], index: 5, kind: output, shape index: {}]  }
   0x1   :  { %11 = vsyncpa [#allocation5], 0  ;;  %s7264_s18 = smov [#allocation2]  }
   0x2   :  { %s21_s19 = sshll.u32 %s7264_s18, 4  ;;  %s22_s19 = int_to_ptr.vmem [resolvable:$true] %s21_s19 }
   0x3   :  { %s7228_s20 = scalar_lea.vmem %s22_s19, 4608  ;;  %p7233_p1 = scmp.lt.s32.totalorder %s22_s19, %s22_s19 }
   0x4   :  { %p7229_p0 = scmp.ne.s32.totalorder %s22_s19, %s7228_s20  ;;  %p7234_p2 = scmp.lt.s32.totalorder %s7228_s20, %s7228_s20 }
   0x6   :  { %p7235_p3 = por %p7234_p2, %p7233_p1 }
   0x8   :  { %p7236_p4 = pnand %p7235_p3, %p7229_p0 }
   0xa   :  { %7239 = shalt.err (!%p7236_p4)
}
   0xb   :  { %s7265_s21 = smov 128   ;;  %s7266_s22 = smov 8  }
   0xc   :  { %27 = dma.hbm_to_vmem [thread:$0]  %s9039_s2, 4608, %s22_s19, [#allocation3], %s7265_s21, %s7265_s21, %s7266_s22  }
   0xd   :  { %s7267_s25 = smov [#allocation4]  }
   0xe   :  { %s35_s26 = sshll.u32 %s7267_s25, 4  ;;  %s36_s26 = int_to_ptr.vmem [resolvable:$true] %s35_s26 }
   0xf   :  { %s7248_s27 = scalar_lea.vmem %s36_s26, 2688  ;;  %p7253_p6 = scmp.lt.s32.totalorder %s36_s26, %s36_s26 }
  0x10   :  { %p7249_p5 = scmp.ne.s32.totalorder %s36_s26, %s7248_s27  ;;  %p7254_p7 = scmp.lt.s32.totalorder %s7248_s27, %s7248_s27 }
  0x12   :  { %p7255_p8 = por %p7254_p7, %p7253_p6 }
  0x14   :  { %p7256_p9 = pnand %p7255_p8, %p7249_p5 }
  0x16   :  { %7259 = shalt.err (!%p7256_p9)
}
  0x17   :  { %41 = dma.hbm_to_vmem [thread:$0]  %s9041_s4, 2688, %s36_s26, [#allocation5], %s7265_s21, %s7265_s21, %s7266_s22  }
  0x18   :  { %7260 = dma.done.wait [#allocation3], 4608  }
  0x19   :  { %7261 = vsyncadd [#allocation3], 4294962688 }
  0x1a   :  { %7262 = dma.done.wait [#allocation5], 2688  }
  0x1b   :  { %7263 = vsyncadd [#allocation5], 4294964608  ;;  %vm103_vm0 = vcmask 261120   ;;  %v101_v0 = vld [vmem:[%s9037_s0] sm:$0xff]  ;;  %v102_v1 = vld [vmem:[%s9037_s0 + $0x8] sm:$0x3]  ;;  %v50_v20 = vlaneseq }
  0x1c   :  { %v7329_v2 = vld [vmem:[#allocation2 + $0x78] sm:$0xff]  ;;  %v7332_v3 = vsel %vm103_vm0, %v101_v0, 0.0  ;;  %v7335_v4 = vld [vmem:[#allocation2 + $0x70] sm:$0xff]  ;;  %s7268_s4 = smov 64   ;;  %v7340_v5 = vld [vmem:[#allocation2 + $0x68] sm:$0xff]  ;;  %v7343_v6 = vsel %vm103_vm0, %v102_v1, 0.0 }
  0x1d   :  { %5937 = vmatprep.subr.mxu0 %v7329_v2  ;;  %108 = vrot.lane.b32.xlu0 %v7332_v3, %s7268_s4  ;;  %v7347_v7 = vld [vmem:[#allocation2 + $0x60] sm:$0xff]  ;;  %v7353_v8 = vld [vmem:[#allocation2 + $0x58] sm:$0xff]  ;;  %v7357_v9 = vld [vmem:[#allocation2 + $0x50] sm:$0xff]  ;;  %v7404_v21 = vshrl.u32 %v50_v20, 7  ;;  %v54_v22 = vand.u32 127, %v50_v20  ;;  %vm7269_vm4 = vmmov 1  }
  0x1e   :  { %5938 = vmatpush3.msra.mxu0 %v7329_v2  ;;  %v7361_v10 = vld [vmem:[#allocation2 + $0x48] sm:$0xff]  ;;  %v7365_v11 = vld [vmem:[#allocation2 + $0x40] sm:$0xff]  ;;  %v7369_v12 = vld [vmem:[#allocation2 + $0x38] sm:$0xff]  ;;  %vm114_vm6 = vcmask 523264   ;;  %v7270_v23 = vmov 0.0   ;;  %s7271_s8 = smov 32  }
  0x1f   :  { %5939 = vmatprep.subr.mxu0 %v7335_v4  ;;  %v7373_v13 = vld [vmem:[#allocation2 + $0x30] sm:$0xff]  ;;  %v7377_v14 = vld [vmem:[#allocation2 + $0x28] sm:$0xff]  ;;  %v7381_v15 = vld [vmem:[#allocation2 + $0x20] sm:$0xff]  ;;  %vm55_vm1 = vcmp.lt.s32.totalorder %v7404_v21, 2  ;;  %vm57_vm2 = vcmp.lt.s32.totalorder %v54_v22, 64  ;;  %s7272_s9 = smov 96  }
  0x20   :  { %5940 = vmatpush3.msra.mxu0 %v7335_v4  ;;  %v7385_v16 = vld [vmem:[#allocation2 + $0x18] sm:$0xff]  ;;  %v7389_v17 = vld [vmem:[#allocation2 + $0x10] sm:$0xff]  ;;  %v7393_v18 = vld [vmem:[#allocation2 + $0x8] sm:$0xff]  ;;  %vm2604_vm8 = vcmask 64512   ;;  %s7273_s24 = smov 88   ;;  %s7274_s25 = smov 120  }
  0x21   :  { %5941 = vmatprep.subr.mxu0 %v7340_v5  ;;  %110 = vrot.lane.b32.xlu0 %v7343_v6, %s7268_s4  ;;  %v7397_v19 = vld [vmem:[#allocation2] sm:$0xff]  ;;  %vm58_vm3 = vmxor %vm55_vm1, %vm57_vm2  ;;  %v7453_v35 = vld [vmem:[#allocation2 + $0x88] sm:$0x3]  ;;  %vm2692_vm9 = vcmask 74752   ;;  %vm2688_vm10 = vcmask 80896   ;;  %s7275_s2 = smov 56  }
  0x22   :  { %5942 = vmatpush3.msra.mxu0 %v7340_v5  ;;  %vm60_vm5 = vmxor %vm58_vm3, %vm7269_vm4  ;;  %v7451_v33 = vld [vmem:[#allocation2 + $0x80] sm:$0xff]  ;;  %v7469_v60 = vld [vmem:[#allocation2 + $0x108] sm:$0xff]  ;;  %s7276_s30 = smov 80   ;;  %vm2723_vm11 = vcmask 1041408   ;;  %s7277_s6 = smov 112   ;;  %vm3430_vm12 = vcmask 130048  }
  0x23   :  { %5943 = vmatprep.subr.mxu0 %v7347_v7  ;;  %v7408_v24 = vsel %vm60_vm5, 1.0, %v7270_v23  ;;  %vm61_vm7 = vmxor %vm57_vm2, %vm7269_vm4  ;;  %v7471_v61 = vld [vmem:[#allocation2 + $0x100] sm:$0xff]  ;;  %5972 = vmatprep.subr.mxu1 %v7469_v60  ;;  %v7475_v62 = vld [vmem:[#allocation2 + $0xf8] sm:$0xff]  ;;  %s7278_s7 = smov 72   ;;  %s7279_s10 = smov 104   ;;  %vm3433_vm13 = vcmask 195584  }
  0x24   :  { %5944 = vmatpush3.msra.mxu0 %v7347_v7  ;;  %v7414_v28 = vsel %vm61_vm7, 1.0, %v7270_v23  ;;  %5973 = vmatpush3.msra.mxu1 %v7469_v60  ;;  %v7479_v63 = vld [vmem:[#allocation2 + $0xf0] sm:$0xff]  ;;  %v7490_v22 = vld [vmem:[#allocation2 + $0xe0] sm:$0xff]  ;;  %s7280_s11 = smov 48   ;;  %s7281_s12 = smov 40   ;;  %vm3544_vm14 = vcmask 254976  }
  0x25   :  { %5945 = vmatprep.subr.mxu0 %v7353_v8  ;;  %5974 = vmatprep.subr.mxu1 %v7471_v61  ;;  %s7282_s20 = smov 16   ;;  %s7283_s21 = smov 24   ;;  %vm7284_vm15 = vmmov 0  }
  0x26   :  { %5946 = vmatpush3.msra.mxu0 %v7353_v8  ;;  %5975 = vmatpush3.msra.mxu1 %v7471_v61 }
  0x27   :  { %5947 = vmatprep.subr.mxu0 %v7357_v9  ;;  %5976 = vmatprep.subr.mxu1 %v7475_v62 }
  0x28   :  { %5948 = vmatpush3.msra.mxu0 %v7357_v9  ;;  %5977 = vmatpush3.msra.mxu1 %v7475_v62 }
  0x29   :  { %5949 = vmatprep.subr.mxu0 %v7361_v10  ;;  %5978 = vmatprep.subr.mxu1 %v7479_v63 }
  0x2a   :  { %5950 = vmatpush3.msra.mxu0 %v7361_v10  ;;  %5979 = vmatpush3.msra.mxu1 %v7479_v63 }
  0x2b   :  { %5951 = vmatprep.subr.mxu0 %v7365_v11 }
  0x2c   :  { %5952 = vmatpush3.msra.mxu0 %v7365_v11 }
  0x2d   :  { %5953 = vmatprep.subr.mxu0 %v7369_v12 }
  0x2e   :  { %5954 = vmatpush3.msra.mxu0 %v7369_v12 }
  0x2f   :  { %5955 = vmatprep.subr.mxu0 %v7373_v13 }
  0x30   :  { %5956 = vmatpush3.msra.mxu0 %v7373_v13 }
  0x31   :  { %5957 = vmatprep.subr.mxu0 %v7377_v14 }
  0x32   :  { %5958 = vmatpush3.msra.mxu0 %v7377_v14 }
  0x33   :  { %5959 = vmatprep.subr.mxu0 %v7381_v15 }
  0x34   :  { %5960 = vmatpush3.msra.mxu0 %v7381_v15 }
  0x35   :  { %5961 = vmatprep.subr.mxu0 %v7385_v16 }
  0x36   :  { %5962 = vmatpush3.msra.mxu0 %v7385_v16 }
  0x37   :  { %5963 = vmatprep.subr.mxu0 %v7389_v17 }
  0x38   :  { %5964 = vmatpush3.msra.mxu0 %v7389_v17 }
  0x39   :  { %5965 = vmatprep.subr.mxu0 %v7393_v18 }
  0x3a   :  { %5966 = vmatpush3.msra.mxu0 %v7393_v18 }
  0x3b   :  { %5967 = vmatprep.subr.mxu0 %v7397_v19 }
  0x3c   :  { %5968 = vmatpush3.msra.mxu0 %v7397_v19 }
  0x3d   :  { %6007 = vmatprep.subr.mxu0 %v7329_v2 }
  0x8f   :  { %v109_v25 = vpop.permute.xlu0 %108 }
  0x90   :  { %v115_v26 = vsel %vm114_vm6, %v7332_v3, %v109_v25  ;;  %v7484_v3 = vld [vmem:[#allocation2 + $0xe8] sm:$0xff]  ;;  %v7495_v25 = vld [vmem:[#allocation2 + $0xd8] sm:$0xff] }
  0x91   :  { %v117_v27 = vmul.f32 %v115_v26, %v7408_v24  ;;  %5980 = vmatprep.subr.mxu1 %v7484_v3  ;;  %v7499_v26 = vld [vmem:[#allocation2 + $0xd0] sm:$0xff] }
  0x92   :  { %5981 = vmatpush3.msra.mxu1 %v7484_v3 }
  0x93   :  { %5969 = vmatprep.mubr.f32.mxu0 %v117_v27  ;;  %v111_v29 = vpop.permute.xlu0 %110  ;;  %5982 = vmatprep.subr.mxu1 %v7490_v22  ;;  %v7503_v27 = vld [vmem:[#allocation2 + $0xc8] sm:$0xff] }
  0x94   :  { %v116_v30 = vsel %vm114_vm6, %v7343_v6, %v111_v29  ;;  %5983 = vmatpush3.msra.mxu1 %v7490_v22  ;;  %v7507_v29 = vld [vmem:[#allocation2 + $0xc0] sm:$0xff] }
  0x95   :  { %v118_v31 = vmul.f32 %v116_v30, %v7414_v28  ;;  %5984 = vmatprep.subr.mxu1 %v7495_v25  ;;  %v7511_v30 = vld [vmem:[#allocation2 + $0xb8] sm:$0xff] }
  0x96   :  { %5985 = vmatpush3.msra.mxu1 %v7495_v25 }
  0x97   :  { %5970 = vmatmul.mubr.f32.vlgmr.msra.gmra.mxu0 %v118_v31  ;;  %5986 = vmatprep.subr.mxu1 %v7499_v26  ;;  %v7515_v31 = vld [vmem:[#allocation2 + $0xb0] sm:$0xff] }
  0x98   :  { %6008 = vmatpush3.msra.mxu0 %v7329_v2  ;;  %5987 = vmatpush3.msra.mxu1 %v7499_v26 }
  0x99   :  { %6009 = vmatprep.subr.mxu0 %v7335_v4  ;;  %5988 = vmatprep.subr.mxu1 %v7503_v27 }
  0x9a   :  { %6010 = vmatpush3.msra.mxu0 %v7335_v4  ;;  %5989 = vmatpush3.msra.mxu1 %v7503_v27 }
  0x9b   :  { %6011 = vmatprep.subr.mxu0 %v7340_v5  ;;  %5990 = vmatprep.subr.mxu1 %v7507_v29 }
  0x9c   :  { %6012 = vmatpush3.msra.mxu0 %v7340_v5  ;;  %5991 = vmatpush3.msra.mxu1 %v7507_v29 }
  0x9d   :  { %6013 = vmatprep.subr.mxu0 %v7347_v7  ;;  %5992 = vmatprep.subr.mxu1 %v7511_v30 }
  0x9e   :  { %6014 = vmatpush3.msra.mxu0 %v7347_v7  ;;  %5993 = vmatpush3.msra.mxu1 %v7511_v30 }
  0x9f   :  { %6015 = vmatprep.subr.mxu0 %v7353_v8  ;;  %5994 = vmatprep.subr.mxu1 %v7515_v31 }
  0xa0   :  { %6016 = vmatpush3.msra.mxu0 %v7353_v8  ;;  %5995 = vmatpush3.msra.mxu1 %v7515_v31 }
  0xa1   :  { %6017 = vmatprep.subr.mxu0 %v7357_v9 }
  0xa2   :  { %6018 = vmatpush3.msra.mxu0 %v7357_v9 }
  0xa3   :  { %6019 = vmatprep.subr.mxu0 %v7361_v10 }
  0xa4   :  { %6020 = vmatpush3.msra.mxu0 %v7361_v10 }
  0xa5   :  { %6021 = vmatprep.subr.mxu0 %v7365_v11 }
  0xa6   :  { %6022 = vmatpush3.msra.mxu0 %v7365_v11 }
  0xa7   :  { %6023 = vmatprep.subr.mxu0 %v7369_v12 }
  0xa8   :  { %6024 = vmatpush3.msra.mxu0 %v7369_v12 }
  0xa9   :  { %6025 = vmatprep.subr.mxu0 %v7373_v13 }
  0xaa   :  { %6026 = vmatpush3.msra.mxu0 %v7373_v13 }
  0xab   :  { %6027 = vmatprep.subr.mxu0 %v7377_v14 }
  0xac   :  { %6028 = vmatpush3.msra.mxu0 %v7377_v14 }
  0xad   :  { %6029 = vmatprep.subr.mxu0 %v7381_v15 }
  0xae   :  { %6030 = vmatpush3.msra.mxu0 %v7381_v15 }
  0xaf   :  { %6031 = vmatprep.subr.mxu0 %v7385_v16 }
  0xb0   :  { %6032 = vmatpush3.msra.mxu0 %v7385_v16 }
  0xb1   :  { %6033 = vmatprep.subr.mxu0 %v7389_v17 }
  0xb2   :  { %6034 = vmatpush3.msra.mxu0 %v7389_v17 }
  0xb3   :  { %6035 = vmatprep.subr.mxu0 %v7393_v18 }
  0xb4   :  { %6036 = vmatpush3.msra.mxu0 %v7393_v18 }
  0xb5   :  { %6037 = vmatprep.subr.mxu0 %v7397_v19 }
  0xb6   :  { %6038 = vmatpush3.msra.mxu0 %v7397_v19 }
  0xb7   :  { %6077 = vmatprep.subr.mxu0 %v7329_v2 }
 0x157   :  { %v5971_v32 = vpop.f32.mrf.mxu0 }
 0x158   :  { %v191_v37 = vadd.f32 %v5971_v32, %v7453_v35  ;;  %v7519_v32 = vld [vmem:[#allocation2 + $0xa8] sm:$0xff] }
 0x159   :  { %v185_v34 = vpop.f32.mrf.mxu0  ;;  %5996 = vmatprep.subr.mxu1 %v7519_v32 }
 0x15a   :  { %v186_v36 = vadd.f32 %v185_v34, %v7451_v33  ;;  %v5348_v41 = vmul.f32 -1.442695, %v191_v37  ;;  %5997 = vmatpush3.msra.mxu1 %v7519_v32  ;;  %v7525_v34 = vld [vmem:[#allocation2 + $0xa0] sm:$0xff] }
 0x15b   :  { %5998 = vmatprep.subr.mxu1 %v7525_v34 }
 0x15c   :  { %6812 = vtanh.f32 %v186_v36  ;;  %v5347_v40 = vmul.f32 -1.442695, %v186_v36  ;;  %v7528_v36 = vld [vmem:[#allocation2 + $0x98] sm:$0xff]  ;;  %5999 = vmatpush3.msra.mxu1 %v7525_v34 }
 0x15d   :  { %6814 = vtanh.f32 %v191_v37  ;;  %6000 = vmatprep.subr.mxu1 %v7528_v36  ;;  %v7533_v37 = vld [vmem:[#allocation2 + $0x90] sm:$0xff] }
 0x15e   :  { %6816 = vpow2.f32 %v5347_v40  ;;  %6001 = vmatpush3.msra.mxu1 %v7528_v36 }
 0x15f   :  { %6818 = vpow2.f32 %v5348_v41  ;;  %6002 = vmatprep.subr.mxu1 %v7533_v37 }
 0x160   :  { %6003 = vmatpush3.msra.mxu1 %v7533_v37 }
 0x161   :  { %6042 = vmatprep.subr.mxu1 %v7469_v60 }
 0x169   :  { %v6813_v38 = vpop.eup %6812 }
 0x16a   :  { %212 = vrot.lane.b32.xlu1 %v6813_v38, %s7271_s8  ;;  %v6815_v39 = vpop.eup %6814  ;;  %v5351_v38 = vld [vmem:[%s9037_s0 + $0x10] sm:$0xff] }
 0x16b   :  { %v6817_v42 = vpop.eup %6816 }
 0x16c   :  { %v200_v43 = vadd.f32 1.0, %v6817_v42  ;;  %v6819_v44 = vpop.eup %6818 }
 0x16d   :  { %v201_v45 = vadd.f32 1.0, %v6819_v44 }
 0x16e   :  { %214 = vrot.lane.b32.xlu1 %v6815_v39, %s7271_s8  ;;  %6820 = vrcp.f32 %v200_v43  ;;  %v5352_v43 = vld [vmem:[%s9037_s0 + $0x18] sm:$0x3] }
 0x16f   :  { %6822 = vrcp.f32 %v201_v45 }
 0x17b   :  { %v6821_v46 = vpop.eup %6820 }
 0x17c   :  { %v6823_v49 = vpop.eup %6822  ;;  %v208_v52 = vmul.f32 0.0, %v6821_v46 }
 0x17d   :  { %v209_v55 = vmul.f32 0.0, %v6823_v49 }
 0x1dc   :  { %v213_v47 = vpop.permute.xlu1 %212 }
 0x1dd   :  { %v218_v48 = vmul.f32 %v6821_v46, %v213_v47 }
 0x1df   :  { %222 = vrot.lane.b32.xlu0 %v218_v48, %s7271_s8 }
 0x1e0   :  { %v215_v50 = vpop.permute.xlu1 %214 }
 0x1e1   :  { %v219_v51 = vmul.f32 %v6823_v49, %v215_v50 }
 0x1e3   :  { %224 = vrot.lane.b32.xlu1 %v219_v51, %s7271_s8 }
 0x251   :  { %v223_v53 = vpop.permute.xlu0 %222 }
 0x252   :  { %v7461_v54 = vadd.f32 %v223_v53, %v208_v52 }
 0x254   :  { %6824 = vtanh.f32 %v7461_v54 }
 0x255   :  { %v225_v56 = vpop.permute.xlu1 %224 }
 0x256   :  { %v7464_v57 = vadd.f32 %v225_v56, %v209_v55 }
 0x258   :  { %6826 = vtanh.f32 %v7464_v57 }
 0x261   :  { %v6825_v58 = vpop.eup %6824 }
 0x262   :  { %234 = vrot.lane.b32.xlu0 %v6825_v58, %s7271_s8 }
 0x265   :  { %v6827_v59 = vpop.eup %6826 }
 0x266   :  { %236 = vrot.lane.b32.xlu1 %v6827_v59, %s7271_s8 }
 0x2d4   :  { %v235_v0 = vpop.permute.xlu0 %234 }
 0x2d5   :  { %v240_v1 = vmul.f32 %v6821_v46, %v235_v0 }
 0x2d7   :  { %390 = vrot.lane.b32.xlu1 %v240_v1, %s7272_s9  ;;  %244 = vrot.lane.b32.xlu0 %v240_v1, %s7268_s4 }
 0x2d8   :  { %v237_v6 = vpop.permute.xlu1 %236 }
 0x2d9   :  { %v241_v20 = vmul.f32 %v6823_v49, %v237_v6 }
 0x2db   :  { %392 = vrot.lane.b32.xlu1 %v241_v20, %s7272_s9  ;;  %246 = vrot.lane.b32.xlu0 %v241_v20, %s7268_s4 }
 0x349   :  { %v391_v39 = vpop.permute.xlu1 %390  ;;  %v245_v40 = vpop.permute.xlu0 %244 }
 0x34a   :  { %v396_v41 = vsel %vm103_vm0, %v5351_v38, %v391_v39  ;;  %v250_v42 = vsel %vm103_vm0, %v245_v40, 0.0  ;;  %v7624_v38 = vld [vmem:[#allocation2 + $0x110] sm:$0xff] }
 0x34b   :  { %400 = vrot.lane.b32.xlu1 %v396_v41, %s7268_s4  ;;  %254 = vrot.lane.b32.xlu0 %v250_v42, %s7268_s4 }
 0x34d   :  { %v393_v44 = vpop.permute.xlu1 %392  ;;  %v247_v45 = vpop.permute.xlu0 %246 }
 0x34e   :  { %v397_v46 = vsel %vm103_vm0, %v5352_v43, %v393_v44  ;;  %v251_v47 = vsel %vm103_vm0, %v247_v45, 0.0 }
 0x34f   :  { %402 = vrot.lane.b32.xlu1 %v397_v46, %s7268_s4  ;;  %256 = vrot.lane.b32.xlu0 %v251_v47, %s7268_s4 }
 0x3bd   :  { %v401_v48 = vpop.permute.xlu1 %400  ;;  %v255_v49 = vpop.permute.xlu0 %254 }
 0x3be   :  { %v406_v50 = vsel %vm114_vm6, %v396_v41, %v401_v48  ;;  %v260_v51 = vsel %vm114_vm6, %v250_v42, %v255_v49  ;;  %v7627_v42 = vld [vmem:[#allocation2 + $0x118] sm:$0x3] }
 0x3bf   :  { %v408_v52 = vmul.f32 %v406_v50, %v7408_v24  ;;  %v262_v53 = vmul.f32 %v260_v51, %v7408_v24 }
 0x3c1   :  { %6039 = vmatprep.mubr.f32.mxu0 %v408_v52  ;;  %v403_v55 = vpop.permute.xlu1 %402  ;;  %6004 = vmatprep.mubr.f32.mxu1 %v262_v53  ;;  %v257_v56 = vpop.permute.xlu0 %256 }
 0x3c2   :  { %v407_v58 = vsel %vm114_vm6, %v397_v46, %v403_v55  ;;  %v261_v59 = vsel %vm114_vm6, %v251_v47, %v257_v56 }
 0x3c3   :  { %v409_v0 = vmul.f32 %v407_v58, %v7414_v28  ;;  %v263_v1 = vmul.f32 %v261_v59, %v7414_v28 }
 0x3c5   :  { %6005 = vmatmul.mubr.f32.vlgmr.msra.gmra.mxu1 %v263_v1  ;;  %6040 = vmatmul.mubr.f32.vlgmr.msra.gmra.mxu0 %v409_v0 }
 0x3c6   :  { %6043 = vmatpush3.msra.mxu1 %v7469_v60  ;;  %6078 = vmatpush3.msra.mxu0 %v7329_v2 }
 0x3c7   :  { %6044 = vmatprep.subr.mxu1 %v7471_v61  ;;  %6079 = vmatprep.subr.mxu0 %v7335_v4 }
 0x3c8   :  { %6045 = vmatpush3.msra.mxu1 %v7471_v61  ;;  %6080 = vmatpush3.msra.mxu0 %v7335_v4 }
 0x3c9   :  { %6046 = vmatprep.subr.mxu1 %v7475_v62  ;;  %6081 = vmatprep.subr.mxu0 %v7340_v5 }
 0x3ca   :  { %6047 = vmatpush3.msra.mxu1 %v7475_v62  ;;  %6082 = vmatpush3.msra.mxu0 %v7340_v5 }
 0x3cb   :  { %6048 = vmatprep.subr.mxu1 %v7479_v63  ;;  %6083 = vmatprep.subr.mxu0 %v7347_v7 }
 0x3cc   :  { %6049 = vmatpush3.msra.mxu1 %v7479_v63  ;;  %6084 = vmatpush3.msra.mxu0 %v7347_v7 }
 0x3cd   :  { %6050 = vmatprep.subr.mxu1 %v7484_v3  ;;  %6085 = vmatprep.subr.mxu0 %v7353_v8 }
 0x3ce   :  { %6051 = vmatpush3.msra.mxu1 %v7484_v3  ;;  %6086 = vmatpush3.msra.mxu0 %v7353_v8 }
 0x3cf   :  { %6052 = vmatprep.subr.mxu1 %v7490_v22  ;;  %6087 = vmatprep.subr.mxu0 %v7357_v9 }
 0x3d0   :  { %6053 = vmatpush3.msra.mxu1 %v7490_v22  ;;  %6088 = vmatpush3.msra.mxu0 %v7357_v9 }
 0x3d1   :  { %6054 = vmatprep.subr.mxu1 %v7495_v25  ;;  %6089 = vmatprep.subr.mxu0 %v7361_v10 }
 0x3d2   :  { %6055 = vmatpush3.msra.mxu1 %v7495_v25  ;;  %6090 = vmatpush3.msra.mxu0 %v7361_v10 }
 0x3d3   :  { %6056 = vmatprep.subr.mxu1 %v7499_v26  ;;  %6091 = vmatprep.subr.mxu0 %v7365_v11 }
 0x3d4   :  { %6057 = vmatpush3.msra.mxu1 %v7499_v26  ;;  %6092 = vmatpush3.msra.mxu0 %v7365_v11 }
 0x3d5   :  { %6058 = vmatprep.subr.mxu1 %v7503_v27  ;;  %6093 = vmatprep.subr.mxu0 %v7369_v12 }
 0x3d6   :  { %6059 = vmatpush3.msra.mxu1 %v7503_v27  ;;  %6094 = vmatpush3.msra.mxu0 %v7369_v12 }
 0x3d7   :  { %6060 = vmatprep.subr.mxu1 %v7507_v29  ;;  %6095 = vmatprep.subr.mxu0 %v7373_v13 }
 0x3d8   :  { %6061 = vmatpush3.msra.mxu1 %v7507_v29  ;;  %6096 = vmatpush3.msra.mxu0 %v7373_v13 }
 0x3d9   :  { %6062 = vmatprep.subr.mxu1 %v7511_v30  ;;  %6097 = vmatprep.subr.mxu0 %v7377_v14 }
 0x3da   :  { %6063 = vmatpush3.msra.mxu1 %v7511_v30  ;;  %6098 = vmatpush3.msra.mxu0 %v7377_v14 }
 0x3db   :  { %6064 = vmatprep.subr.mxu1 %v7515_v31  ;;  %6099 = vmatprep.subr.mxu0 %v7381_v15 }
 0x3dc   :  { %6065 = vmatpush3.msra.mxu1 %v7515_v31  ;;  %6100 = vmatpush3.msra.mxu0 %v7381_v15 }
 0x3dd   :  { %6066 = vmatprep.subr.mxu1 %v7519_v32  ;;  %6101 = vmatprep.subr.mxu0 %v7385_v16 }
 0x3de   :  { %6067 = vmatpush3.msra.mxu1 %v7519_v32  ;;  %6102 = vmatpush3.msra.mxu0 %v7385_v16 }
 0x3df   :  { %6068 = vmatprep.subr.mxu1 %v7525_v34  ;;  %6103 = vmatprep.subr.mxu0 %v7389_v17 }
 0x3e0   :  { %6069 = vmatpush3.msra.mxu1 %v7525_v34  ;;  %6104 = vmatpush3.msra.mxu0 %v7389_v17 }
 0x3e1   :  { %6070 = vmatprep.subr.mxu1 %v7528_v36  ;;  %6105 = vmatprep.subr.mxu0 %v7393_v18 }
 0x3e2   :  { %6071 = vmatpush3.msra.mxu1 %v7528_v36  ;;  %6106 = vmatpush3.msra.mxu0 %v7393_v18 }
 0x3e3   :  { %6072 = vmatprep.subr.mxu1 %v7533_v37  ;;  %6107 = vmatprep.subr.mxu0 %v7397_v19 }
 0x3e4   :  { %6073 = vmatpush3.msra.mxu1 %v7533_v37  ;;  %6108 = vmatpush3.msra.mxu0 %v7397_v19 }
 0x3e5   :  { %6112 = vmatprep.subr.mxu1 %v7469_v60  ;;  %6147 = vmatprep.subr.mxu0 %v7329_v2 }
 0x485   :  { %v6006_v6 = vpop.f32.mrf.mxu1  ;;  %v6041_v20 = vpop.f32.mrf.mxu0 }
 0x486   :  { %v336_v44 = vadd.f32 %v6006_v6, %v7627_v42  ;;  %v482_v45 = vadd.f32 %v6041_v20, %v7453_v35 }
 0x487   :  { %v330_v39 = vpop.f32.mrf.mxu1  ;;  %v476_v40 = vpop.f32.mrf.mxu0 }
 0x488   :  { %v331_v41 = vadd.f32 %v330_v39, %v7624_v38  ;;  %v477_v43 = vadd.f32 %v476_v40, %v7451_v33  ;;  %v5350_v52 = vmul.f32 -1.442695, %v336_v44  ;;  %v5354_v53 = vmul.f32 -1.442695, %v482_v45 }
 0x48a   :  { %6828 = vtanh.f32 %v331_v41  ;;  %v5349_v50 = vmul.f32 -1.442695, %v331_v41  ;;  %v5353_v51 = vmul.f32 -1.442695, %v477_v43 }
 0x48b   :  { %6830 = vtanh.f32 %v477_v43 }
 0x48c   :  { %6832 = vtanh.f32 %v336_v44 }
 0x48d   :  { %6834 = vtanh.f32 %v482_v45 }
 0x48e   :  { %6836 = vpow2.f32 %v5349_v50 }
 0x48f   :  { %6838 = vpow2.f32 %v5353_v51 }
 0x490   :  { %6840 = vpow2.f32 %v5350_v52 }
 0x491   :  { %6842 = vpow2.f32 %v5354_v53 }
 0x497   :  { %v6829_v46 = vpop.eup %6828 }
 0x498   :  { %357 = vrot.lane.b32.xlu0 %v6829_v46, %s7271_s8  ;;  %v6831_v47 = vpop.eup %6830 }
 0x499   :  { %503 = vrot.lane.b32.xlu1 %v6831_v47, %s7271_s8  ;;  %v6833_v48 = vpop.eup %6832 }
 0x49a   :  { %v6835_v49 = vpop.eup %6834 }
 0x49b   :  { %v6837_v55 = vpop.eup %6836 }
 0x49c   :  { %359 = vrot.lane.b32.xlu0 %v6833_v48, %s7271_s8  ;;  %v6839_v56 = vpop.eup %6838  ;;  %v345_v58 = vadd.f32 1.0, %v6837_v55 }
 0x49d   :  { %505 = vrot.lane.b32.xlu1 %v6835_v49, %s7271_s8  ;;  %v6841_v59 = vpop.eup %6840  ;;  %v491_v0 = vadd.f32 1.0, %v6839_v56 }
 0x49e   :  { %v6843_v1 = vpop.eup %6842  ;;  %v346_v6 = vadd.f32 1.0, %v6841_v59  ;;  %6844 = vrcp.f32 %v345_v58 }
 0x49f   :  { %v492_v20 = vadd.f32 1.0, %v6843_v1  ;;  %6846 = vrcp.f32 %v491_v0 }
 0x4a0   :  { %6848 = vrcp.f32 %v346_v6 }
 0x4a1   :  { %6850 = vrcp.f32 %v492_v20 }
 0x4ab   :  { %v6845_v39 = vpop.eup %6844 }
 0x4ac   :  { %v6847_v43 = vpop.eup %6846  ;;  %v353_v52 = vmul.f32 0.0, %v6845_v39 }
 0x4ad   :  { %v6849_v46 = vpop.eup %6848  ;;  %v499_v55 = vmul.f32 %v6847_v43, %v7461_v54 }
 0x4ae   :  { %v6851_v49 = vpop.eup %6850  ;;  %v354_v0 = vmul.f32 0.0, %v6849_v46 }
 0x4af   :  { %v500_v6 = vmul.f32 %v6851_v49, %v7464_v57 }
 0x50a   :  { %v358_v40 = vpop.permute.xlu0 %357 }
 0x50b   :  { %v363_v41 = vmul.f32 %v6845_v39, %v358_v40  ;;  %v504_v44 = vpop.permute.xlu1 %503 }
 0x50c   :  { %v509_v45 = vmul.f32 %v6847_v43, %v504_v44 }
 0x50d   :  { %367 = vrot.lane.b32.xlu0 %v363_v41, %s7271_s8 }
 0x50e   :  { %v360_v47 = vpop.permute.xlu0 %359  ;;  %513 = vrot.lane.b32.xlu1 %v509_v45, %s7271_s8 }
 0x50f   :  { %v364_v48 = vmul.f32 %v6849_v46, %v360_v47  ;;  %v506_v50 = vpop.permute.xlu1 %505 }
 0x510   :  { %v510_v51 = vmul.f32 %v6851_v49, %v506_v50 }
 0x511   :  { %369 = vrot.lane.b32.xlu0 %v364_v48, %s7271_s8 }
 0x512   :  { %515 = vrot.lane.b32.xlu1 %v510_v51, %s7271_s8 }
 0x57f   :  { %v368_v53 = vpop.permute.xlu0 %367 }
 0x580   :  { %v7641_v56 = vadd.f32 %v368_v53, %v353_v52  ;;  %v514_v58 = vpop.permute.xlu1 %513 }
 0x581   :  { %v7643_v59 = vadd.f32 %v514_v58, %v499_v55 }
 0x582   :  { %6852 = vtanh.f32 %v7641_v56 }
 0x583   :  { %v370_v1 = vpop.permute.xlu0 %369  ;;  %6854 = vtanh.f32 %v7643_v59 }
 0x584   :  { %v7648_v20 = vadd.f32 %v370_v1, %v354_v0  ;;  %v516_v40 = vpop.permute.xlu1 %515 }
 0x585   :  { %v7650_v41 = vadd.f32 %v516_v40, %v500_v6 }
 0x586   :  { %6856 = vtanh.f32 %v7648_v20 }
 0x587   :  { %6858 = vtanh.f32 %v7650_v41 }
 0x58f   :  { %v6853_v54 = vpop.eup %6852 }
 0x590   :  { %379 = vrot.lane.b32.xlu0 %v6853_v54, %s7271_s8  ;;  %v6855_v44 = vpop.eup %6854  ;;  %v5358_v54 = vld [vmem:[%s9037_s0 + $0x28] sm:$0x3] }
 0x591   :  { %525 = vrot.lane.b32.xlu1 %v6855_v44, %s7271_s8 }
 0x593   :  { %v6857_v45 = vpop.eup %6856 }
 0x594   :  { %381 = vrot.lane.b32.xlu0 %v6857_v45, %s7271_s8  ;;  %v6859_v47 = vpop.eup %6858 }
 0x595   :  { %527 = vrot.lane.b32.xlu1 %v6859_v47, %s7271_s8 }
 0x602   :  { %v380_v48 = vpop.permute.xlu0 %379 }
 0x603   :  { %v526_v57 = vpop.permute.xlu1 %525  ;;  %v385_v55 = vmul.f32 %v6845_v39, %v380_v48 }
 0x604   :  { %v531_v50 = vmul.f32 %v6847_v43, %v526_v57  ;;  %v5357_v43 = vld [vmem:[%s9037_s0 + $0x20] sm:$0xff] }
 0x606   :  { %535 = vrot.lane.b32.xlu0 %v531_v50, %s7268_s4  ;;  %v382_v53 = vpop.permute.xlu0 %381 }
 0x607   :  { %v528_v51 = vpop.permute.xlu1 %527  ;;  %v386_v58 = vmul.f32 %v6849_v46, %v382_v53 }
 0x608   :  { %v532_v52 = vmul.f32 %v6851_v49, %v528_v51 }
 0x60a   :  { %537 = vrot.lane.b32.xlu1 %v532_v52, %s7268_s4  ;;  %689 = vrot.lane.b32.xlu0 %v531_v50, %s7272_s9 }
 0x60e   :  { %543 = vrot.lane.b32.xlu1 %v385_v55, %s7272_s9  ;;  %545 = vrot.lane.b32.xlu0 %v386_v58, %s7272_s9 }
 0x612   :  { %691 = vrot.lane.b32.xlu1 %v532_v52, %s7272_s9 }
 0x678   :  { %v536_v0 = vpop.permute.xlu0 %535 }
 0x67c   :  { %v538_v1 = vpop.permute.xlu1 %537  ;;  %v690_v49 = vpop.permute.xlu0 %689 }
 0x67d   :  { %v695_v6 = vsel %vm103_vm0, %v5357_v43, %v690_v49 }
 0x67e   :  { %699 = vrot.lane.b32.xlu1 %v695_v6, %s7268_s4 }
 0x680   :  { %v544_v40 = vpop.permute.xlu1 %543  ;;  %v546_v46 = vpop.permute.xlu0 %545 }
 0x681   :  { %v549_v39 = vsel %vm103_vm0, %v536_v0, %v544_v40  ;;  %v550_v47 = vsel %vm103_vm0, %v538_v1, %v546_v46 }
 0x682   :  { %553 = vrot.lane.b32.xlu0 %v549_v39, %s7268_s4 }
 0x684   :  { %v692_v44 = vpop.permute.xlu1 %691 }
 0x685   :  { %v696_v45 = vsel %vm103_vm0, %v5358_v54, %v692_v44 }
 0x686   :  { %701 = vrot.lane.b32.xlu1 %v696_v45, %s7268_s4  ;;  %555 = vrot.lane.b32.xlu0 %v550_v47, %s7268_s4 }
 0x6f0   :  { %v700_v57 = vpop.permute.xlu1 %699 }
 0x6f1   :  { %v705_v48 = vsel %vm114_vm6, %v695_v6, %v700_v57 }
 0x6f2   :  { %v707_v50 = vmul.f32 %v705_v48, %v7408_v24 }
 0x6f4   :  { %6109 = vmatprep.mubr.f32.mxu0 %v707_v50  ;;  %v554_v51 = vpop.permute.xlu0 %553 }
 0x6f5   :  { %v559_v52 = vsel %vm114_vm6, %v549_v39, %v554_v51 }
 0x6f6   :  { %v561_v53 = vmul.f32 %v559_v52, %v7408_v24 }
 0x6f8   :  { %v702_v55 = vpop.permute.xlu1 %701  ;;  %6074 = vmatprep.mubr.f32.mxu1 %v561_v53  ;;  %v556_v58 = vpop.permute.xlu0 %555 }
 0x6f9   :  { %v706_v0 = vsel %vm114_vm6, %v696_v45, %v702_v55  ;;  %v560_v43 = vsel %vm114_vm6, %v550_v47, %v556_v58 }
 0x6fa   :  { %v708_v1 = vmul.f32 %v706_v0, %v7414_v28  ;;  %v562_v49 = vmul.f32 %v560_v43, %v7414_v28 }
 0x6fc   :  { %6075 = vmatmul.mubr.f32.vlgmr.msra.gmra.mxu1 %v562_v49  ;;  %6110 = vmatmul.mubr.f32.vlgmr.msra.gmra.mxu0 %v708_v1 }
 0x6fd   :  { %6113 = vmatpush3.msra.mxu1 %v7469_v60  ;;  %6148 = vmatpush3.msra.mxu0 %v7329_v2 }
 0x6fe   :  { %6114 = vmatprep.subr.mxu1 %v7471_v61  ;;  %6149 = vmatprep.subr.mxu0 %v7335_v4 }
 0x6ff   :  { %6115 = vmatpush3.msra.mxu1 %v7471_v61  ;;  %6150 = vmatpush3.msra.mxu0 %v7335_v4 }
 0x700   :  { %6116 = vmatprep.subr.mxu1 %v7475_v62  ;;  %6151 = vmatprep.subr.mxu0 %v7340_v5 }
 0x701   :  { %6117 = vmatpush3.msra.mxu1 %v7475_v62  ;;  %6152 = vmatpush3.msra.mxu0 %v7340_v5 }
 0x702   :  { %6118 = vmatprep.subr.mxu1 %v7479_v63  ;;  %6153 = vmatprep.subr.mxu0 %v7347_v7 }
 0x703   :  { %6119 = vmatpush3.msra.mxu1 %v7479_v63  ;;  %6154 = vmatpush3.msra.mxu0 %v7347_v7 }
 0x704   :  { %6120 = vmatprep.subr.mxu1 %v7484_v3  ;;  %6155 = vmatprep.subr.mxu0 %v7353_v8 }
 0x705   :  { %6121 = vmatpush3.msra.mxu1 %v7484_v3  ;;  %6156 = vmatpush3.msra.mxu0 %v7353_v8 }
 0x706   :  { %6122 = vmatprep.subr.mxu1 %v7490_v22  ;;  %6157 = vmatprep.subr.mxu0 %v7357_v9 }
 0x707   :  { %6123 = vmatpush3.msra.mxu1 %v7490_v22  ;;  %6158 = vmatpush3.msra.mxu0 %v7357_v9 }
 0x708   :  { %6124 = vmatprep.subr.mxu1 %v7495_v25  ;;  %6159 = vmatprep.subr.mxu0 %v7361_v10 }
 0x709   :  { %6125 = vmatpush3.msra.mxu1 %v7495_v25  ;;  %6160 = vmatpush3.msra.mxu0 %v7361_v10 }
 0x70a   :  { %6126 = vmatprep.subr.mxu1 %v7499_v26  ;;  %6161 = vmatprep.subr.mxu0 %v7365_v11 }
 0x70b   :  { %6127 = vmatpush3.msra.mxu1 %v7499_v26  ;;  %6162 = vmatpush3.msra.mxu0 %v7365_v11 }
 0x70c   :  { %6128 = vmatprep.subr.mxu1 %v7503_v27  ;;  %6163 = vmatprep.subr.mxu0 %v7369_v12 }
 0x70d   :  { %6129 = vmatpush3.msra.mxu1 %v7503_v27  ;;  %6164 = vmatpush3.msra.mxu0 %v7369_v12 }
 0x70e   :  { %6130 = vmatprep.subr.mxu1 %v7507_v29  ;;  %6165 = vmatprep.subr.mxu0 %v7373_v13 }
 0x70f   :  { %6131 = vmatpush3.msra.mxu1 %v7507_v29  ;;  %6166 = vmatpush3.msra.mxu0 %v7373_v13 }
 0x710   :  { %6132 = vmatprep.subr.mxu1 %v7511_v30  ;;  %6167 = vmatprep.subr.mxu0 %v7377_v14 }
 0x711   :  { %6133 = vmatpush3.msra.mxu1 %v7511_v30  ;;  %6168 = vmatpush3.msra.mxu0 %v7377_v14 }
 0x712   :  { %6134 = vmatprep.subr.mxu1 %v7515_v31  ;;  %6169 = vmatprep.subr.mxu0 %v7381_v15 }
 0x713   :  { %6135 = vmatpush3.msra.mxu1 %v7515_v31  ;;  %6170 = vmatpush3.msra.mxu0 %v7381_v15 }
 0x714   :  { %6136 = vmatprep.subr.mxu1 %v7519_v32  ;;  %6171 = vmatprep.subr.mxu0 %v7385_v16 }
 0x715   :  { %6137 = vmatpush3.msra.mxu1 %v7519_v32  ;;  %6172 = vmatpush3.msra.mxu0 %v7385_v16 }
 0x716   :  { %6138 = vmatprep.subr.mxu1 %v7525_v34  ;;  %6173 = vmatprep.subr.mxu0 %v7389_v17 }
 0x717   :  { %6139 = vmatpush3.msra.mxu1 %v7525_v34  ;;  %6174 = vmatpush3.msra.mxu0 %v7389_v17 }
 0x718   :  { %6140 = vmatprep.subr.mxu1 %v7528_v36  ;;  %6175 = vmatprep.subr.mxu0 %v7393_v18 }
 0x719   :  { %6141 = vmatpush3.msra.mxu1 %v7528_v36  ;;  %6176 = vmatpush3.msra.mxu0 %v7393_v18 }
 0x71a   :  { %6142 = vmatprep.subr.mxu1 %v7533_v37  ;;  %6177 = vmatprep.subr.mxu0 %v7397_v19 }
 0x71b   :  { %6143 = vmatpush3.msra.mxu1 %v7533_v37  ;;  %6178 = vmatpush3.msra.mxu0 %v7397_v19 }
 0x71c   :  { %6182 = vmatprep.subr.mxu1 %v7469_v60  ;;  %6217 = vmatprep.subr.mxu0 %v7329_v2 }
 0x7bc   :  { %v6076_v4 = vpop.f32.mrf.mxu1  ;;  %v6111_v5 = vpop.f32.mrf.mxu0 }
 0x7bd   :  { %v635_v11 = vadd.f32 %v6076_v4, %v7627_v42  ;;  %v781_v12 = vadd.f32 %v6111_v5, %v7453_v35 }
 0x7be   :  { %v629_v7 = vpop.f32.mrf.mxu1  ;;  %v775_v8 = vpop.f32.mrf.mxu0 }
 0x7bf   :  { %v630_v9 = vadd.f32 %v629_v7, %v7624_v38  ;;  %v776_v10 = vadd.f32 %v775_v8, %v7451_v33  ;;  %v5356_v18 = vmul.f32 -1.442695, %v635_v11  ;;  %v5360_v19 = vmul.f32 -1.442695, %v781_v12 }
 0x7c1   :  { %6860 = vtanh.f32 %v630_v9  ;;  %v5355_v16 = vmul.f32 -1.442695, %v630_v9  ;;  %v5359_v17 = vmul.f32 -1.442695, %v776_v10 }
 0x7c2   :  { %6862 = vtanh.f32 %v776_v10 }
 0x7c3   :  { %6864 = vtanh.f32 %v635_v11 }
 0x7c4   :  { %6866 = vtanh.f32 %v781_v12 }
 0x7c5   :  { %6868 = vpow2.f32 %v5355_v16 }
 0x7c6   :  { %6870 = vpow2.f32 %v5359_v17 }
 0x7c7   :  { %6872 = vpow2.f32 %v5356_v18 }
 0x7c8   :  { %6874 = vpow2.f32 %v5360_v19 }
 0x7ce   :  { %v6861_v13 = vpop.eup %6860 }
 0x7cf   :  { %656 = vrot.lane.b32.xlu0 %v6861_v13, %s7271_s8  ;;  %v6863_v2 = vpop.eup %6862 }
 0x7d0   :  { %802 = vrot.lane.b32.xlu1 %v6863_v2, %s7271_s8  ;;  %v6865_v14 = vpop.eup %6864 }
 0x7d1   :  { %v6867_v15 = vpop.eup %6866 }
 0x7d2   :  { %v6869_v33 = vpop.eup %6868 }
 0x7d3   :  { %658 = vrot.lane.b32.xlu0 %v6865_v14, %s7271_s8  ;;  %v6871_v35 = vpop.eup %6870  ;;  %v644_v6 = vadd.f32 1.0, %v6869_v33 }
 0x7d4   :  { %804 = vrot.lane.b32.xlu1 %v6867_v15, %s7271_s8  ;;  %v6873_v40 = vpop.eup %6872  ;;  %v790_v39 = vadd.f32 1.0, %v6871_v35 }
 0x7d5   :  { %v6875_v46 = vpop.eup %6874  ;;  %v645_v54 = vadd.f32 1.0, %v6873_v40  ;;  %6876 = vrcp.f32 %v644_v6  ;;  %v5363_v40 = vld [vmem:[%s9037_s0 + $0x30] sm:$0xff] }
 0x7d6   :  { %v791_v44 = vadd.f32 1.0, %v6875_v46  ;;  %6878 = vrcp.f32 %v790_v39 }
 0x7d7   :  { %6880 = vrcp.f32 %v645_v54 }
 0x7d8   :  { %6882 = vrcp.f32 %v791_v44 }
 0x7e2   :  { %v6877_v45 = vpop.eup %6876 }
 0x7e3   :  { %v6879_v48 = vpop.eup %6878  ;;  %v652_v1 = vmul.f32 %v6877_v45, %v7641_v56 }
 0x7e4   :  { %v6881_v52 = vpop.eup %6880  ;;  %v798_v4 = vmul.f32 %v6879_v48, %v7643_v59 }
 0x7e5   :  { %v6883_v58 = vpop.eup %6882  ;;  %v653_v9 = vmul.f32 %v6881_v52, %v7648_v20 }
 0x7e6   :  { %v799_v11 = vmul.f32 %v6883_v58, %v7650_v41 }
 0x841   :  { %v657_v47 = vpop.permute.xlu0 %656 }
 0x842   :  { %v662_v57 = vmul.f32 %v6877_v45, %v657_v47  ;;  %v803_v50 = vpop.permute.xlu1 %802 }
 0x843   :  { %v808_v51 = vmul.f32 %v6879_v48, %v803_v50 }
 0x844   :  { %666 = vrot.lane.b32.xlu0 %v662_v57, %s7271_s8  ;;  %v5364_v57 = vld [vmem:[%s9037_s0 + $0x38] sm:$0x3] }
 0x845   :  { %v659_v53 = vpop.permute.xlu0 %658  ;;  %812 = vrot.lane.b32.xlu1 %v808_v51, %s7271_s8 }
 0x846   :  { %v663_v55 = vmul.f32 %v6881_v52, %v659_v53  ;;  %v805_v0 = vpop.permute.xlu1 %804 }
 0x847   :  { %v809_v43 = vmul.f32 %v6883_v58, %v805_v0 }
 0x848   :  { %668 = vrot.lane.b32.xlu0 %v663_v55, %s7271_s8 }
 0x849   :  { %814 = vrot.lane.b32.xlu1 %v809_v43, %s7271_s8 }
 0x8b6   :  { %v667_v49 = vpop.permute.xlu0 %666 }
 0x8b7   :  { %v7764_v5 = vadd.f32 %v667_v49, %v652_v1  ;;  %v813_v7 = vpop.permute.xlu1 %812 }
 0x8b8   :  { %v7766_v8 = vadd.f32 %v813_v7, %v798_v4 }
 0x8b9   :  { %6884 = vtanh.f32 %v7764_v5 }
 0x8ba   :  { %v669_v10 = vpop.permute.xlu0 %668  ;;  %6886 = vtanh.f32 %v7766_v8 }
 0x8bb   :  { %v7772_v12 = vadd.f32 %v669_v10, %v653_v9  ;;  %v815_v56 = vpop.permute.xlu1 %814 }
 0x8bc   :  { %v7774_v13 = vadd.f32 %v815_v56, %v799_v11  ;;  %v7811_v11 = vld [vmem:[#allocation2 + $0x78] sm:$0xff]  ;;  %v7815_v56 = vld [vmem:[#allocation2 + $0x70] sm:$0xff] }
 0x8bd   :  { %6888 = vtanh.f32 %v7772_v12 }
 0x8be   :  { %6890 = vtanh.f32 %v7774_v13 }
 0x8c6   :  { %v6885_v59 = vpop.eup %6884 }
 0x8c7   :  { %678 = vrot.lane.b32.xlu0 %v6885_v59, %s7271_s8  ;;  %v6887_v2 = vpop.eup %6886  ;;  %v7821_v59 = vld [vmem:[#allocation2 + $0x68] sm:$0xff] }
 0x8c8   :  { %824 = vrot.lane.b32.xlu1 %v6887_v2, %s7271_s8 }
 0x8ca   :  { %v6889_v20 = vpop.eup %6888 }
 0x8cb   :  { %680 = vrot.lane.b32.xlu0 %v6889_v20, %s7271_s8  ;;  %v6891_v14 = vpop.eup %6890 }
 0x8cc   :  { %826 = vrot.lane.b32.xlu1 %v6891_v14, %s7271_s8 }
 0x939   :  { %v679_v15 = vpop.permute.xlu0 %678 }
 0x93a   :  { %v825_v41 = vpop.permute.xlu1 %824  ;;  %v684_v33 = vmul.f32 %v6877_v45, %v679_v15  ;;  %v7909_v15 = vld [vmem:[#allocation2 + $0x80] sm:$0xff] }
 0x93b   :  { %v830_v16 = vmul.f32 %v6879_v48, %v825_v41 }
 0x93d   :  { %834 = vrot.lane.b32.xlu0 %v830_v16, %s7268_s4  ;;  %v681_v19 = vpop.permute.xlu0 %680 }
 0x93e   :  { %v827_v17 = vpop.permute.xlu1 %826  ;;  %v685_v35 = vmul.f32 %v6881_v52, %v681_v19 }
 0x93f   :  { %v831_v18 = vmul.f32 %v6883_v58, %v827_v17  ;;  %v7913_v17 = vld [vmem:[#allocation2 + $0x88] sm:$0x3] }
 0x941   :  { %836 = vrot.lane.b32.xlu1 %v831_v18, %s7268_s4  ;;  %988 = vrot.lane.b32.xlu0 %v830_v16, %s7272_s9 }
 0x945   :  { %842 = vrot.lane.b32.xlu1 %v684_v33, %s7272_s9  ;;  %844 = vrot.lane.b32.xlu0 %v685_v35, %s7272_s9 }
 0x949   :  { %990 = vrot.lane.b32.xlu1 %v831_v18, %s7272_s9 }
 0x9af   :  { %v835_v6 = vpop.permute.xlu0 %834 }
 0x9b3   :  { %v837_v39 = vpop.permute.xlu1 %836  ;;  %v989_v46 = vpop.permute.xlu0 %988 }
 0x9b4   :  { %v994_v54 = vsel %vm103_vm0, %v5363_v40, %v989_v46 }
 0x9b5   :  { %998 = vrot.lane.b32.xlu1 %v994_v54, %s7268_s4 }
 0x9b7   :  { %v843_v44 = vpop.permute.xlu1 %842  ;;  %v845_v47 = vpop.permute.xlu0 %844 }
 0x9b8   :  { %v848_v45 = vsel %vm103_vm0, %v835_v6, %v843_v44  ;;  %v849_v51 = vsel %vm103_vm0, %v837_v39, %v845_v47 }
 0x9b9   :  { %852 = vrot.lane.b32.xlu0 %v848_v45, %s7268_s4 }
 0x9bb   :  { %v991_v48 = vpop.permute.xlu1 %990 }
 0x9bc   :  { %v995_v50 = vsel %vm103_vm0, %v5364_v57, %v991_v48 }
 0x9bd   :  { %1000 = vrot.lane.b32.xlu1 %v995_v50, %s7268_s4  ;;  %854 = vrot.lane.b32.xlu0 %v849_v51, %s7268_s4 }
 0xa27   :  { %v999_v52 = vpop.permute.xlu1 %998 }
 0xa28   :  { %v1004_v53 = vsel %vm114_vm6, %v994_v54, %v999_v52 }
 0xa29   :  { %v1006_v55 = vmul.f32 %v1004_v53, %v7408_v24 }
 0xa2b   :  { %6179 = vmatprep.mubr.f32.mxu0 %v1006_v55  ;;  %v853_v58 = vpop.permute.xlu0 %852 }
 0xa2c   :  { %v858_v0 = vsel %vm114_vm6, %v848_v45, %v853_v58 }
 0xa2d   :  { %v860_v43 = vmul.f32 %v858_v0, %v7408_v24 }
 0xa2f   :  { %v1001_v1 = vpop.permute.xlu1 %1000  ;;  %6144 = vmatprep.mubr.f32.mxu1 %v860_v43  ;;  %v855_v49 = vpop.permute.xlu0 %854 }
 0xa30   :  { %v1005_v4 = vsel %vm114_vm6, %v995_v50, %v1001_v1  ;;  %v859_v7 = vsel %vm114_vm6, %v849_v51, %v855_v49 }
 0xa31   :  { %v1007_v9 = vmul.f32 %v1005_v4, %v7414_v28  ;;  %v861_v10 = vmul.f32 %v859_v7, %v7414_v28 }
 0xa33   :  { %6145 = vmatmul.mubr.f32.vlgmr.msra.gmra.mxu1 %v861_v10  ;;  %6180 = vmatmul.mubr.f32.vlgmr.msra.gmra.mxu0 %v1007_v9 }
 0xa34   :  { %6183 = vmatpush3.msra.mxu1 %v7469_v60  ;;  %6218 = vmatpush3.msra.mxu0 %v7811_v11  ;;  %v7827_v60 = vld [vmem:[#allocation2 + $0x60] sm:$0xff] }
 0xa35   :  { %6184 = vmatprep.subr.mxu1 %v7471_v61  ;;  %6219 = vmatprep.subr.mxu0 %v7815_v56 }
 0xa36   :  { %6185 = vmatpush3.msra.mxu1 %v7471_v61  ;;  %6220 = vmatpush3.msra.mxu0 %v7815_v56  ;;  %v7833_v61 = vld [vmem:[#allocation2 + $0x58] sm:$0xff] }
 0xa37   :  { %6186 = vmatprep.subr.mxu1 %v7475_v62  ;;  %6221 = vmatprep.subr.mxu0 %v7821_v59 }
 0xa38   :  { %6187 = vmatpush3.msra.mxu1 %v7475_v62  ;;  %6222 = vmatpush3.msra.mxu0 %v7821_v59  ;;  %v7839_v62 = vld [vmem:[#allocation2 + $0x50] sm:$0xff] }
 0xa39   :  { %6188 = vmatprep.subr.mxu1 %v7479_v63  ;;  %6223 = vmatprep.subr.mxu0 %v7827_v60 }
 0xa3a   :  { %6189 = vmatpush3.msra.mxu1 %v7479_v63  ;;  %6224 = vmatpush3.msra.mxu0 %v7827_v60  ;;  %v7845_v63 = vld [vmem:[#allocation2 + $0x48] sm:$0xff] }
 0xa3b   :  { %6190 = vmatprep.subr.mxu1 %v7484_v3  ;;  %6225 = vmatprep.subr.mxu0 %v7833_v61 }
 0xa3c   :  { %6191 = vmatpush3.msra.mxu1 %v7484_v3  ;;  %6226 = vmatpush3.msra.mxu0 %v7833_v61  ;;  %v7851_v3 = vld [vmem:[#allocation2 + $0x40] sm:$0xff] }
 0xa3d   :  { %6192 = vmatprep.subr.mxu1 %v7490_v22  ;;  %6227 = vmatprep.subr.mxu0 %v7839_v62 }
 0xa3e   :  { %6193 = vmatpush3.msra.mxu1 %v7490_v22  ;;  %6228 = vmatpush3.msra.mxu0 %v7839_v62  ;;  %v7857_v22 = vld [vmem:[#allocation2 + $0x38] sm:$0xff] }
 0xa3f   :  { %6194 = vmatprep.subr.mxu1 %v7495_v25  ;;  %6229 = vmatprep.subr.mxu0 %v7845_v63 }
 0xa40   :  { %6195 = vmatpush3.msra.mxu1 %v7495_v25  ;;  %6230 = vmatpush3.msra.mxu0 %v7845_v63  ;;  %v7863_v25 = vld [vmem:[#allocation2 + $0x30] sm:$0xff] }
 0xa41   :  { %6196 = vmatprep.subr.mxu1 %v7499_v26  ;;  %6231 = vmatprep.subr.mxu0 %v7851_v3 }
 0xa42   :  { %6197 = vmatpush3.msra.mxu1 %v7499_v26  ;;  %6232 = vmatpush3.msra.mxu0 %v7851_v3  ;;  %v7869_v26 = vld [vmem:[#allocation2 + $0x28] sm:$0xff] }
 0xa43   :  { %6198 = vmatprep.subr.mxu1 %v7503_v27  ;;  %6233 = vmatprep.subr.mxu0 %v7857_v22 }
 0xa44   :  { %6199 = vmatpush3.msra.mxu1 %v7503_v27  ;;  %6234 = vmatpush3.msra.mxu0 %v7857_v22  ;;  %v7875_v27 = vld [vmem:[#allocation2 + $0x20] sm:$0xff] }
 0xa45   :  { %6200 = vmatprep.subr.mxu1 %v7507_v29  ;;  %6235 = vmatprep.subr.mxu0 %v7863_v25 }
 0xa46   :  { %6201 = vmatpush3.msra.mxu1 %v7507_v29  ;;  %6236 = vmatpush3.msra.mxu0 %v7863_v25  ;;  %v7881_v29 = vld [vmem:[#allocation2 + $0x18] sm:$0xff] }
 0xa47   :  { %6202 = vmatprep.subr.mxu1 %v7511_v30  ;;  %6237 = vmatprep.subr.mxu0 %v7869_v26 }
 0xa48   :  { %6203 = vmatpush3.msra.mxu1 %v7511_v30  ;;  %6238 = vmatpush3.msra.mxu0 %v7869_v26  ;;  %v7887_v30 = vld [vmem:[#allocation2 + $0x10] sm:$0xff] }
 0xa49   :  { %6204 = vmatprep.subr.mxu1 %v7515_v31  ;;  %6239 = vmatprep.subr.mxu0 %v7875_v27 }
 0xa4a   :  { %6205 = vmatpush3.msra.mxu1 %v7515_v31  ;;  %6240 = vmatpush3.msra.mxu0 %v7875_v27  ;;  %v7893_v31 = vld [vmem:[#allocation2 + $0x8] sm:$0xff] }
 0xa4b   :  { %6206 = vmatprep.subr.mxu1 %v7519_v32  ;;  %6241 = vmatprep.subr.mxu0 %v7881_v29 }
 0xa4c   :  { %6207 = vmatpush3.msra.mxu1 %v7519_v32  ;;  %6242 = vmatpush3.msra.mxu0 %v7881_v29  ;;  %v7899_v32 = vld [vmem:[#allocation2] sm:$0xff] }
 0xa4d   :  { %6208 = vmatprep.subr.mxu1 %v7525_v34  ;;  %6243 = vmatprep.subr.mxu0 %v7887_v30 }
 0xa4e   :  { %6209 = vmatpush3.msra.mxu1 %v7525_v34  ;;  %6244 = vmatpush3.msra.mxu0 %v7887_v30  ;;  %v7904_v34 = vld [vmem:[#allocation2 + $0x108] sm:$0xff] }
 0xa4f   :  { %6210 = vmatprep.subr.mxu1 %v7528_v36  ;;  %6245 = vmatprep.subr.mxu0 %v7893_v31 }
 0xa50   :  { %6211 = vmatpush3.msra.mxu1 %v7528_v36  ;;  %6246 = vmatpush3.msra.mxu0 %v7893_v31 }
 0xa51   :  { %6212 = vmatprep.subr.mxu1 %v7533_v37  ;;  %6247 = vmatprep.subr.mxu0 %v7899_v32 }
 0xa52   :  { %6213 = vmatpush3.msra.mxu1 %v7533_v37  ;;  %6248 = vmatpush3.msra.mxu0 %v7899_v32 }
 0xa53   :  { %6252 = vmatprep.subr.mxu1 %v7904_v34  ;;  %6287 = vmatprep.subr.mxu0 %v7811_v11 }
 0xaf3   :  { %v6146_v2 = vpop.f32.mrf.mxu1  ;;  %v6181_v36 = vpop.f32.mrf.mxu0 }
 0xaf4   :  { %v934_v37 = vadd.f32 %v6146_v2, %v7627_v42  ;;  %v1080_v18 = vadd.f32 %v7913_v17, %v6181_v36 }
 0xaf5   :  { %v928_v20 = vpop.f32.mrf.mxu1  ;;  %v1074_v14 = vpop.f32.mrf.mxu0 }
 0xaf6   :  { %v929_v41 = vadd.f32 %v928_v20, %v7624_v38  ;;  %v1075_v16 = vadd.f32 %v7909_v15, %v1074_v14  ;;  %v5362_v40 = vmul.f32 -1.442695, %v934_v37  ;;  %v5366_v39 = vmul.f32 -1.442695, %v1080_v18 }
 0xaf8   :  { %6892 = vtanh.f32 %v929_v41  ;;  %v5361_v42 = vmul.f32 -1.442695, %v929_v41  ;;  %v5365_v6 = vmul.f32 -1.442695, %v1075_v16 }
 0xaf9   :  { %6894 = vtanh.f32 %v1075_v16 }
 0xafa   :  { %6896 = vtanh.f32 %v934_v37 }
 0xafb   :  { %6898 = vtanh.f32 %v1080_v18 }
 0xafc   :  { %6900 = vpow2.f32 %v5361_v42 }
 0xafd   :  { %6902 = vpow2.f32 %v5365_v6 }
 0xafe   :  { %6904 = vpow2.f32 %v5362_v40 }
 0xaff   :  { %6906 = vpow2.f32 %v5366_v39 }
 0xb05   :  { %v6893_v19 = vpop.eup %6892 }
 0xb06   :  { %955 = vrot.lane.b32.xlu0 %v6893_v19, %s7271_s8  ;;  %v6895_v33 = vpop.eup %6894 }
 0xb07   :  { %1101 = vrot.lane.b32.xlu1 %v6895_v33, %s7271_s8  ;;  %v6897_v38 = vpop.eup %6896 }
 0xb08   :  { %v6899_v35 = vpop.eup %6898 }
 0xb09   :  { %v6901_v46 = vpop.eup %6900 }
 0xb0a   :  { %957 = vrot.lane.b32.xlu0 %v6897_v38, %s7271_s8  ;;  %v6903_v54 = vpop.eup %6902  ;;  %v943_v44 = vadd.f32 1.0, %v6901_v46 }
 0xb0b   :  { %1103 = vrot.lane.b32.xlu1 %v6899_v35, %s7271_s8  ;;  %v6905_v45 = vpop.eup %6904  ;;  %v1089_v47 = vadd.f32 1.0, %v6903_v54 }
 0xb0c   :  { %v6907_v57 = vpop.eup %6906  ;;  %v944_v48 = vadd.f32 1.0, %v6905_v45  ;;  %6908 = vrcp.f32 %v943_v44 }
 0xb0d   :  { %v1090_v50 = vadd.f32 1.0, %v6907_v57  ;;  %6910 = vrcp.f32 %v1089_v47  ;;  %v5369_v47 = vld [vmem:[%s9037_s0 + $0x40] sm:$0xff] }
 0xb0e   :  { %6912 = vrcp.f32 %v944_v48 }
 0xb0f   :  { %6914 = vrcp.f32 %v1090_v50 }
 0xb19   :  { %v6909_v51 = vpop.eup %6908 }
 0xb1a   :  { %v6911_v55 = vpop.eup %6910  ;;  %v951_v10 = vmul.f32 %v6909_v51, %v7764_v5 }
 0xb1b   :  { %v6913_v43 = vpop.eup %6912  ;;  %v1097_v36 = vmul.f32 %v6911_v55, %v7766_v8 }
 0xb1c   :  { %v6915_v4 = vpop.eup %6914  ;;  %v952_v16 = vmul.f32 %v6913_v43, %v7772_v12 }
 0xb1d   :  { %v1098_v18 = vmul.f32 %v6915_v4, %v7774_v13 }
 0xb78   :  { %v956_v52 = vpop.permute.xlu0 %955 }
 0xb79   :  { %v961_v53 = vmul.f32 %v6909_v51, %v956_v52  ;;  %v1102_v58 = vpop.permute.xlu1 %1101 }
 0xb7a   :  { %v1107_v0 = vmul.f32 %v6911_v55, %v1102_v58 }
 0xb7b   :  { %965 = vrot.lane.b32.xlu0 %v961_v53, %s7271_s8 }
 0xb7c   :  { %v958_v1 = vpop.permute.xlu0 %957  ;;  %1111 = vrot.lane.b32.xlu1 %v1107_v0, %s7271_s8 }
 0xb7d   :  { %v962_v49 = vmul.f32 %v6913_v43, %v958_v1  ;;  %v1104_v7 = vpop.permute.xlu1 %1103 }
 0xb7e   :  { %v1108_v9 = vmul.f32 %v6915_v4, %v1104_v7 }
 0xb7f   :  { %967 = vrot.lane.b32.xlu0 %v962_v49, %s7271_s8 }
 0xb80   :  { %1113 = vrot.lane.b32.xlu1 %v1108_v9, %s7271_s8 }
 0xbed   :  { %v966_v2 = vpop.permute.xlu0 %965 }
 0xbee   :  { %v7926_v20 = vadd.f32 %v966_v2, %v951_v10  ;;  %v1112_v14 = vpop.permute.xlu1 %1111 }
 0xbef   :  { %v7928_v41 = vadd.f32 %v1112_v14, %v1097_v36 }
 0xbf0   :  { %6916 = vtanh.f32 %v7926_v20 }
 0xbf1   :  { %v968_v37 = vpop.permute.xlu0 %967  ;;  %6918 = vtanh.f32 %v7928_v41 }
 0xbf2   :  { %v7934_v19 = vadd.f32 %v968_v37, %v952_v16  ;;  %v1114_v5 = vpop.permute.xlu1 %1113 }
 0xbf3   :  { %v7936_v33 = vadd.f32 %v1114_v5, %v1098_v18  ;;  %v7974_v5 = vld [vmem:[#allocation2 + $0x100] sm:$0xff] }
 0xbf4   :  { %6920 = vtanh.f32 %v7934_v19 }
 0xbf5   :  { %6922 = vtanh.f32 %v7936_v33 }
 0xbfd   :  { %v6917_v8 = vpop.eup %6916 }
 0xbfe   :  { %977 = vrot.lane.b32.xlu0 %v6917_v8, %s7271_s8  ;;  %v6919_v38 = vpop.eup %6918  ;;  %v7980_v8 = vld [vmem:[#allocation2 + $0xf8] sm:$0xff] }
 0xbff   :  { %1123 = vrot.lane.b32.xlu1 %v6919_v38, %s7271_s8  ;;  %v7986_v38 = vld [vmem:[#allocation2 + $0xf0] sm:$0xff] }
 0xc01   :  { %v6921_v12 = vpop.eup %6920 }
 0xc02   :  { %979 = vrot.lane.b32.xlu0 %v6921_v12, %s7271_s8  ;;  %v6923_v35 = vpop.eup %6922  ;;  %v7992_v12 = vld [vmem:[#allocation2 + $0xe8] sm:$0xff] }
 0xc03   :  { %1125 = vrot.lane.b32.xlu1 %v6923_v35, %s7271_s8  ;;  %v7998_v35 = vld [vmem:[#allocation2 + $0xe0] sm:$0xff] }
 0xc70   :  { %v978_v42 = vpop.permute.xlu0 %977 }
 0xc71   :  { %v1124_v13 = vpop.permute.xlu1 %1123  ;;  %v983_v54 = vmul.f32 %v6909_v51, %v978_v42  ;;  %v8010_v42 = vld [vmem:[#allocation2 + $0xd0] sm:$0xff] }
 0xc72   :  { %v1129_v6 = vmul.f32 %v6911_v55, %v1124_v13  ;;  %v5370_v55 = vld [vmem:[%s9037_s0 + $0x48] sm:$0x3]  ;;  %v8004_v13 = vld [vmem:[#allocation2 + $0xd8] sm:$0xff] }
 0xc74   :  { %1133 = vrot.lane.b32.xlu0 %v1129_v6, %s7268_s4  ;;  %v980_v46 = vpop.permute.xlu0 %979 }
 0xc75   :  { %v1126_v40 = vpop.permute.xlu1 %1125  ;;  %v984_v44 = vmul.f32 %v6913_v43, %v980_v46  ;;  %v8034_v46 = vld [vmem:[#allocation2 + $0xb0] sm:$0xff] }
 0xc76   :  { %v1130_v39 = vmul.f32 %v6915_v4, %v1126_v40  ;;  %v8022_v40 = vld [vmem:[#allocation2 + $0xc0] sm:$0xff] }
 0xc78   :  { %1135 = vrot.lane.b32.xlu1 %v1130_v39, %s7268_s4  ;;  %1287 = vrot.lane.b32.xlu0 %v1129_v6, %s7272_s9  ;;  %v8016_v6 = vld [vmem:[#allocation2 + $0xc8] sm:$0xff] }
 0xc7c   :  { %1141 = vrot.lane.b32.xlu1 %v983_v54, %s7272_s9  ;;  %1143 = vrot.lane.b32.xlu0 %v984_v44, %s7272_s9  ;;  %v8040_v54 = vld [vmem:[#allocation2 + $0xa8] sm:$0xff]  ;;  %v8046_v44 = vld [vmem:[#allocation2 + $0xa0] sm:$0xff] }
 0xc80   :  { %1289 = vrot.lane.b32.xlu1 %v1130_v39, %s7272_s9  ;;  %v8028_v39 = vld [vmem:[#allocation2 + $0xb8] sm:$0xff] }
 0xce6   :  { %v1134_v45 = vpop.permute.xlu0 %1133 }
 0xcea   :  { %v1136_v57 = vpop.permute.xlu1 %1135  ;;  %v1288_v48 = vpop.permute.xlu0 %1287 }
 0xceb   :  { %v1293_v50 = vsel %vm103_vm0, %v5369_v47, %v1288_v48  ;;  %v8058_v47 = vld [vmem:[#allocation2 + $0x90] sm:$0xff] }
 0xcec   :  { %1297 = vrot.lane.b32.xlu1 %v1293_v50, %s7268_s4 }
 0xcee   :  { %v1142_v52 = vpop.permute.xlu1 %1141  ;;  %v1144_v53 = vpop.permute.xlu0 %1143 }
 0xcef   :  { %v1147_v51 = vsel %vm103_vm0, %v1134_v45, %v1142_v52  ;;  %v1148_v43 = vsel %vm103_vm0, %v1136_v57, %v1144_v53  ;;  %v8052_v45 = vld [vmem:[#allocation2 + $0x98] sm:$0xff] }
 0xcf0   :  { %1151 = vrot.lane.b32.xlu0 %v1147_v51, %s7268_s4 }
 0xcf2   :  { %v1290_v58 = vpop.permute.xlu1 %1289 }
 0xcf3   :  { %v1294_v0 = vsel %vm103_vm0, %v5370_v55, %v1290_v58  ;;  %v8070_v58 = vld [vmem:[#allocation2 + $0x118] sm:$0x3] }
 0xcf4   :  { %1299 = vrot.lane.b32.xlu1 %v1294_v0, %s7268_s4  ;;  %1153 = vrot.lane.b32.xlu0 %v1148_v43, %s7268_s4 }
 0xd5e   :  { %v1298_v1 = vpop.permute.xlu1 %1297 }
 0xd5f   :  { %v1303_v49 = vsel %vm114_vm6, %v1293_v50, %v1298_v1 }
 0xd60   :  { %v1305_v4 = vmul.f32 %v1303_v49, %v7408_v24 }
 0xd62   :  { %6249 = vmatprep.mubr.f32.mxu0 %v1305_v4  ;;  %v1152_v7 = vpop.permute.xlu0 %1151 }
 0xd63   :  { %v1157_v9 = vsel %vm114_vm6, %v1147_v51, %v1152_v7  ;;  %v8066_v51 = vld [vmem:[#allocation2 + $0x110] sm:$0xff] }
 0xd64   :  { %v1159_v10 = vmul.f32 %v1157_v9, %v7408_v24 }
 0xd66   :  { %v1300_v2 = vpop.permute.xlu1 %1299  ;;  %6214 = vmatprep.mubr.f32.mxu1 %v1159_v10  ;;  %v1154_v36 = vpop.permute.xlu0 %1153 }
 0xd67   :  { %v1304_v14 = vsel %vm114_vm6, %v1294_v0, %v1300_v2  ;;  %v1158_v16 = vsel %vm114_vm6, %v1148_v43, %v1154_v36 }
 0xd68   :  { %v1306_v37 = vmul.f32 %v1304_v14, %v7414_v28  ;;  %v1160_v18 = vmul.f32 %v1158_v16, %v7414_v28 }
 0xd6a   :  { %6215 = vmatmul.mubr.f32.vlgmr.msra.gmra.mxu1 %v1160_v18  ;;  %6250 = vmatmul.mubr.f32.vlgmr.msra.gmra.mxu0 %v1306_v37 }
 0xd6b   :  { %6253 = vmatpush3.msra.mxu1 %v7904_v34  ;;  %6288 = vmatpush3.msra.mxu0 %v7811_v11 }
 0xd6c   :  { %6254 = vmatprep.subr.mxu1 %v7974_v5  ;;  %6289 = vmatprep.subr.mxu0 %v7815_v56 }
 0xd6d   :  { %6255 = vmatpush3.msra.mxu1 %v7974_v5  ;;  %6290 = vmatpush3.msra.mxu0 %v7815_v56 }
 0xd6e   :  { %6256 = vmatprep.subr.mxu1 %v7980_v8  ;;  %6291 = vmatprep.subr.mxu0 %v7821_v59 }
 0xd6f   :  { %6257 = vmatpush3.msra.mxu1 %v7980_v8  ;;  %6292 = vmatpush3.msra.mxu0 %v7821_v59 }
 0xd70   :  { %6258 = vmatprep.subr.mxu1 %v7986_v38  ;;  %6293 = vmatprep.subr.mxu0 %v7827_v60 }
 0xd71   :  { %6259 = vmatpush3.msra.mxu1 %v7986_v38  ;;  %6294 = vmatpush3.msra.mxu0 %v7827_v60 }
 0xd72   :  { %6260 = vmatprep.subr.mxu1 %v7992_v12  ;;  %6295 = vmatprep.subr.mxu0 %v7833_v61 }
 0xd73   :  { %6261 = vmatpush3.msra.mxu1 %v7992_v12  ;;  %6296 = vmatpush3.msra.mxu0 %v7833_v61 }
 0xd74   :  { %6262 = vmatprep.subr.mxu1 %v7998_v35  ;;  %6297 = vmatprep.subr.mxu0 %v7839_v62 }
 0xd75   :  { %6263 = vmatpush3.msra.mxu1 %v7998_v35  ;;  %6298 = vmatpush3.msra.mxu0 %v7839_v62 }
 0xd76   :  { %6264 = vmatprep.subr.mxu1 %v8004_v13  ;;  %6299 = vmatprep.subr.mxu0 %v7845_v63 }
 0xd77   :  { %6265 = vmatpush3.msra.mxu1 %v8004_v13  ;;  %6300 = vmatpush3.msra.mxu0 %v7845_v63 }
 0xd78   :  { %6266 = vmatprep.subr.mxu1 %v8010_v42  ;;  %6301 = vmatprep.subr.mxu0 %v7851_v3 }
 0xd79   :  { %6267 = vmatpush3.msra.mxu1 %v8010_v42  ;;  %6302 = vmatpush3.msra.mxu0 %v7851_v3 }
 0xd7a   :  { %6268 = vmatprep.subr.mxu1 %v8016_v6  ;;  %6303 = vmatprep.subr.mxu0 %v7857_v22 }
 0xd7b   :  { %6269 = vmatpush3.msra.mxu1 %v8016_v6  ;;  %6304 = vmatpush3.msra.mxu0 %v7857_v22 }
 0xd7c   :  { %6270 = vmatprep.subr.mxu1 %v8022_v40  ;;  %6305 = vmatprep.subr.mxu0 %v7863_v25 }
 0xd7d   :  { %6271 = vmatpush3.msra.mxu1 %v8022_v40  ;;  %6306 = vmatpush3.msra.mxu0 %v7863_v25 }
 0xd7e   :  { %6272 = vmatprep.subr.mxu1 %v8028_v39  ;;  %6307 = vmatprep.subr.mxu0 %v7869_v26 }
 0xd7f   :  { %6273 = vmatpush3.msra.mxu1 %v8028_v39  ;;  %6308 = vmatpush3.msra.mxu0 %v7869_v26 }
 0xd80   :  { %6274 = vmatprep.subr.mxu1 %v8034_v46  ;;  %6309 = vmatprep.subr.mxu0 %v7875_v27 }
 0xd81   :  { %6275 = vmatpush3.msra.mxu1 %v8034_v46  ;;  %6310 = vmatpush3.msra.mxu0 %v7875_v27 }
 0xd82   :  { %6276 = vmatprep.subr.mxu1 %v8040_v54  ;;  %6311 = vmatprep.subr.mxu0 %v7881_v29 }
 0xd83   :  { %6277 = vmatpush3.msra.mxu1 %v8040_v54  ;;  %6312 = vmatpush3.msra.mxu0 %v7881_v29 }
 0xd84   :  { %6278 = vmatprep.subr.mxu1 %v8046_v44  ;;  %6313 = vmatprep.subr.mxu0 %v7887_v30 }
 0xd85   :  { %6279 = vmatpush3.msra.mxu1 %v8046_v44  ;;  %6314 = vmatpush3.msra.mxu0 %v7887_v30 }
 0xd86   :  { %6280 = vmatprep.subr.mxu1 %v8052_v45  ;;  %6315 = vmatprep.subr.mxu0 %v7893_v31 }
 0xd87   :  { %6281 = vmatpush3.msra.mxu1 %v8052_v45  ;;  %6316 = vmatpush3.msra.mxu0 %v7893_v31 }
 0xd88   :  { %6282 = vmatprep.subr.mxu1 %v8058_v47  ;;  %6317 = vmatprep.subr.mxu0 %v7899_v32 }
 0xd89   :  { %6283 = vmatpush3.msra.mxu1 %v8058_v47  ;;  %6318 = vmatpush3.msra.mxu0 %v7899_v32 }
 0xd8a   :  { %6322 = vmatprep.subr.mxu1 %v7904_v34  ;;  %6357 = vmatprep.subr.mxu0 %v7811_v11 }
 0xe2a   :  { %v6216_v57 = vpop.f32.mrf.mxu1  ;;  %v6251_v48 = vpop.f32.mrf.mxu0 }
 0xe2b   :  { %v1233_v0 = vadd.f32 %v8070_v58, %v6216_v57  ;;  %v1379_v43 = vadd.f32 %v7913_v17, %v6251_v48 }
 0xe2c   :  { %v1227_v50 = vpop.f32.mrf.mxu1  ;;  %v1373_v52 = vpop.f32.mrf.mxu0 }
 0xe2d   :  { %v1228_v53 = vadd.f32 %v8066_v51, %v1227_v50  ;;  %v1374_v55 = vadd.f32 %v7909_v15, %v1373_v52  ;;  %v5368_v2 = vmul.f32 -1.442695, %v1233_v0  ;;  %v5372_v36 = vmul.f32 -1.442695, %v1379_v43 }
 0xe2f   :  { %6924 = vtanh.f32 %v1228_v53  ;;  %v5367_v9 = vmul.f32 -1.442695, %v1228_v53  ;;  %v5371_v10 = vmul.f32 -1.442695, %v1374_v55 }
 0xe30   :  { %6926 = vtanh.f32 %v1374_v55 }
 0xe31   :  { %6928 = vtanh.f32 %v1233_v0 }
 0xe32   :  { %6930 = vtanh.f32 %v1379_v43 }
 0xe33   :  { %6932 = vpow2.f32 %v5367_v9 }
 0xe34   :  { %6934 = vpow2.f32 %v5371_v10 }
 0xe35   :  { %6936 = vpow2.f32 %v5368_v2 }
 0xe36   :  { %6938 = vpow2.f32 %v5372_v36 }
 0xe3c   :  { %v6925_v1 = vpop.eup %6924 }
 0xe3d   :  { %1254 = vrot.lane.b32.xlu0 %v6925_v1, %s7271_s8  ;;  %v6927_v49 = vpop.eup %6926 }
 0xe3e   :  { %1400 = vrot.lane.b32.xlu1 %v6927_v49, %s7271_s8  ;;  %v6929_v4 = vpop.eup %6928 }
 0xe3f   :  { %v6931_v7 = vpop.eup %6930 }
 0xe40   :  { %v6933_v14 = vpop.eup %6932 }
 0xe41   :  { %1256 = vrot.lane.b32.xlu0 %v6929_v4, %s7271_s8  ;;  %v6935_v16 = vpop.eup %6934  ;;  %v1242_v37 = vadd.f32 1.0, %v6933_v14 }
 0xe42   :  { %1402 = vrot.lane.b32.xlu1 %v6931_v7, %s7271_s8  ;;  %v6937_v18 = vpop.eup %6936  ;;  %v1388_v57 = vadd.f32 1.0, %v6935_v16 }
 0xe43   :  { %v6939_v48 = vpop.eup %6938  ;;  %v1243_v50 = vadd.f32 1.0, %v6937_v18  ;;  %6940 = vrcp.f32 %v1242_v37 }
 0xe44   :  { %v1389_v52 = vadd.f32 1.0, %v6939_v48  ;;  %6942 = vrcp.f32 %v1388_v57 }
 0xe45   :  { %6944 = vrcp.f32 %v1243_v50 }
 0xe46   :  { %6946 = vrcp.f32 %v1389_v52 }
 0xe50   :  { %v6941_v53 = vpop.eup %6940 }
 0xe51   :  { %v6943_v1 = vpop.eup %6942  ;;  %v1250_v14 = vmul.f32 %v6941_v53, %v7926_v20 }
 0xe52   :  { %v6945_v4 = vpop.eup %6944  ;;  %v1396_v37 = vmul.f32 %v6943_v1, %v7928_v41 }
 0xe53   :  { %v6947_v10 = vpop.eup %6946  ;;  %v1251_v50 = vmul.f32 %v6945_v4, %v7934_v19 }
 0xeaf   :  { %v1255_v55 = vpop.permute.xlu0 %1254 }
 0xeb0   :  { %v1260_v0 = vmul.f32 %v6941_v53, %v1255_v55  ;;  %v1401_v43 = vpop.permute.xlu1 %1400  ;;  %v1397_v55 = vmul.f32 %v6947_v10, %v7936_v33 }
 0xeb1   :  { %v1406_v49 = vmul.f32 %v6943_v1, %v1401_v43 }
 0xeb2   :  { %1264 = vrot.lane.b32.xlu0 %v1260_v0, %s7271_s8 }
 0xeb3   :  { %v1257_v7 = vpop.permute.xlu0 %1256  ;;  %1410 = vrot.lane.b32.xlu1 %v1406_v49, %s7271_s8 }
 0xeb4   :  { %v1261_v9 = vmul.f32 %v6945_v4, %v1257_v7  ;;  %v1403_v2 = vpop.permute.xlu1 %1402 }
 0xeb5   :  { %v1407_v36 = vmul.f32 %v6947_v10, %v1403_v2 }
 0xeb6   :  { %1266 = vrot.lane.b32.xlu0 %v1261_v9, %s7271_s8 }
 0xeb7   :  { %1412 = vrot.lane.b32.xlu1 %v1407_v36, %s7271_s8 }
 0xf24   :  { %v1265_v16 = vpop.permute.xlu0 %1264 }
 0xf25   :  { %v8084_v18 = vadd.f32 %v1265_v16, %v1250_v14  ;;  %v1411_v57 = vpop.permute.xlu1 %1410 }
 0xf26   :  { %v8086_v48 = vadd.f32 %v1411_v57, %v1396_v37 }
 0xf27   :  { %6948 = vtanh.f32 %v8084_v18 }
 0xf28   :  { %v1267_v52 = vpop.permute.xlu0 %1266  ;;  %6950 = vtanh.f32 %v8086_v48 }
 0xf29   :  { %v8092_v0 = vadd.f32 %v1267_v52, %v1251_v50  ;;  %v1413_v20 = vpop.permute.xlu1 %1412 }
 0xf2a   :  { %v8094_v43 = vadd.f32 %v1413_v20, %v1397_v55 }
 0xf2b   :  { %6952 = vtanh.f32 %v8092_v0 }
 0xf2c   :  { %6954 = vtanh.f32 %v8094_v43 }
 0xf34   :  { %v6949_v41 = vpop.eup %6948 }
 0xf35   :  { %1276 = vrot.lane.b32.xlu0 %v6949_v41, %s7271_s8  ;;  %v6951_v49 = vpop.eup %6950  ;;  %v5376_v41 = vld [vmem:[%s9037_s0 + $0x58] sm:$0x3] }
 0xf36   :  { %1422 = vrot.lane.b32.xlu1 %v6951_v49, %s7271_s8 }
 0xf38   :  { %v6953_v19 = vpop.eup %6952 }
 0xf39   :  { %1278 = vrot.lane.b32.xlu0 %v6953_v19, %s7271_s8  ;;  %v6955_v7 = vpop.eup %6954 }
 0xf3a   :  { %1424 = vrot.lane.b32.xlu1 %v6955_v7, %s7271_s8 }
 0xfa7   :  { %v1277_v9 = vpop.permute.xlu0 %1276 }
 0xfa8   :  { %v1423_v33 = vpop.permute.xlu1 %1422  ;;  %v1282_v37 = vmul.f32 %v6941_v53, %v1277_v9 }
 0xfa9   :  { %v1428_v2 = vmul.f32 %v6943_v1, %v1423_v33  ;;  %v5375_v1 = vld [vmem:[%s9037_s0 + $0x50] sm:$0xff] }
 0xfab   :  { %1432 = vrot.lane.b32.xlu0 %v1428_v2, %s7268_s4  ;;  %v1279_v16 = vpop.permute.xlu0 %1278 }
 0xfac   :  { %v1425_v36 = vpop.permute.xlu1 %1424  ;;  %v1283_v57 = vmul.f32 %v6945_v4, %v1279_v16 }
 0xfad   :  { %v1429_v14 = vmul.f32 %v6947_v10, %v1425_v36 }
 0xfaf   :  { %1434 = vrot.lane.b32.xlu1 %v1429_v14, %s7268_s4  ;;  %1586 = vrot.lane.b32.xlu0 %v1428_v2, %s7272_s9 }
 0xfb3   :  { %1440 = vrot.lane.b32.xlu1 %v1282_v37, %s7272_s9  ;;  %1442 = vrot.lane.b32.xlu0 %v1283_v57, %s7272_s9 }
 0xfb7   :  { %1588 = vrot.lane.b32.xlu1 %v1429_v14, %s7272_s9 }
0x101d   :  { %v1433_v50 = vpop.permute.xlu0 %1432 }
0x1021   :  { %v1435_v52 = vpop.permute.xlu1 %1434  ;;  %v1587_v10 = vpop.permute.xlu0 %1586 }
0x1022   :  { %v1592_v55 = vsel %vm103_vm0, %v5375_v1, %v1587_v10 }
0x1023   :  { %1596 = vrot.lane.b32.xlu1 %v1592_v55, %s7268_s4 }
0x1025   :  { %v1441_v20 = vpop.permute.xlu1 %1440  ;;  %v1443_v4 = vpop.permute.xlu0 %1442 }
0x1026   :  { %v1446_v53 = vsel %vm103_vm0, %v1433_v50, %v1441_v20  ;;  %v1447_v19 = vsel %vm103_vm0, %v1435_v52, %v1443_v4 }
0x1027   :  { %1450 = vrot.lane.b32.xlu0 %v1446_v53, %s7268_s4 }
0x1029   :  { %v1589_v49 = vpop.permute.xlu1 %1588 }
0x102a   :  { %v1593_v7 = vsel %vm103_vm0, %v5376_v41, %v1589_v49 }
0x102b   :  { %1598 = vrot.lane.b32.xlu1 %v1593_v7, %s7268_s4  ;;  %1452 = vrot.lane.b32.xlu0 %v1447_v19, %s7268_s4 }
0x1095   :  { %v1597_v33 = vpop.permute.xlu1 %1596 }
0x1096   :  { %v1602_v9 = vsel %vm114_vm6, %v1592_v55, %v1597_v33 }
0x1097   :  { %v1604_v2 = vmul.f32 %v1602_v9, %v7408_v24 }
0x1099   :  { %6319 = vmatprep.mubr.f32.mxu0 %v1604_v2  ;;  %v1451_v36 = vpop.permute.xlu0 %1450 }
0x109a   :  { %v1456_v14 = vsel %vm114_vm6, %v1446_v53, %v1451_v36 }
0x109b   :  { %v1458_v16 = vmul.f32 %v1456_v14, %v7408_v24 }
0x109d   :  { %v1599_v37 = vpop.permute.xlu1 %1598  ;;  %6284 = vmatprep.mubr.f32.mxu1 %v1458_v16  ;;  %v1453_v57 = vpop.permute.xlu0 %1452 }
0x109e   :  { %v1603_v50 = vsel %vm114_vm6, %v1593_v7, %v1599_v37  ;;  %v1457_v1 = vsel %vm114_vm6, %v1447_v19, %v1453_v57 }
0x109f   :  { %v1605_v52 = vmul.f32 %v1603_v50, %v7414_v28  ;;  %v1459_v10 = vmul.f32 %v1457_v1, %v7414_v28 }
0x10a1   :  { %6285 = vmatmul.mubr.f32.vlgmr.msra.gmra.mxu1 %v1459_v10  ;;  %6320 = vmatmul.mubr.f32.vlgmr.msra.gmra.mxu0 %v1605_v52 }
0x10a2   :  { %6323 = vmatpush3.msra.mxu1 %v7904_v34  ;;  %6358 = vmatpush3.msra.mxu0 %v7811_v11 }
0x10a3   :  { %6324 = vmatprep.subr.mxu1 %v7974_v5  ;;  %6359 = vmatprep.subr.mxu0 %v7815_v56 }
0x10a4   :  { %6325 = vmatpush3.msra.mxu1 %v7974_v5  ;;  %6360 = vmatpush3.msra.mxu0 %v7815_v56 }
0x10a5   :  { %6326 = vmatprep.subr.mxu1 %v7980_v8  ;;  %6361 = vmatprep.subr.mxu0 %v7821_v59 }
0x10a6   :  { %6327 = vmatpush3.msra.mxu1 %v7980_v8  ;;  %6362 = vmatpush3.msra.mxu0 %v7821_v59 }
0x10a7   :  { %6328 = vmatprep.subr.mxu1 %v7986_v38  ;;  %6363 = vmatprep.subr.mxu0 %v7827_v60 }
0x10a8   :  { %6329 = vmatpush3.msra.mxu1 %v7986_v38  ;;  %6364 = vmatpush3.msra.mxu0 %v7827_v60 }
0x10a9   :  { %6330 = vmatprep.subr.mxu1 %v7992_v12  ;;  %6365 = vmatprep.subr.mxu0 %v7833_v61 }
0x10aa   :  { %6331 = vmatpush3.msra.mxu1 %v7992_v12  ;;  %6366 = vmatpush3.msra.mxu0 %v7833_v61 }
0x10ab   :  { %6332 = vmatprep.subr.mxu1 %v7998_v35  ;;  %6367 = vmatprep.subr.mxu0 %v7839_v62 }
0x10ac   :  { %6333 = vmatpush3.msra.mxu1 %v7998_v35  ;;  %6368 = vmatpush3.msra.mxu0 %v7839_v62 }
0x10ad   :  { %6334 = vmatprep.subr.mxu1 %v8004_v13  ;;  %6369 = vmatprep.subr.mxu0 %v7845_v63 }
0x10ae   :  { %6335 = vmatpush3.msra.mxu1 %v8004_v13  ;;  %6370 = vmatpush3.msra.mxu0 %v7845_v63 }
0x10af   :  { %6336 = vmatprep.subr.mxu1 %v8010_v42  ;;  %6371 = vmatprep.subr.mxu0 %v7851_v3 }
0x10b0   :  { %6337 = vmatpush3.msra.mxu1 %v8010_v42  ;;  %6372 = vmatpush3.msra.mxu0 %v7851_v3 }
0x10b1   :  { %6338 = vmatprep.subr.mxu1 %v8016_v6  ;;  %6373 = vmatprep.subr.mxu0 %v7857_v22 }
0x10b2   :  { %6339 = vmatpush3.msra.mxu1 %v8016_v6  ;;  %6374 = vmatpush3.msra.mxu0 %v7857_v22 }
0x10b3   :  { %6340 = vmatprep.subr.mxu1 %v8022_v40  ;;  %6375 = vmatprep.subr.mxu0 %v7863_v25 }
0x10b4   :  { %6341 = vmatpush3.msra.mxu1 %v8022_v40  ;;  %6376 = vmatpush3.msra.mxu0 %v7863_v25 }
0x10b5   :  { %6342 = vmatprep.subr.mxu1 %v8028_v39  ;;  %6377 = vmatprep.subr.mxu0 %v7869_v26 }
0x10b6   :  { %6343 = vmatpush3.msra.mxu1 %v8028_v39  ;;  %6378 = vmatpush3.msra.mxu0 %v7869_v26 }
0x10b7   :  { %6344 = vmatprep.subr.mxu1 %v8034_v46  ;;  %6379 = vmatprep.subr.mxu0 %v7875_v27 }
0x10b8   :  { %6345 = vmatpush3.msra.mxu1 %v8034_v46  ;;  %6380 = vmatpush3.msra.mxu0 %v7875_v27 }
0x10b9   :  { %6346 = vmatprep.subr.mxu1 %v8040_v54  ;;  %6381 = vmatprep.subr.mxu0 %v7881_v29 }
0x10ba   :  { %6347 = vmatpush3.msra.mxu1 %v8040_v54  ;;  %6382 = vmatpush3.msra.mxu0 %v7881_v29 }
0x10bb   :  { %6348 = vmatprep.subr.mxu1 %v8046_v44  ;;  %6383 = vmatprep.subr.mxu0 %v7887_v30 }
0x10bc   :  { %6349 = vmatpush3.msra.mxu1 %v8046_v44  ;;  %6384 = vmatpush3.msra.mxu0 %v7887_v30 }
0x10bd   :  { %6350 = vmatprep.subr.mxu1 %v8052_v45  ;;  %6385 = vmatprep.subr.mxu0 %v7893_v31 }
0x10be   :  { %6351 = vmatpush3.msra.mxu1 %v8052_v45  ;;  %6386 = vmatpush3.msra.mxu0 %v7893_v31 }
0x10bf   :  { %6352 = vmatprep.subr.mxu1 %v8058_v47  ;;  %6387 = vmatprep.subr.mxu0 %v7899_v32 }
0x10c0   :  { %6353 = vmatpush3.msra.mxu1 %v8058_v47  ;;  %6388 = vmatpush3.msra.mxu0 %v7899_v32 }
0x10c1   :  { %6392 = vmatprep.subr.mxu1 %v7904_v34  ;;  %6427 = vmatprep.subr.mxu0 %v7811_v11 }
0x1161   :  { %v6286_v56 = vpop.f32.mrf.mxu1  ;;  %v6321_v59 = vpop.f32.mrf.mxu0 }
0x1162   :  { %v1532_v3 = vadd.f32 %v8070_v58, %v6286_v56  ;;  %v1678_v22 = vadd.f32 %v7913_v17, %v6321_v59 }
0x1163   :  { %v1526_v60 = vpop.f32.mrf.mxu1  ;;  %v1672_v61 = vpop.f32.mrf.mxu0 }
0x1164   :  { %v1527_v62 = vadd.f32 %v8066_v51, %v1526_v60  ;;  %v1673_v63 = vadd.f32 %v7909_v15, %v1672_v61  ;;  %v5374_v31 = vmul.f32 -1.442695, %v1532_v3  ;;  %v5378_v32 = vmul.f32 -1.442695, %v1678_v22 }
0x1166   :  { %6956 = vtanh.f32 %v1527_v62  ;;  %v5373_v29 = vmul.f32 -1.442695, %v1527_v62  ;;  %v5377_v30 = vmul.f32 -1.442695, %v1673_v63 }
0x1167   :  { %6958 = vtanh.f32 %v1673_v63 }
0x1168   :  { %6960 = vtanh.f32 %v1532_v3 }
0x1169   :  { %6962 = vtanh.f32 %v1678_v22 }
0x116a   :  { %6964 = vpow2.f32 %v5373_v29 }
0x116b   :  { %6966 = vpow2.f32 %v5377_v30 }
0x116c   :  { %6968 = vpow2.f32 %v5374_v31 }
0x116d   :  { %6970 = vpow2.f32 %v5378_v32 }
0x1173   :  { %v6957_v25 = vpop.eup %6956 }
0x1174   :  { %1553 = vrot.lane.b32.xlu0 %v6957_v25, %s7271_s8  ;;  %v6959_v11 = vpop.eup %6958 }
0x1175   :  { %1699 = vrot.lane.b32.xlu1 %v6959_v11, %s7271_s8  ;;  %v6961_v26 = vpop.eup %6960 }
0x1176   :  { %v6963_v27 = vpop.eup %6962 }
0x1177   :  { %v6965_v15 = vpop.eup %6964 }
0x1178   :  { %1555 = vrot.lane.b32.xlu0 %v6961_v26, %s7271_s8  ;;  %v6967_v17 = vpop.eup %6966  ;;  %v1541_v55 = vadd.f32 1.0, %v6965_v15 }
0x1179   :  { %1701 = vrot.lane.b32.xlu1 %v6963_v27, %s7271_s8  ;;  %v6969_v20 = vpop.eup %6968  ;;  %v1687_v53 = vadd.f32 1.0, %v6967_v17 }
0x117a   :  { %v6971_v4 = vpop.eup %6970  ;;  %v1542_v41 = vadd.f32 1.0, %v6969_v20  ;;  %6972 = vrcp.f32 %v1541_v55  ;;  %v5381_v20 = vld [vmem:[%s9037_s0 + $0x60] sm:$0xff] }
0x117b   :  { %v1688_v49 = vadd.f32 1.0, %v6971_v4  ;;  %6974 = vrcp.f32 %v1687_v53 }
0x117c   :  { %6976 = vrcp.f32 %v1542_v41 }
0x117d   :  { %6978 = vrcp.f32 %v1688_v49 }
0x1187   :  { %v6973_v19 = vpop.eup %6972 }
0x1188   :  { %v6975_v9 = vpop.eup %6974  ;;  %v1549_v52 = vmul.f32 %v6973_v19, %v8084_v18 }
0x1189   :  { %v6977_v14 = vpop.eup %6976  ;;  %v1695_v56 = vmul.f32 %v6975_v9, %v8086_v48 }
0x118a   :  { %v6979_v57 = vpop.eup %6978  ;;  %v1550_v62 = vmul.f32 %v6977_v14, %v8092_v0 }
0x118b   :  { %v1696_v3 = vmul.f32 %v6979_v57, %v8094_v43 }
0x11e6   :  { %v1554_v7 = vpop.permute.xlu0 %1553 }
0x11e7   :  { %v1559_v33 = vmul.f32 %v6973_v19, %v1554_v7  ;;  %v1700_v2 = vpop.permute.xlu1 %1699 }
0x11e8   :  { %v1705_v36 = vmul.f32 %v6975_v9, %v1700_v2 }
0x11e9   :  { %1563 = vrot.lane.b32.xlu0 %v1559_v33, %s7271_s8  ;;  %v5382_v33 = vld [vmem:[%s9037_s0 + $0x68] sm:$0x3] }
0x11ea   :  { %v1556_v16 = vpop.permute.xlu0 %1555  ;;  %1709 = vrot.lane.b32.xlu1 %v1705_v36, %s7271_s8 }
0x11eb   :  { %v1560_v37 = vmul.f32 %v6977_v14, %v1556_v16  ;;  %v1702_v50 = vpop.permute.xlu1 %1701 }
0x11ec   :  { %v1706_v1 = vmul.f32 %v6979_v57, %v1702_v50 }
0x11ed   :  { %1565 = vrot.lane.b32.xlu0 %v1560_v37, %s7271_s8 }
0x11ee   :  { %1711 = vrot.lane.b32.xlu1 %v1706_v1, %s7271_s8 }
0x125b   :  { %v1564_v10 = vpop.permute.xlu0 %1563 }
0x125c   :  { %v8208_v59 = vadd.f32 %v1564_v10, %v1549_v52  ;;  %v1710_v60 = vpop.permute.xlu1 %1709 }
0x125d   :  { %v8210_v61 = vadd.f32 %v1710_v60, %v1695_v56 }
0x125e   :  { %6980 = vtanh.f32 %v8208_v59 }
0x125f   :  { %v1566_v63 = vpop.permute.xlu0 %1565  ;;  %6982 = vtanh.f32 %v8210_v61 }
0x1260   :  { %v8216_v22 = vadd.f32 %v1566_v63, %v1550_v62  ;;  %v1712_v18 = vpop.permute.xlu1 %1711 }
0x1261   :  { %v8218_v25 = vadd.f32 %v1712_v18, %v1696_v3  ;;  %v7182_v3 = vld [vmem:[#allocation2 + $0x78] sm:$0xff]  ;;  %v7183_v18 = vld [vmem:[#allocation2 + $0x70] sm:$0xff] }
0x1262   :  { %6984 = vtanh.f32 %v8216_v22 }
0x1263   :  { %6986 = vtanh.f32 %v8218_v25 }
0x126b   :  { %v6981_v48 = vpop.eup %6980 }
0x126c   :  { %1575 = vrot.lane.b32.xlu0 %v6981_v48, %s7271_s8  ;;  %v6983_v11 = vpop.eup %6982  ;;  %v7184_v48 = vld [vmem:[#allocation2 + $0x68] sm:$0xff] }
0x126d   :  { %1721 = vrot.lane.b32.xlu1 %v6983_v11, %s7271_s8  ;;  %v7185_v11 = vld [vmem:[#allocation2 + $0x60] sm:$0xff] }
0x126f   :  { %v6985_v0 = vpop.eup %6984 }
0x1270   :  { %1577 = vrot.lane.b32.xlu0 %v6985_v0, %s7271_s8  ;;  %v6987_v26 = vpop.eup %6986 }
0x1271   :  { %1723 = vrot.lane.b32.xlu1 %v6987_v26, %s7271_s8 }
0x12de   :  { %v1576_v27 = vpop.permute.xlu0 %1575 }
0x12df   :  { %v1722_v43 = vpop.permute.xlu1 %1721  ;;  %v1581_v15 = vmul.f32 %v6973_v19, %v1576_v27 }
0x12e0   :  { %v1727_v29 = vmul.f32 %v6975_v9, %v1722_v43 }
0x12e2   :  { %1731 = vrot.lane.b32.xlu0 %v1727_v29, %s7268_s4  ;;  %v1578_v32 = vpop.permute.xlu0 %1577 }
0x12e3   :  { %v1724_v30 = vpop.permute.xlu1 %1723  ;;  %v1582_v17 = vmul.f32 %v6977_v14, %v1578_v32 }
0x12e4   :  { %v1728_v31 = vmul.f32 %v6979_v57, %v1724_v30 }
0x12e6   :  { %1733 = vrot.lane.b32.xlu1 %v1728_v31, %s7268_s4  ;;  %1885 = vrot.lane.b32.xlu0 %v1727_v29, %s7272_s9  ;;  %v8289_v29 = vld [vmem:[#allocation2 + $0x80] sm:$0xff] }
0x12ea   :  { %1739 = vrot.lane.b32.xlu1 %v1581_v15, %s7272_s9  ;;  %1741 = vrot.lane.b32.xlu0 %v1582_v17, %s7272_s9 }
0x12ee   :  { %1887 = vrot.lane.b32.xlu1 %v1728_v31, %s7272_s9  ;;  %v8293_v31 = vld [vmem:[#allocation2 + $0x88] sm:$0x3] }
0x1354   :  { %v1732_v55 = vpop.permute.xlu0 %1731 }
0x1358   :  { %v1734_v53 = vpop.permute.xlu1 %1733  ;;  %v1886_v4 = vpop.permute.xlu0 %1885 }
0x1359   :  { %v1891_v41 = vsel %vm103_vm0, %v5381_v20, %v1886_v4 }
0x135a   :  { %1895 = vrot.lane.b32.xlu1 %v1891_v41, %s7268_s4 }
0x135c   :  { %v1740_v49 = vpop.permute.xlu1 %1739  ;;  %v1742_v7 = vpop.permute.xlu0 %1741 }
0x135d   :  { %v1745_v19 = vsel %vm103_vm0, %v1732_v55, %v1740_v49  ;;  %v1746_v2 = vsel %vm103_vm0, %v1734_v53, %v1742_v7 }
0x135e   :  { %1749 = vrot.lane.b32.xlu0 %v1745_v19, %s7268_s4 }
0x1360   :  { %v1888_v9 = vpop.permute.xlu1 %1887 }
0x1361   :  { %v1892_v36 = vsel %vm103_vm0, %v5382_v33, %v1888_v9 }
0x1362   :  { %1897 = vrot.lane.b32.xlu1 %v1892_v36, %s7268_s4  ;;  %1751 = vrot.lane.b32.xlu0 %v1746_v2, %s7268_s4 }
0x13cc   :  { %v1896_v14 = vpop.permute.xlu1 %1895 }
0x13cd   :  { %v1901_v16 = vsel %vm114_vm6, %v1891_v41, %v1896_v14 }
0x13ce   :  { %v1903_v37 = vmul.f32 %v1901_v16, %v7408_v24 }
0x13d0   :  { %6389 = vmatprep.mubr.f32.mxu0 %v1903_v37  ;;  %v1750_v57 = vpop.permute.xlu0 %1749 }
0x13d1   :  { %v1755_v50 = vsel %vm114_vm6, %v1745_v19, %v1750_v57 }
0x13d2   :  { %v1757_v1 = vmul.f32 %v1755_v50, %v7408_v24 }
0x13d4   :  { %v1898_v52 = vpop.permute.xlu1 %1897  ;;  %6354 = vmatprep.mubr.f32.mxu1 %v1757_v1  ;;  %v1752_v10 = vpop.permute.xlu0 %1751 }
0x13d5   :  { %v1902_v56 = vsel %vm114_vm6, %v1892_v36, %v1898_v52  ;;  %v1756_v60 = vsel %vm114_vm6, %v1746_v2, %v1752_v10 }
0x13d6   :  { %v1904_v62 = vmul.f32 %v1902_v56, %v7414_v28  ;;  %v1758_v63 = vmul.f32 %v1756_v60, %v7414_v28 }
0x13d8   :  { %6355 = vmatmul.mubr.f32.vlgmr.msra.gmra.mxu1 %v1758_v63  ;;  %6390 = vmatmul.mubr.f32.vlgmr.msra.gmra.mxu0 %v1904_v62 }
0x13d9   :  { %6393 = vmatpush3.msra.mxu1 %v7904_v34  ;;  %6428 = vmatpush3.msra.mxu0 %v7182_v3  ;;  %v7186_v34 = vld [vmem:[#allocation2 + $0x58] sm:$0xff] }
0x13da   :  { %6394 = vmatprep.subr.mxu1 %v7974_v5  ;;  %6429 = vmatprep.subr.mxu0 %v7183_v18 }
0x13db   :  { %6395 = vmatpush3.msra.mxu1 %v7974_v5  ;;  %6430 = vmatpush3.msra.mxu0 %v7183_v18  ;;  %v7187_v5 = vld [vmem:[#allocation2 + $0x50] sm:$0xff] }
0x13dc   :  { %6396 = vmatprep.subr.mxu1 %v7980_v8  ;;  %6431 = vmatprep.subr.mxu0 %v7184_v48 }
0x13dd   :  { %6397 = vmatpush3.msra.mxu1 %v7980_v8  ;;  %6432 = vmatpush3.msra.mxu0 %v7184_v48  ;;  %v7188_v8 = vld [vmem:[#allocation2 + $0x48] sm:$0xff] }
0x13de   :  { %6398 = vmatprep.subr.mxu1 %v7986_v38  ;;  %6433 = vmatprep.subr.mxu0 %v7185_v11 }
0x13df   :  { %6399 = vmatpush3.msra.mxu1 %v7986_v38  ;;  %6434 = vmatpush3.msra.mxu0 %v7185_v11  ;;  %v7189_v38 = vld [vmem:[#allocation2 + $0x40] sm:$0xff] }
0x13e0   :  { %6400 = vmatprep.subr.mxu1 %v7992_v12  ;;  %6435 = vmatprep.subr.mxu0 %v7186_v34 }
0x13e1   :  { %6401 = vmatpush3.msra.mxu1 %v7992_v12  ;;  %6436 = vmatpush3.msra.mxu0 %v7186_v34  ;;  %v7190_v12 = vld [vmem:[#allocation2 + $0x38] sm:$0xff] }
0x13e2   :  { %6402 = vmatprep.subr.mxu1 %v7998_v35  ;;  %6437 = vmatprep.subr.mxu0 %v7187_v5 }
0x13e3   :  { %6403 = vmatpush3.msra.mxu1 %v7998_v35  ;;  %6438 = vmatpush3.msra.mxu0 %v7187_v5  ;;  %v7191_v35 = vld [vmem:[#allocation2 + $0x30] sm:$0xff] }
0x13e4   :  { %6404 = vmatprep.subr.mxu1 %v8004_v13  ;;  %6439 = vmatprep.subr.mxu0 %v7188_v8 }
0x13e5   :  { %6405 = vmatpush3.msra.mxu1 %v8004_v13  ;;  %6440 = vmatpush3.msra.mxu0 %v7188_v8  ;;  %v7192_v13 = vld [vmem:[#allocation2 + $0x28] sm:$0xff] }
0x13e6   :  { %6406 = vmatprep.subr.mxu1 %v8010_v42  ;;  %6441 = vmatprep.subr.mxu0 %v7189_v38 }
0x13e7   :  { %6407 = vmatpush3.msra.mxu1 %v8010_v42  ;;  %6442 = vmatpush3.msra.mxu0 %v7189_v38  ;;  %v7193_v42 = vld [vmem:[#allocation2 + $0x20] sm:$0xff] }
0x13e8   :  { %6408 = vmatprep.subr.mxu1 %v8016_v6  ;;  %6443 = vmatprep.subr.mxu0 %v7190_v12 }
0x13e9   :  { %6409 = vmatpush3.msra.mxu1 %v8016_v6  ;;  %6444 = vmatpush3.msra.mxu0 %v7190_v12  ;;  %v7194_v6 = vld [vmem:[#allocation2 + $0x18] sm:$0xff] }
0x13ea   :  { %6410 = vmatprep.subr.mxu1 %v8022_v40  ;;  %6445 = vmatprep.subr.mxu0 %v7191_v35 }
0x13eb   :  { %6411 = vmatpush3.msra.mxu1 %v8022_v40  ;;  %6446 = vmatpush3.msra.mxu0 %v7191_v35  ;;  %v7195_v40 = vld [vmem:[#allocation2 + $0x10] sm:$0xff] }
0x13ec   :  { %6412 = vmatprep.subr.mxu1 %v8028_v39  ;;  %6447 = vmatprep.subr.mxu0 %v7192_v13 }
0x13ed   :  { %6413 = vmatpush3.msra.mxu1 %v8028_v39  ;;  %6448 = vmatpush3.msra.mxu0 %v7192_v13  ;;  %v7196_v39 = vld [vmem:[#allocation2 + $0x8] sm:$0xff] }
0x13ee   :  { %6414 = vmatprep.subr.mxu1 %v8034_v46  ;;  %6449 = vmatprep.subr.mxu0 %v7193_v42 }
0x13ef   :  { %6415 = vmatpush3.msra.mxu1 %v8034_v46  ;;  %6450 = vmatpush3.msra.mxu0 %v7193_v42  ;;  %v7197_v46 = vld [vmem:[#allocation2] sm:$0xff] }
0x13f0   :  { %6416 = vmatprep.subr.mxu1 %v8040_v54  ;;  %6451 = vmatprep.subr.mxu0 %v7194_v6 }
0x13f1   :  { %6417 = vmatpush3.msra.mxu1 %v8040_v54  ;;  %6452 = vmatpush3.msra.mxu0 %v7194_v6  ;;  %v8285_v54 = vld [vmem:[#allocation2 + $0x108] sm:$0xff] }
0x13f2   :  { %6418 = vmatprep.subr.mxu1 %v8046_v44  ;;  %6453 = vmatprep.subr.mxu0 %v7195_v40 }
0x13f3   :  { %6419 = vmatpush3.msra.mxu1 %v8046_v44  ;;  %6454 = vmatpush3.msra.mxu0 %v7195_v40 }
0x13f4   :  { %6420 = vmatprep.subr.mxu1 %v8052_v45  ;;  %6455 = vmatprep.subr.mxu0 %v7196_v39 }
0x13f5   :  { %6421 = vmatpush3.msra.mxu1 %v8052_v45  ;;  %6456 = vmatpush3.msra.mxu0 %v7196_v39 }
0x13f6   :  { %6422 = vmatprep.subr.mxu1 %v8058_v47  ;;  %6457 = vmatprep.subr.mxu0 %v7197_v46 }
0x13f7   :  { %6423 = vmatpush3.msra.mxu1 %v8058_v47  ;;  %6458 = vmatpush3.msra.mxu0 %v7197_v46 }
0x13f8   :  { %6462 = vmatprep.subr.mxu1 %v8285_v54 }
0x1498   :  { %v6356_v44 = vpop.f32.mrf.mxu1  ;;  %v6391_v0 = vpop.f32.mrf.mxu0 }
0x1499   :  { %v1831_v30 = vadd.f32 %v8070_v58, %v6356_v44  ;;  %v1977_v47 = vadd.f32 %v8293_v31, %v6391_v0 }
0x149a   :  { %v1825_v26 = vpop.f32.mrf.mxu1  ;;  %v1971_v43 = vpop.f32.mrf.mxu0 }
0x149b   :  { %v1826_v27 = vadd.f32 %v8066_v51, %v1825_v26  ;;  %v1972_v45 = vadd.f32 %v8289_v29, %v1971_v43  ;;  %v5380_v20 = vmul.f32 -1.442695, %v1831_v30  ;;  %v5384_v53 = vmul.f32 -1.442695, %v1977_v47 }
0x149d   :  { %6988 = vtanh.f32 %v1826_v27  ;;  %v5379_v58 = vmul.f32 -1.442695, %v1826_v27  ;;  %v5383_v55 = vmul.f32 -1.442695, %v1972_v45  ;;  %v5387_v27 = vld [vmem:[%s9037_s0 + $0x70] sm:$0xff] }
0x149e   :  { %6990 = vtanh.f32 %v1972_v45 }
0x149f   :  { %6992 = vtanh.f32 %v1831_v30 }
0x14a0   :  { %6994 = vtanh.f32 %v1977_v47 }
0x14a1   :  { %6996 = vpow2.f32 %v5379_v58 }
0x14a2   :  { %6998 = vpow2.f32 %v5383_v55 }
0x14a3   :  { %7000 = vpow2.f32 %v5380_v20 }
0x14a4   :  { %7002 = vpow2.f32 %v5384_v53 }
0x14aa   :  { %v6989_v32 = vpop.eup %6988 }
0x14ab   :  { %1852 = vrot.lane.b32.xlu0 %v6989_v32, %s7271_s8  ;;  %v6991_v15 = vpop.eup %6990 }
0x14ac   :  { %1998 = vrot.lane.b32.xlu1 %v6991_v15, %s7271_s8  ;;  %v6993_v51 = vpop.eup %6992 }
0x14ad   :  { %v6995_v17 = vpop.eup %6994 }
0x14ae   :  { %v6997_v4 = vpop.eup %6996 }
0x14af   :  { %1854 = vrot.lane.b32.xlu0 %v6993_v51, %s7271_s8  ;;  %v6999_v41 = vpop.eup %6998  ;;  %v1840_v49 = vadd.f32 1.0, %v6997_v4 }
0x14b0   :  { %2000 = vrot.lane.b32.xlu1 %v6995_v17, %s7271_s8  ;;  %v7001_v19 = vpop.eup %7000  ;;  %v1986_v7 = vadd.f32 1.0, %v6999_v41  ;;  %v5388_v17 = vld [vmem:[%s9037_s0 + $0x78] sm:$0x3] }
0x14b1   :  { %v7003_v33 = vpop.eup %7002  ;;  %v1841_v9 = vadd.f32 1.0, %v7001_v19  ;;  %7004 = vrcp.f32 %v1840_v49 }
0x14b2   :  { %v1987_v2 = vadd.f32 1.0, %v7003_v33  ;;  %7006 = vrcp.f32 %v1986_v7 }
0x14b3   :  { %7008 = vrcp.f32 %v1841_v9 }
0x14b4   :  { %7010 = vrcp.f32 %v1987_v2 }
0x14be   :  { %v7005_v36 = vpop.eup %7004 }
0x14bf   :  { %v7007_v37 = vpop.eup %7006  ;;  %v1848_v63 = vmul.f32 %v7005_v36, %v8208_v59 }
0x14c0   :  { %v7009_v1 = vpop.eup %7008  ;;  %v1994_v18 = vmul.f32 %v7007_v37, %v8210_v61 }
0x14c1   :  { %v7011_v56 = vpop.eup %7010  ;;  %v1849_v5 = vmul.f32 %v7009_v1, %v8216_v22 }
0x14c2   :  { %v1995_v38 = vmul.f32 %v7011_v56, %v8218_v25 }
0x151d   :  { %v1853_v14 = vpop.permute.xlu0 %1852 }
0x151e   :  { %v1858_v16 = vmul.f32 %v7005_v36, %v1853_v14  ;;  %v1999_v57 = vpop.permute.xlu1 %1998 }
0x151f   :  { %v2004_v50 = vmul.f32 %v7007_v37, %v1999_v57  ;;  %v7202_v57 = vld [vmem:[#allocation2 + $0xf8] sm:$0xff] }
0x1520   :  { %1862 = vrot.lane.b32.xlu0 %v1858_v16, %s7271_s8 }
0x1521   :  { %v1855_v52 = vpop.permute.xlu0 %1854  ;;  %2008 = vrot.lane.b32.xlu1 %v2004_v50, %s7271_s8  ;;  %v7203_v50 = vld [vmem:[#allocation2 + $0xf0] sm:$0xff] }
0x1522   :  { %v1859_v10 = vmul.f32 %v7009_v1, %v1855_v52  ;;  %v2001_v60 = vpop.permute.xlu1 %2000  ;;  %v7205_v52 = vld [vmem:[#allocation2 + $0xe0] sm:$0xff] }
0x1523   :  { %v2005_v62 = vmul.f32 %v7011_v56, %v2001_v60  ;;  %v7209_v60 = vld [vmem:[#allocation2 + $0xc0] sm:$0xff] }
0x1524   :  { %1864 = vrot.lane.b32.xlu0 %v1859_v10, %s7271_s8  ;;  %v7206_v10 = vld [vmem:[#allocation2 + $0xd8] sm:$0xff] }
0x1525   :  { %2010 = vrot.lane.b32.xlu1 %v2005_v62, %s7271_s8  ;;  %v7210_v62 = vld [vmem:[#allocation2 + $0xb8] sm:$0xff] }
0x1592   :  { %v1863_v3 = vpop.permute.xlu0 %1862 }
0x1593   :  { %v8306_v48 = vadd.f32 %v1863_v3, %v1848_v63  ;;  %v2009_v11 = vpop.permute.xlu1 %2008  ;;  %v7211_v63 = vld [vmem:[#allocation2 + $0xb0] sm:$0xff]  ;;  %v7212_v3 = vld [vmem:[#allocation2 + $0xa8] sm:$0xff] }
0x1594   :  { %v8308_v34 = vadd.f32 %v2009_v11, %v1994_v18  ;;  %v7213_v18 = vld [vmem:[#allocation2 + $0xa0] sm:$0xff]  ;;  %v7214_v11 = vld [vmem:[#allocation2 + $0x98] sm:$0xff] }
0x1595   :  { %7012 = vtanh.f32 %v8306_v48 }
0x1596   :  { %v1865_v8 = vpop.permute.xlu0 %1864  ;;  %7014 = vtanh.f32 %v8308_v34 }
0x1597   :  { %v8314_v12 = vadd.f32 %v1865_v8, %v1849_v5  ;;  %v2011_v59 = vpop.permute.xlu1 %2010  ;;  %v7215_v5 = vld [vmem:[#allocation2 + $0x90] sm:$0xff] }
0x1598   :  { %v8316_v35 = vadd.f32 %v2011_v59, %v1995_v38 }
0x1599   :  { %7016 = vtanh.f32 %v8314_v12 }
0x159a   :  { %7018 = vtanh.f32 %v8316_v35 }
0x15a2   :  { %v7013_v61 = vpop.eup %7012 }
0x15a3   :  { %1874 = vrot.lane.b32.xlu0 %v7013_v61, %s7271_s8  ;;  %v7015_v13 = vpop.eup %7014 }
0x15a4   :  { %2020 = vrot.lane.b32.xlu1 %v7015_v13, %s7271_s8  ;;  %v8353_v13 = vld [vmem:[#allocation2 + $0x110] sm:$0xff] }
0x15a6   :  { %v7017_v22 = vpop.eup %7016 }
0x15a7   :  { %1876 = vrot.lane.b32.xlu0 %v7017_v22, %s7271_s8  ;;  %v7019_v42 = vpop.eup %7018 }
0x15a8   :  { %2022 = vrot.lane.b32.xlu1 %v7019_v42, %s7271_s8 }
0x1615   :  { %v1875_v6 = vpop.permute.xlu0 %1874 }
0x1616   :  { %v2021_v25 = vpop.permute.xlu1 %2020  ;;  %v1880_v0 = vmul.f32 %v7005_v36, %v1875_v6 }
0x1617   :  { %v2026_v40 = vmul.f32 %v7007_v37, %v2021_v25  ;;  %v7201_v37 = vld [vmem:[#allocation2 + $0x100] sm:$0xff]  ;;  %v8357_v25 = vld [vmem:[#allocation2 + $0x118] sm:$0x3] }
0x1619   :  { %2030 = vrot.lane.b32.xlu0 %v2026_v40, %s7268_s4  ;;  %v1877_v44 = vpop.permute.xlu0 %1876 }
0x161a   :  { %v2023_v39 = vpop.permute.xlu1 %2022  ;;  %v1881_v26 = vmul.f32 %v7009_v1, %v1877_v44  ;;  %v7204_v1 = vld [vmem:[#allocation2 + $0xe8] sm:$0xff] }
0x161b   :  { %v2027_v46 = vmul.f32 %v7011_v56, %v2023_v39  ;;  %v7207_v56 = vld [vmem:[#allocation2 + $0xd0] sm:$0xff] }
0x161d   :  { %2032 = vrot.lane.b32.xlu1 %v2027_v46, %s7268_s4  ;;  %2184 = vrot.lane.b32.xlu0 %v2026_v40, %s7272_s9 }
0x1621   :  { %2038 = vrot.lane.b32.xlu1 %v1880_v0, %s7272_s9  ;;  %2040 = vrot.lane.b32.xlu0 %v1881_v26, %s7272_s9 }
0x1625   :  { %2186 = vrot.lane.b32.xlu1 %v2027_v46, %s7272_s9 }
0x168b   :  { %v2031_v43 = vpop.permute.xlu0 %2030 }
0x168f   :  { %v2033_v45 = vpop.permute.xlu1 %2032  ;;  %v2185_v30 = vpop.permute.xlu0 %2184 }
0x1690   :  { %v2190_v47 = vsel %vm103_vm0, %v5387_v27, %v2185_v30 }
0x1691   :  { %2194 = vrot.lane.b32.xlu1 %v2190_v47, %s7268_s4 }
0x1693   :  { %v2039_v32 = vpop.permute.xlu1 %2038  ;;  %v2041_v51 = vpop.permute.xlu0 %2040 }
0x1694   :  { %v2044_v15 = vsel %vm103_vm0, %v2031_v43, %v2039_v32  ;;  %v2045_v55 = vsel %vm103_vm0, %v2033_v45, %v2041_v51 }
0x1695   :  { %2048 = vrot.lane.b32.xlu0 %v2044_v15, %s7268_s4 }
0x1697   :  { %v2187_v58 = vpop.permute.xlu1 %2186 }
0x1698   :  { %v2191_v20 = vsel %vm103_vm0, %v5388_v17, %v2187_v58 }
0x1699   :  { %2196 = vrot.lane.b32.xlu1 %v2191_v20, %s7268_s4  ;;  %2050 = vrot.lane.b32.xlu0 %v2045_v55, %s7268_s4 }
0x1703   :  { %v2195_v53 = vpop.permute.xlu1 %2194 }
0x1704   :  { %v2200_v4 = vsel %vm114_vm6, %v2190_v47, %v2195_v53 }
0x1705   :  { %v2202_v41 = vmul.f32 %v2200_v4, %v7408_v24 }
0x1707   :  { %6459 = vmatprep.mubr.f32.mxu0 %v2202_v41  ;;  %v2049_v49 = vpop.permute.xlu0 %2048 }
0x1708   :  { %v2054_v19 = vsel %vm114_vm6, %v2044_v15, %v2049_v49 }
0x1709   :  { %v2056_v7 = vmul.f32 %v2054_v19, %v7408_v24 }
0x170b   :  { %v2197_v33 = vpop.permute.xlu1 %2196  ;;  %6424 = vmatprep.mubr.f32.mxu1 %v2056_v7  ;;  %v2051_v9 = vpop.permute.xlu0 %2050 }
0x170c   :  { %v2201_v2 = vsel %vm114_vm6, %v2191_v20, %v2197_v33  ;;  %v2055_v36 = vsel %vm114_vm6, %v2045_v55, %v2051_v9 }
0x170d   :  { %v2203_v14 = vmul.f32 %v2201_v2, %v7414_v28  ;;  %v2057_v16 = vmul.f32 %v2055_v36, %v7414_v28 }
0x170f   :  { %6425 = vmatmul.mubr.f32.vlgmr.msra.gmra.mxu1 %v2057_v16  ;;  %6460 = vmatmul.mubr.f32.vlgmr.msra.gmra.mxu0 %v2203_v14 }
0x1710   :  { %6463 = vmatpush3.msra.mxu1 %v8285_v54  ;;  %v7208_v54 = vld [vmem:[#allocation2 + $0xc8] sm:$0xff] }
0x1711   :  { %6464 = vmatprep.subr.mxu1 %v7201_v37 }
0x1712   :  { %6465 = vmatpush3.msra.mxu1 %v7201_v37 }
0x1713   :  { %6466 = vmatprep.subr.mxu1 %v7202_v57 }
0x1714   :  { %6467 = vmatpush3.msra.mxu1 %v7202_v57 }
0x1715   :  { %6468 = vmatprep.subr.mxu1 %v7203_v50 }
0x1716   :  { %6469 = vmatpush3.msra.mxu1 %v7203_v50 }
0x1717   :  { %6470 = vmatprep.subr.mxu1 %v7204_v1 }
0x1718   :  { %6471 = vmatpush3.msra.mxu1 %v7204_v1 }
0x1719   :  { %6472 = vmatprep.subr.mxu1 %v7205_v52 }
0x171a   :  { %6473 = vmatpush3.msra.mxu1 %v7205_v52 }
0x171b   :  { %6474 = vmatprep.subr.mxu1 %v7206_v10 }
0x171c   :  { %6475 = vmatpush3.msra.mxu1 %v7206_v10 }
0x171d   :  { %6476 = vmatprep.subr.mxu1 %v7207_v56 }
0x171e   :  { %6477 = vmatpush3.msra.mxu1 %v7207_v56 }
0x171f   :  { %6478 = vmatprep.subr.mxu1 %v7208_v54 }
0x1720   :  { %6479 = vmatpush3.msra.mxu1 %v7208_v54 }
0x1721   :  { %6480 = vmatprep.subr.mxu1 %v7209_v60 }
0x1722   :  { %6481 = vmatpush3.msra.mxu1 %v7209_v60 }
0x1723   :  { %6482 = vmatprep.subr.mxu1 %v7210_v62 }
0x1724   :  { %6483 = vmatpush3.msra.mxu1 %v7210_v62 }
0x1725   :  { %6484 = vmatprep.subr.mxu1 %v7211_v63 }
0x1726   :  { %6485 = vmatpush3.msra.mxu1 %v7211_v63 }
0x1727   :  { %6486 = vmatprep.subr.mxu1 %v7212_v3 }
0x1728   :  { %6487 = vmatpush3.msra.mxu1 %v7212_v3 }
0x1729   :  { %6488 = vmatprep.subr.mxu1 %v7213_v18 }
0x172a   :  { %6489 = vmatpush3.msra.mxu1 %v7213_v18 }
0x172b   :  { %6490 = vmatprep.subr.mxu1 %v7214_v11 }
0x172c   :  { %6491 = vmatpush3.msra.mxu1 %v7214_v11 }
0x172d   :  { %6492 = vmatprep.subr.mxu1 %v7215_v5 }
0x172e   :  { %6493 = vmatpush3.msra.mxu1 %v7215_v5 }
0x17cf   :  { %v6426_v8 = vpop.f32.mrf.mxu1  ;;  %v6461_v38 = vpop.f32.mrf.mxu0 }
0x17d0   :  { %v2130_v6 = vadd.f32 %v8357_v25, %v6426_v8  ;;  %v2276_v40 = vadd.f32 %v8293_v31, %v6461_v38 }
0x17d1   :  { %v2124_v59 = vpop.f32.mrf.mxu1  ;;  %v2270_v61 = vpop.f32.mrf.mxu0 }
0x17d2   :  { %v2125_v22 = vadd.f32 %v8353_v13, %v2124_v59  ;;  %v2271_v42 = vadd.f32 %v8289_v29, %v2270_v61  ;;  %v5386_v43 = vmul.f32 -1.442695, %v2130_v6  ;;  %v5390_v31 = vmul.f32 -1.442695, %v2276_v40 }
0x17d4   :  { %7020 = vtanh.f32 %v2125_v22  ;;  %v5385_v0 = vmul.f32 -1.442695, %v2125_v22  ;;  %v5389_v26 = vmul.f32 -1.442695, %v2271_v42 }
0x17d5   :  { %7022 = vtanh.f32 %v2271_v42 }
0x17d6   :  { %7024 = vtanh.f32 %v2130_v6 }
0x17d7   :  { %7026 = vtanh.f32 %v2276_v40 }
0x17d8   :  { %7028 = vpow2.f32 %v5385_v0 }
0x17d9   :  { %7030 = vpow2.f32 %v5389_v26 }
0x17da   :  { %7032 = vpow2.f32 %v5386_v43 }
0x17db   :  { %7034 = vpow2.f32 %v5390_v31 }
0x17e1   :  { %v7021_v39 = vpop.eup %7020 }
0x17e2   :  { %2151 = vrot.lane.b32.xlu0 %v7021_v39, %s7271_s8  ;;  %v7023_v46 = vpop.eup %7022 }
0x17e3   :  { %2297 = vrot.lane.b32.xlu1 %v7023_v46, %s7271_s8  ;;  %v7025_v44 = vpop.eup %7024 }
0x17e4   :  { %v7027_v29 = vpop.eup %7026 }
0x17e5   :  { %v7029_v27 = vpop.eup %7028 }
0x17e6   :  { %2153 = vrot.lane.b32.xlu0 %v7025_v44, %s7271_s8  ;;  %v7031_v45 = vpop.eup %7030  ;;  %v2139_v30 = vadd.f32 1.0, %v7029_v27 }
0x17e7   :  { %2299 = vrot.lane.b32.xlu1 %v7027_v29, %s7271_s8  ;;  %v7033_v47 = vpop.eup %7032  ;;  %v2285_v32 = vadd.f32 1.0, %v7031_v45 }
0x17e8   :  { %v7035_v15 = vpop.eup %7034  ;;  %v2140_v51 = vadd.f32 1.0, %v7033_v47  ;;  %7036 = vrcp.f32 %v2139_v30 }
0x17e9   :  { %v2286_v17 = vadd.f32 1.0, %v7035_v15  ;;  %7038 = vrcp.f32 %v2285_v32 }
0x17ea   :  { %7040 = vrcp.f32 %v2140_v51 }
0x17eb   :  { %7042 = vrcp.f32 %v2286_v17 }
0x17f5   :  { %v7037_v58 = vpop.eup %7036 }
0x17f6   :  { %v7039_v53 = vpop.eup %7038  ;;  %v2147_v36 = vmul.f32 %v7037_v58, %v8306_v48 }
0x17f7   :  { %v7041_v49 = vpop.eup %7040  ;;  %v2293_v16 = vmul.f32 %v7039_v53, %v8308_v34 }
0x17f8   :  { %v7043_v33 = vpop.eup %7042  ;;  %v2148_v1 = vmul.f32 %v7041_v49, %v8314_v12 }
0x17f9   :  { %v2294_v10 = vmul.f32 %v7043_v33, %v8316_v35 }
0x1854   :  { %v2152_v55 = vpop.permute.xlu0 %2151 }
0x1855   :  { %v2157_v20 = vmul.f32 %v7037_v58, %v2152_v55  ;;  %v2298_v4 = vpop.permute.xlu1 %2297 }
0x1856   :  { %v2303_v41 = vmul.f32 %v7039_v53, %v2298_v4 }
0x1857   :  { %2161 = vrot.lane.b32.xlu0 %v2157_v20, %s7271_s8 }
0x1858   :  { %v2154_v19 = vpop.permute.xlu0 %2153  ;;  %2307 = vrot.lane.b32.xlu1 %v2303_v41, %s7271_s8 }
0x1859   :  { %v2158_v7 = vmul.f32 %v7041_v49, %v2154_v19  ;;  %v2300_v9 = vpop.permute.xlu1 %2299 }
0x185a   :  { %v2304_v2 = vmul.f32 %v7043_v33, %v2300_v9  ;;  %v2483_v9 = vld [vmem:[%s9040_s3 + $0x18] sm:$0xff] }
0x185b   :  { %2163 = vrot.lane.b32.xlu0 %v2158_v7, %s7271_s8  ;;  %6497 = vmatprep.subr.mxu0 %v2483_v9 }
0x185c   :  { %2309 = vrot.lane.b32.xlu1 %v2304_v2, %s7271_s8  ;;  %v2482_v2 = vld [vmem:[%s9040_s3 + $0x10] sm:$0xff]  ;;  %6498 = vmatpush3.msra.mxu0 %v2483_v9 }
0x185d   :  { %6499 = vmatprep.subr.mxu0 %v2482_v2 }
0x185e   :  { %6500 = vmatpush3.msra.mxu0 %v2482_v2 }
0x18c9   :  { %v2162_v14 = vpop.permute.xlu0 %2161 }
0x18ca   :  { %v8371_v37 = vadd.f32 %v2162_v14, %v2147_v36  ;;  %v2308_v57 = vpop.permute.xlu1 %2307  ;;  %v2481_v36 = vld [vmem:[%s9040_s3 + $0x8] sm:$0xff] }
0x18cb   :  { %v2313_v50 = vadd.f32 %v2308_v57, %v2293_v16  ;;  %6501 = vmatprep.subr.mxu0 %v2481_v36 }
0x18cc   :  { %7044 = vtanh.f32 %v8371_v37  ;;  %6502 = vmatpush3.msra.mxu0 %v2481_v36 }
0x18cd   :  { %v2164_v52 = vpop.permute.xlu0 %2163  ;;  %7046 = vtanh.f32 %v2313_v50 }
0x18ce   :  { %v8376_v56 = vadd.f32 %v2164_v52, %v2148_v1  ;;  %v2310_v54 = vpop.permute.xlu1 %2309 }
0x18cf   :  { %v2314_v60 = vadd.f32 %v2310_v54, %v2294_v10  ;;  %v8428_v54 = vsub.s32 0, %v7404_v21 }
0x18d0   :  { %7048 = vtanh.f32 %v8376_v56 }
0x18d1   :  { %7050 = vtanh.f32 %v2314_v60  ;;  %v8433_v60 = vld [vmem:[%s9040_s3 + $0xe0] sm:$0xff] }
0x18d9   :  { %v7045_v48 = vpop.eup %7044 }
0x18da   :  { %2173 = vrot.lane.b32.xlu0 %v7045_v48, %s7271_s8  ;;  %v7047_v34 = vpop.eup %7046  ;;  %v2512_v48 = vrot.slane %v8433_v60, %v8428_v54 }
0x18db   :  { %2319 = vrot.lane.b32.xlu1 %v7047_v34, %s7271_s8 }
0x18dd   :  { %v7049_v62 = vpop.eup %7048 }
0x18de   :  { %2175 = vrot.lane.b32.xlu0 %v7049_v62, %s7271_s8  ;;  %v7051_v12 = vpop.eup %7050 }
0x18df   :  { %2321 = vrot.lane.b32.xlu1 %v7051_v12, %s7271_s8 }
0x194c   :  { %v2174_v35 = vpop.permute.xlu0 %2173 }
0x194d   :  { %v2179_v63 = vmul.f32 %v7037_v58, %v2174_v35  ;;  %v2320_v3 = vpop.permute.xlu1 %2319 }
0x194e   :  { %v2325_v18 = vmul.f32 %v7039_v53, %v2320_v3 }
0x194f   :  { %2337 = vrot.lane.b32.xlu1 %v2179_v63, %s7272_s9 }
0x1950   :  { %v2176_v11 = vpop.permute.xlu0 %2175  ;;  %2329 = vrot.lane.b32.xlu0 %v2325_v18, %s7268_s4 }
0x1951   :  { %v2180_v5 = vmul.f32 %v7041_v49, %v2176_v11  ;;  %v2322_v8 = vpop.permute.xlu1 %2321 }
0x1952   :  { %v2326_v38 = vmul.f32 %v7043_v33, %v2322_v8 }
0x1953   :  { %2339 = vrot.lane.b32.xlu1 %v2180_v5, %s7272_s9 }
0x1954   :  { %2331 = vrot.lane.b32.xlu0 %v2326_v38, %s7268_s4  ;;  %v8470_v38 = vld [vmem:[%s9038_s1 + $0x8] sm:$0x3] }
0x19c1   :  { %v2338_v59 = vpop.permute.xlu1 %2337 }
0x19c2   :  { %v2330_v61 = vpop.permute.xlu0 %2329 }
0x19c3   :  { %v2343_v22 = vsel %vm103_vm0, %v2330_v61, %v2338_v59  ;;  %v8475_v61 = vld [vmem:[%s9038_s1] sm:$0xff] }
0x19c4   :  { %2347 = vrot.lane.b32.xlu0 %v2343_v22, %s7268_s4 }
0x19c5   :  { %v2340_v42 = vpop.permute.xlu1 %2339 }
0x19c6   :  { %v2332_v6 = vpop.permute.xlu0 %2331 }
0x19c7   :  { %v2344_v40 = vsel %vm103_vm0, %v2332_v6, %v2340_v42 }
0x19c8   :  { %2349 = vrot.lane.b32.xlu1 %v2344_v40, %s7268_s4 }
0x1a36   :  { %v2348_v39 = vpop.permute.xlu0 %2347 }
0x1a37   :  { %v2353_v46 = vsel %vm114_vm6, %v2343_v22, %v2348_v39 }
0x1a38   :  { %v2355_v44 = vmul.f32 %v2353_v46, %v7408_v24 }
0x1a3a   :  { %v2350_v29 = vpop.permute.xlu1 %2349  ;;  %6494 = vmatprep.mubr.f32.mxu1 %v2355_v44 }
0x1a3b   :  { %v2354_v0 = vsel %vm114_vm6, %v2344_v40, %v2350_v29 }
0x1a3c   :  { %v2356_v26 = vmul.f32 %v2354_v0, %v7414_v28 }
0x1a3e   :  { %6495 = vmatmul.mubr.f32.vlgmr.msra.gmra.mxu1 %v2356_v26 }
0x1afe   :  { %v6496_v43 = vpop.f32.mrf.mxu1 }
0x1aff   :  { %v2429_v31 = vadd.f32 %v8357_v25, %v6496_v43 }
0x1b00   :  { %v2423_v27 = vpop.f32.mrf.mxu1 }
0x1b01   :  { %7052 = vtanh.f32 %v2429_v31  ;;  %v2424_v45 = vadd.f32 %v8353_v13, %v2423_v27  ;;  %v5392_v24 = vmul.f32 -1.442695, %v2429_v31 }
0x1b03   :  { %7054 = vtanh.f32 %v2424_v45  ;;  %v5391_v32 = vmul.f32 -1.442695, %v2424_v45 }
0x1b04   :  { %7056 = vpow2.f32 %v5392_v24 }
0x1b05   :  { %7058 = vpow2.f32 %v5391_v32 }
0x1b0e   :  { %v7053_v30 = vpop.eup %7052 }
0x1b0f   :  { %2452 = vrot.lane.b32.xlu1 %v7053_v30, %s7271_s8 }
0x1b10   :  { %v7055_v47 = vpop.eup %7054 }
0x1b11   :  { %2450 = vrot.lane.b32.xlu0 %v7055_v47, %s7271_s8  ;;  %v7057_v28 = vpop.eup %7056 }
0x1b12   :  { %v7059_v15 = vpop.eup %7058  ;;  %v2439_v51 = vadd.f32 1.0, %v7057_v28 }
0x1b13   :  { %v2438_v17 = vadd.f32 1.0, %v7059_v15 }
0x1b14   :  { %7060 = vrcp.f32 %v2439_v51 }
0x1b15   :  { %7062 = vrcp.f32 %v2438_v17 }
0x1b21   :  { %v7061_v25 = vpop.eup %7060 }
0x1b22   :  { %v7063_v55 = vpop.eup %7062  ;;  %v2447_v4 = vmul.f32 %v7061_v25, %v8376_v56 }
0x1b23   :  { %v2446_v19 = vmul.f32 %v7063_v55, %v8371_v37  ;;  %v2480_v37 = vld [vmem:[%s9040_s3] sm:$0xff] }
0x1b24   :  { %6503 = vmatprep.subr.mxu0 %v2480_v37 }
0x1b25   :  { %6504 = vmatpush3.msra.mxu0 %v2480_v37 }
0x1b81   :  { %v2453_v58 = vpop.permute.xlu1 %2452 }
0x1b82   :  { %v2457_v13 = vmul.f32 %v7061_v25, %v2453_v58 }
0x1b83   :  { %v2451_v20 = vpop.permute.xlu0 %2450 }
0x1b84   :  { %2462 = vrot.lane.b32.xlu1 %v2457_v13, %s7271_s8  ;;  %v2456_v53 = vmul.f32 %v7063_v55, %v2451_v20 }
0x1b86   :  { %2460 = vrot.lane.b32.xlu0 %v2456_v53, %s7271_s8 }
0x1bf6   :  { %v2463_v41 = vpop.permute.xlu1 %2462 }
0x1bf7   :  { %v2467_v49 = vadd.f32 %v2463_v41, %v2447_v4 }
0x1bf8   :  { %v2461_v7 = vpop.permute.xlu0 %2460 }
0x1bf9   :  { %7064 = vtanh.f32 %v2467_v49  ;;  %v2466_v33 = vadd.f32 %v2461_v7, %v2446_v19 }
0x1bfb   :  { %7066 = vtanh.f32 %v2466_v33 }
0x1c06   :  { %v7065_v14 = vpop.eup %7064 }
0x1c07   :  { %2474 = vrot.lane.b32.xlu1 %v7065_v14, %s7271_s8 }
0x1c08   :  { %v7067_v16 = vpop.eup %7066 }
0x1c09   :  { %2472 = vrot.lane.b32.xlu0 %v7067_v16, %s7271_s8 }
0x1c79   :  { %v2475_v57 = vpop.permute.xlu1 %2474 }
0x1c7a   :  { %v8417_v50 = vmul.f32 %v7061_v25, %v2475_v57 }
0x1c7b   :  { %v2473_v1 = vpop.permute.xlu0 %2472 }
0x1c7c   :  { %2517 = vrot.lane.b32.xlu1 %v8417_v50, %s7268_s4  ;;  %v8421_v52 = vmul.f32 %v7063_v55, %v2473_v1 }
0x1c7e   :  { %2515 = vrot.lane.b32.xlu0 %v8421_v52, %s7268_s4 }
0x1cee   :  { %v2518_v56 = vpop.permute.xlu1 %2517 }
0x1cf0   :  { %v2516_v10 = vpop.permute.xlu0 %2515 }
0x1cf1   :  { %6505 = vmatprep.mubr.msk.f32.mxu0 %vm103_vm0, %v2516_v10 }
0x1cf2   :  { %6506 = vmatmul.mubr.msk.f32.vlgmr.msra.gmra.mxu0 %vm103_vm0, %v2518_v56 }
0x1db2   :  { %v6507_v34 = vpop.f32.mrf.mxu0 }
0x1db3   :  { %v8437_v62 = vadd.f32 %v6507_v34, %v2512_v48 }
0x1db4   :  { %v2589_v12 = vpop.f32.mrf.mxu0 }
0x1db5   :  { %v8439_v35 = vadd.f32 %v2589_v12, %v2512_v48  ;;  %2602 = vrot.lane.b32.xlu0 %v8437_v62, %s7272_s9 }
0x1db7   :  { %2600 = vrot.lane.b32.xlu1 %v8439_v35, %s7272_s9  ;;  %6512 = vmatprep.mubr.msk.f32.mxu1 %vm2604_vm8, %v8439_v35 }
0x1db9   :  { %2807 = vrot.lane.b32.xlu0 %v8437_v62, %s7273_s24 }
0x1dbb   :  { %2805 = vrot.lane.b32.xlu1 %v8439_v35, %s7273_s24 }
0x1dbd   :  { %2801 = vrot.lane.b32.xlu0 %v8439_v35, %s7274_s25 }
0x1dbf   :  { %2803 = vrot.lane.b32.xlu1 %v8437_v62, %s7274_s25 }
0x1e27   :  { %v2603_v63 = vpop.permute.xlu0 %2602 }
0x1e28   :  { %6508 = vmatprep.subr.msk.mxu1 %vm2604_vm8, %v2603_v63 }
0x1e29   :  { %6509 = vmatpush3.xpose.msk.msra.mxu1 %vm2604_vm8, %v2603_v63  ;;  %v2601_v3 = vpop.permute.xlu1 %2600 }
0x1e2a   :  { %6510 = vmatprep.subr.msk.mxu1 %vm2604_vm8, %v2601_v3 }
0x1e2b   :  { %v2808_v18 = vpop.permute.xlu0 %2807 }
0x1e2d   :  { %6511 = vmatpush3.xpose.msk.msra.mxu1 %vm2604_vm8, %v2601_v3  ;;  %v2806_v5 = vpop.permute.xlu1 %2805 }
0x1e2e   :  { %6522 = vmatprep.subr.msk.mxu1 %vm2604_vm8, %v2808_v18 }
0x1e2f   :  { %v2802_v11 = vpop.permute.xlu0 %2801 }
0x1e30   :  { %6513 = vmatmul.mubr.msk.f32.vlgmr.msra.gmra.mxu1 %vm2604_vm8, %v8437_v62 }
0x1e31   :  { %6523 = vmatpush3.xpose.msk.msra.mxu1 %vm2604_vm8, %v2808_v18  ;;  %6526 = vmatprep.mubr.msk.f32.mxu1 %vm2604_vm8, %v2802_v11  ;;  %v2804_v8 = vpop.permute.xlu1 %2803 }
0x1e32   :  { %6524 = vmatprep.subr.msk.mxu1 %vm2604_vm8, %v2806_v5 }
0x1e35   :  { %6525 = vmatpush3.xpose.msk.msra.mxu1 %vm2604_vm8, %v2806_v5 }
0x1e38   :  { %6527 = vmatmul.mubr.msk.f32.vlgmr.msra.gmra.mxu1 %vm2604_vm8, %v2804_v8 }
0x1ef0   :  { %v6514_v59 = vpop.f32.mrf.mxu1 }
0x1ef1   :  { %v2685_v22 = vadd.f32 %v6514_v59, %v8470_v38 }
0x1ef2   :  { %v2679_v42 = vpop.f32.mrf.mxu1 }
0x1ef3   :  { %v2680_v6 = vadd.f32 %v2679_v42, %v8475_v61  ;;  %v2693_v40 = vsel %vm2692_vm9, %v2685_v22, -inf }
0x1ef4   :  { %2694 = vmax.xlane.f32.xlu1 %v2693_v40 }
0x1ef5   :  { %v2689_v39 = vsel %vm2688_vm10, %v2680_v6, -inf }
0x1ef6   :  { %2690 = vmax.xlane.f32.xlu0 %v2689_v39 }
0x1ef8   :  { %v6528_v46 = vpop.f32.mrf.mxu1 }
0x1ef9   :  { %v2889_v0 = vadd.f32 %v6528_v46, %v8470_v38 }
0x1efa   :  { %v2883_v44 = vpop.f32.mrf.mxu1 }
0x1efb   :  { %v2884_v29 = vadd.f32 %v2883_v44, %v8475_v61  ;;  %v2895_v43 = vsel %vm2692_vm9, %v2889_v0, -inf }
0x1efd   :  { %v2892_v26 = vsel %vm2688_vm10, %v2884_v29, -inf }
0x1efe   :  { %2893 = vmax.xlane.f32.xlu0 %v2892_v26 }
0x1f02   :  { %2896 = vmax.xlane.f32.xlu0 %v2895_v43 }
0x1f05   :  { %2714 = vrot.lane.b32.xlu1 %v8437_v62, %s7268_s4 }
0x1f09   :  { %2916 = vrot.lane.b32.xlu1 %v8437_v62, %s7275_s2 }
0x1f0d   :  { %2914 = vrot.lane.b32.xlu1 %v8439_v35, %s7275_s2 }
0x1f11   :  { %3006 = vrot.lane.b32.xlu1 %v8439_v35, %s7276_s30 }
0x1f18   :  { %2712 = vrot.lane.b32.xlu0 %v8439_v35, %s7268_s4 }
0x1f1c   :  { %3008 = vrot.lane.b32.xlu0 %v8437_v62, %s7276_s30 }
0x1f7d   :  { %v2695_v31 = vpop.xlane.xlu1 %2694 }
0x1f7e   :  { %v2697_v27 = vsub.f32 %v2685_v22, %v2695_v31 }
0x1f7f   :  { %v2691_v45 = vpop.xlane.xlu0 %2690 }
0x1f80   :  { %v2700_v30 = vmul.f32 1.442695, %v2697_v27  ;;  %v2696_v47 = vsub.f32 %v2680_v6, %v2691_v45 }
0x1f81   :  { %v2715_v24 = vpop.permute.xlu1 %2714 }
0x1f82   :  { %7068 = vpow2.f32 %v2700_v30  ;;  %v2698_v32 = vmul.f32 1.442695, %v2696_v47  ;;  %6515 = vmatprep.subr.msk.mxu0 %vm2723_vm11, %v2715_v24 }
0x1f83   :  { %6516 = vmatpush3.msk.msra.mxu0 %vm2723_vm11, %v2715_v24 }
0x1f84   :  { %7070 = vpow2.f32 %v2698_v32 }
0x1f85   :  { %v2917_v20 = vpop.permute.xlu1 %2916 }
0x1f87   :  { %v2894_v28 = vpop.xlane.xlu0 %2893 }
0x1f88   :  { %v2898_v49 = vsub.f32 %v2884_v29, %v2894_v28 }
0x1f89   :  { %v2915_v9 = vpop.permute.xlu1 %2914 }
0x1f8a   :  { %v2900_v19 = vmul.f32 1.442695, %v2898_v49 }
0x1f8b   :  { %v2897_v15 = vpop.xlane.xlu0 %2896 }
0x1f8c   :  { %v2899_v51 = vsub.f32 %v2889_v0, %v2897_v15 }
0x1f8d   :  { %v3007_v36 = vpop.permute.xlu1 %3006 }
0x1f8e   :  { %v2902_v17 = vmul.f32 1.442695, %v2899_v51 }
0x1f8f   :  { %v7069_v25 = vpop.eup %7068  ;;  %v2713_v58 = vpop.permute.xlu0 %2712 }
0x1f90   :  { %7072 = vpow2.f32 %v2902_v17  ;;  %6517 = vmatprep.subr.mxu0 %v2713_v58  ;;  %v2705_v13 = vsel %vm2692_vm9, %v7069_v25, 0.0 }
0x1f91   :  { %v7071_v55 = vpop.eup %7070  ;;  %2706 = vadd.xlane.f32.xlu0 %v2705_v13  ;;  %6518 = vmatpush3.msra.mxu0 %v2713_v58  ;;  %7074 = vpow2.f32 %v2900_v19 }
0x1f92   :  { %6529 = vmatprep.subr.msk.mxu0 %vm2723_vm11, %v2917_v20  ;;  %v2702_v53 = vsel %vm2688_vm10, %v7071_v55, 0.0 }
0x1f93   :  { %2703 = vadd.xlane.f32.xlu1 %v2702_v53  ;;  %v3009_v2 = vpop.permute.xlu0 %3008 }
0x1f9d   :  { %v7073_v4 = vpop.eup %7072 }
0x1f9e   :  { %v2907_v41 = vsel %vm2692_vm9, %v7073_v4, 0.0  ;;  %v7075_v7 = vpop.eup %7074 }
0x1f9f   :  { %2908 = vadd.xlane.f32.xlu0 %v2907_v41  ;;  %v2904_v33 = vsel %vm2688_vm10, %v7075_v7, 0.0 }
0x1fa4   :  { %3002 = vrot.lane.b32.xlu1 %v8439_v35, %s7277_s6 }
0x1fb5   :  { %3209 = vrot.lane.b32.xlu0 %v8437_v62, %s7278_s7 }
0x1fb9   :  { %3004 = vrot.lane.b32.xlu0 %v8437_v62, %s7277_s6 }
0x1fbd   :  { %3203 = vrot.lane.b32.xlu0 %v8439_v35, %s7279_s10 }
0x1fc8   :  { %2905 = vadd.xlane.f32.xlu1 %v2904_v33 }
0x1fd9   :  { %3207 = vrot.lane.b32.xlu1 %v8439_v35, %s7278_s7 }
0x1fdd   :  { %3205 = vrot.lane.b32.xlu1 %v8437_v62, %s7279_s10 }
0x201a   :  { %v2707_v14 = vpop.xlane.xlu0 %2706 }
0x201b   :  { %7076 = vrcp.f32 %v2707_v14 }
0x201c   :  { %v2704_v16 = vpop.xlane.xlu1 %2703 }
0x201d   :  { %7078 = vrcp.f32 %v2704_v16 }
0x2020   :  { %v3003_v63 = vpop.permute.xlu1 %3002 }
0x2028   :  { %v2909_v37 = vpop.xlane.xlu0 %2908  ;;  %v7077_v57 = vpop.eup %7076 }
0x2029   :  { %v2711_v48 = vmul.f32 %v7077_v57, %v7069_v25  ;;  %7080 = vrcp.f32 %v2909_v37 }
0x202a   :  { %v7079_v1 = vpop.eup %7078 }
0x202b   :  { %v2710_v10 = vmul.f32 %v7079_v1, %v7071_v55 }
0x202c   :  { %v3210_v56 = vpop.permute.xlu0 %3209 }
0x202d   :  { %6519 = vmatprep.mubr.msk.f32.mxu0 %vm2688_vm10, %v2710_v10  ;;  %6550 = vmatprep.subr.msk.mxu1 %vm2604_vm8, %v3210_v56 }
0x202e   :  { %6520 = vmatmul.mubr.msk.f32.vlgmr.msra.gmra.mxu0 %vm2688_vm10, %v2711_v48  ;;  %6551 = vmatpush3.xpose.msk.msra.mxu1 %vm2604_vm8, %v3210_v56 }
0x202f   :  { %6530 = vmatpush3.msk.msra.mxu0 %vm2723_vm11, %v2917_v20 }
0x2030   :  { %6531 = vmatprep.subr.mxu0 %v2915_v9  ;;  %v3005_v34 = vpop.permute.xlu0 %3004 }
0x2031   :  { %6532 = vmatpush3.msra.mxu0 %v2915_v9 }
0x2032   :  { %6536 = vmatprep.subr.msk.mxu0 %vm2604_vm8, %v3009_v2 }
0x2034   :  { %v3204_v12 = vpop.permute.xlu0 %3203 }
0x2035   :  { %6554 = vmatprep.mubr.msk.f32.mxu1 %vm2604_vm8, %v3204_v12 }
0x2036   :  { %v7081_v5 = vpop.eup %7080 }
0x2037   :  { %v2913_v22 = vmul.f32 %v7081_v5, %v7073_v4  ;;  %v2487_v5 = vld [vmem:[%s9040_s3 + $0x38] sm:$0xff] }
0x2051   :  { %v2906_v3 = vpop.xlane.xlu1 %2905 }
0x2052   :  { %7082 = vrcp.f32 %v2906_v3 }
0x2055   :  { %v3208_v18 = vpop.permute.xlu1 %3207 }
0x2056   :  { %6552 = vmatprep.subr.msk.mxu1 %vm2604_vm8, %v3208_v18 }
0x2057   :  { %6553 = vmatpush3.xpose.msk.msra.mxu1 %vm2604_vm8, %v3208_v18 }
0x2059   :  { %v3206_v11 = vpop.permute.xlu1 %3205 }
0x205a   :  { %6555 = vmatmul.mubr.msk.f32.vlgmr.msra.gmra.mxu1 %vm2604_vm8, %v3206_v11 }
0x205f   :  { %v7083_v8 = vpop.eup %7082 }
0x2060   :  { %v2912_v59 = vmul.f32 %v7083_v8, %v7075_v7  ;;  %v2486_v8 = vld [vmem:[%s9040_s3 + $0x30] sm:$0xff] }
0x2062   :  { %6533 = vmatprep.mubr.msk.f32.mxu0 %vm2688_vm10, %v2912_v59  ;;  %v2485_v59 = vld [vmem:[%s9040_s3 + $0x28] sm:$0xff] }
0x2063   :  { %6534 = vmatmul.mubr.msk.f32.vlgmr.msra.gmra.mxu0 %vm2688_vm10, %v2913_v22  ;;  %v2484_v22 = vld [vmem:[%s9040_s3 + $0x20] sm:$0xff] }
0x2064   :  { %6537 = vmatpush3.xpose.msk.msra.mxu0 %vm2604_vm8, %v3009_v2  ;;  %6540 = vmatprep.mubr.msk.f32.mxu0 %vm2604_vm8, %v3003_v63 }
0x2065   :  { %6538 = vmatprep.subr.msk.mxu0 %vm2604_vm8, %v3007_v36 }
0x2068   :  { %6539 = vmatpush3.xpose.msk.msra.mxu0 %vm2604_vm8, %v3007_v36 }
0x206b   :  { %6541 = vmatmul.mubr.msk.f32.vlgmr.msra.gmra.mxu0 %vm2604_vm8, %v3005_v34 }
0x20ee   :  { %v8533_v42 = vpop.f32.mrf.mxu0 }
0x20f0   :  { %v8535_v6 = vpop.f32.mrf.mxu0 }
0x211a   :  { %v6556_v39 = vpop.f32.mrf.mxu1 }
0x211b   :  { %v3291_v30 = vadd.f32 %v6556_v39, %v8470_v38 }
0x211c   :  { %v3285_v0 = vpop.f32.mrf.mxu1 }
0x211d   :  { %v3286_v27 = vadd.f32 %v3285_v0, %v8475_v61  ;;  %v3297_v24 = vsel %vm2692_vm9, %v3291_v30, -inf }
0x211f   :  { %v3294_v47 = vsel %vm2688_vm10, %v3286_v27, -inf }
0x2123   :  { %v6535_v40 = vpop.f32.mrf.mxu0 }
0x2125   :  { %v2993_v46 = vpop.f32.mrf.mxu0 }
0x212b   :  { %v6542_v44 = vpop.f32.mrf.mxu0 }
0x212c   :  { %v3090_v29 = vadd.f32 %v6542_v44, %v8470_v38 }
0x212d   :  { %v3084_v26 = vpop.f32.mrf.mxu0 }
0x212e   :  { %v3085_v43 = vadd.f32 %v3084_v26, %v8475_v61  ;;  %v3096_v31 = vsel %vm2692_vm9, %v3090_v29, -inf }
0x212f   :  { %3097 = vmax.xlane.f32.xlu1 %v3096_v31 }
0x2130   :  { %v3093_v45 = vsel %vm2688_vm10, %v3085_v43, -inf }
0x2131   :  { %3094 = vmax.xlane.f32.xlu0 %v3093_v45 }
0x2135   :  { %3295 = vmax.xlane.f32.xlu0 %v3294_v47 }
0x2139   :  { %3298 = vmax.xlane.f32.xlu0 %v3297_v24 }
0x21b8   :  { %v3098_v28 = vpop.xlane.xlu1 %3097 }
0x21b9   :  { %v3100_v17 = vsub.f32 %v3090_v29, %v3098_v28 }
0x21ba   :  { %v3095_v32 = vpop.xlane.xlu0 %3094 }
0x21bb   :  { %v3103_v55 = vmul.f32 1.442695, %v3100_v17  ;;  %v3099_v33 = vsub.f32 %v3085_v43, %v3095_v32 }
0x21bd   :  { %v3101_v9 = vmul.f32 1.442695, %v3099_v33 }
0x21be   :  { %v3296_v15 = vpop.xlane.xlu0 %3295 }
0x21bf   :  { %v3300_v51 = vsub.f32 %v3286_v27, %v3296_v15 }
0x21c1   :  { %v3302_v25 = vmul.f32 1.442695, %v3300_v51 }
0x21c2   :  { %v3299_v58 = vpop.xlane.xlu0 %3298 }
0x21c3   :  { %7084 = vpow2.f32 %v3302_v25  ;;  %v3301_v13 = vsub.f32 %v3291_v30, %v3299_v58 }
0x21c5   :  { %v3304_v20 = vmul.f32 1.442695, %v3301_v13 }
0x21c7   :  { %7086 = vpow2.f32 %v3304_v20 }
0x21c8   :  { %7088 = vpow2.f32 %v3103_v55 }
0x21c9   :  { %7090 = vpow2.f32 %v3101_v9 }
0x21d0   :  { %v7085_v53 = vpop.eup %7084 }
0x21d1   :  { %v3306_v4 = vsel %vm2688_vm10, %v7085_v53, 0.0 }
0x21d2   :  { %3307 = vadd.xlane.f32.xlu1 %v3306_v4 }
0x21d4   :  { %v7087_v41 = vpop.eup %7086 }
0x21d5   :  { %v3309_v49 = vsel %vm2692_vm9, %v7087_v41, 0.0  ;;  %v7089_v19 = vpop.eup %7088 }
0x21d6   :  { %3310 = vadd.xlane.f32.xlu0 %v3309_v49  ;;  %v3108_v7 = vsel %vm2692_vm9, %v7089_v19, 0.0  ;;  %v7091_v2 = vpop.eup %7090 }
0x21d7   :  { %v3105_v36 = vsel %vm2688_vm10, %v7091_v2, 0.0 }
0x21da   :  { %3109 = vadd.xlane.f32.xlu0 %v3108_v7 }
0x21e3   :  { %3117 = vrot.lane.b32.xlu1 %v8437_v62, %s7280_s11 }
0x21e7   :  { %3318 = vrot.lane.b32.xlu1 %v8437_v62, %s7281_s12 }
0x21f0   :  { %3115 = vrot.lane.b32.xlu0 %v8439_v35, %s7280_s11 }
0x21f4   :  { %3406 = vrot.lane.b32.xlu0 %v2993_v46, %s7266_s22 }
0x220b   :  { %3106 = vadd.xlane.f32.xlu1 %v3105_v36 }
0x221c   :  { %3316 = vrot.lane.b32.xlu1 %v8439_v35, %s7281_s12 }
0x2220   :  { %3408 = vrot.lane.b32.xlu1 %v6535_v40, %s7266_s22 }
0x225b   :  { %v3308_v14 = vpop.xlane.xlu1 %3307 }
0x225c   :  { %7092 = vrcp.f32 %v3308_v14 }
0x225f   :  { %v3311_v16 = vpop.xlane.xlu0 %3310  ;;  %v3118_v62 = vpop.permute.xlu1 %3117 }
0x2260   :  { %6543 = vmatprep.subr.msk.mxu0 %vm2723_vm11, %v3118_v62 }
0x2261   :  { %6544 = vmatpush3.msk.msra.mxu0 %vm2723_vm11, %v3118_v62 }
0x2263   :  { %v3110_v37 = vpop.xlane.xlu0 %3109  ;;  %v3319_v1 = vpop.permute.xlu1 %3318 }
0x2264   :  { %7094 = vrcp.f32 %v3110_v37 }
0x2267   :  { %v3116_v57 = vpop.permute.xlu0 %3115 }
0x2268   :  { %6545 = vmatprep.subr.mxu0 %v3116_v57 }
0x2269   :  { %6546 = vmatpush3.msra.mxu0 %v3116_v57  ;;  %v7093_v35 = vpop.eup %7092  ;;  %v3589_v57 = vsub.s32 3, %v7404_v21 }
0x226a   :  { %6557 = vmatprep.subr.msk.mxu0 %vm2723_vm11, %v3319_v1  ;;  %v3314_v3 = vmul.f32 %v7093_v35, %v7085_v53 }
0x226b   :  { %v3407_v0 = vpop.permute.xlu0 %3406 }
0x226c   :  { %v3428_v31 = vsel %vm2604_vm8, %v8535_v6, %v3407_v0  ;;  %v8594_v6 = vsub.s32 1, %v7404_v21 }
0x226e   :  { %v3520_v15 = vrot.slane %v8433_v60, %v8594_v6 }
0x2271   :  { %v7095_v56 = vpop.eup %7094 }
0x2272   :  { %v3114_v12 = vmul.f32 %v7095_v56, %v7089_v19  ;;  %v2491_v56 = vld [vmem:[%s9040_s3 + $0x58] sm:$0xff] }
0x2273   :  { %6575 = vmatprep.subr.mxu1 %v2491_v56 }
0x2274   :  { %6576 = vmatpush3.msra.mxu1 %v2491_v56 }
0x2294   :  { %v3107_v10 = vpop.xlane.xlu1 %3106 }
0x2295   :  { %7096 = vrcp.f32 %v3107_v10  ;;  %v3579_v10 = vsub.s32 2, %v7404_v21 }
0x2296   :  { %7098 = vrcp.f32 %v3311_v16 }
0x2297   :  { %v3580_v35 = vrot.slane %v8433_v60, %v3579_v10 }
0x2298   :  { %v3317_v18 = vpop.permute.xlu1 %3316 }
0x229c   :  { %v3409_v29 = vpop.permute.xlu1 %3408 }
0x229d   :  { %v3429_v45 = vsel %vm2604_vm8, %v8533_v42, %v3409_v29  ;;  %v2504_v29 = vld [vmem:[%s9040_s3 + $0xc0] sm:$0xff] }
0x22a2   :  { %v7097_v48 = vpop.eup %7096 }
0x22a3   :  { %v3113_v34 = vmul.f32 %v7097_v48, %v7091_v2  ;;  %v7099_v63 = vpop.eup %7098  ;;  %v2490_v48 = vld [vmem:[%s9040_s3 + $0x50] sm:$0xff] }
0x22a4   :  { %v3315_v11 = vmul.f32 %v7099_v63, %v7087_v41  ;;  %6577 = vmatprep.subr.mxu1 %v2490_v48 }
0x22a5   :  { %6547 = vmatprep.mubr.msk.f32.mxu0 %vm2688_vm10, %v3113_v34  ;;  %v2489_v34 = vld [vmem:[%s9040_s3 + $0x48] sm:$0xff]  ;;  %6578 = vmatpush3.msra.mxu1 %v2490_v48 }
0x22a6   :  { %6548 = vmatmul.mubr.msk.f32.vlgmr.msra.gmra.mxu0 %vm2688_vm10, %v3114_v12  ;;  %6579 = vmatprep.subr.mxu1 %v2489_v34 }
0x22a7   :  { %6558 = vmatpush3.msk.msra.mxu0 %vm2723_vm11, %v3319_v1  ;;  %6561 = vmatprep.mubr.msk.f32.mxu0 %vm2688_vm10, %v3314_v3  ;;  %v3590_v1 = vrot.slane %v8433_v60, %v3589_v57 }
0x22a8   :  { %6559 = vmatprep.subr.mxu0 %v3317_v18  ;;  %6580 = vmatpush3.msra.mxu1 %v2489_v34 }
0x22a9   :  { %6560 = vmatpush3.msra.mxu0 %v3317_v18 }
0x22aa   :  { %6562 = vmatmul.mubr.msk.f32.vlgmr.msra.gmra.mxu0 %vm2688_vm10, %v3315_v11  ;;  %6564 = vmatprep.subr.mxu0 %v2487_v5 }
0x22ab   :  { %6565 = vmatpush3.msra.mxu0 %v2487_v5 }
0x22ac   :  { %6566 = vmatprep.subr.mxu0 %v2486_v8 }
0x22ad   :  { %6567 = vmatpush3.msra.mxu0 %v2486_v8  ;;  %v2488_v8 = vld [vmem:[%s9040_s3 + $0x40] sm:$0xff] }
0x22ae   :  { %6568 = vmatprep.subr.mxu0 %v2485_v59  ;;  %6581 = vmatprep.subr.mxu1 %v2488_v8 }
0x22af   :  { %6569 = vmatpush3.msra.mxu0 %v2485_v59  ;;  %6582 = vmatpush3.msra.mxu1 %v2488_v8  ;;  %v2507_v59 = vld [vmem:[%s9040_s3 + $0xd8] sm:$0xff] }
0x22b0   :  { %6570 = vmatprep.subr.mxu0 %v2484_v22 }
0x22b1   :  { %6571 = vmatpush3.msra.mxu0 %v2484_v22  ;;  %v2506_v22 = vld [vmem:[%s9040_s3 + $0xd0] sm:$0xff] }
0x22b2   :  { %6586 = vmatprep.subr.mxu0 %v2507_v59 }
0x2366   :  { %v6549_v40 = vpop.f32.mrf.mxu0 }
0x2367   :  { %3416 = vrot.lane.b32.xlu1 %v6549_v40, %s7282_s20  ;;  %v2505_v40 = vld [vmem:[%s9040_s3 + $0xc8] sm:$0xff] }
0x2368   :  { %v3194_v39 = vpop.f32.mrf.mxu0 }
0x2369   :  { %3414 = vrot.lane.b32.xlu0 %v3194_v39, %s7282_s20 }
0x236a   :  { %v6563_v46 = vpop.f32.mrf.mxu0 }
0x236b   :  { %3424 = vrot.lane.b32.xlu1 %v6563_v46, %s7283_s21 }
0x236c   :  { %v3395_v44 = vpop.f32.mrf.mxu0 }
0x236d   :  { %3422 = vrot.lane.b32.xlu0 %v3395_v44, %s7283_s21 }
0x23d9   :  { %v3417_v26 = vpop.permute.xlu1 %3416 }
0x23da   :  { %v3432_v24 = vsel %vm3430_vm12, %v3429_v45, %v3417_v26 }
0x23db   :  { %v3415_v43 = vpop.permute.xlu0 %3414 }
0x23dc   :  { %v3431_v30 = vsel %vm3430_vm12, %v3428_v31, %v3415_v43 }
0x23dd   :  { %v3425_v27 = vpop.permute.xlu1 %3424 }
0x23de   :  { %v3435_v28 = vsel %vm3433_vm13, %v3432_v24, %v3425_v27  ;;  %v2503_v27 = vld [vmem:[%s9040_s3 + $0xb8] sm:$0xff] }
0x23df   :  { %v3423_v47 = vpop.permute.xlu0 %3422 }
0x23e0   :  { %v3434_v32 = vsel %vm3433_vm13, %v3431_v30, %v3423_v47  ;;  %v2502_v47 = vld [vmem:[%s9040_s3 + $0xb0] sm:$0xff] }
0x23e1   :  { %6572 = vmatprep.mubr.msk.f32.mxu0 %vm103_vm0, %v3434_v32  ;;  %v2501_v32 = vld [vmem:[%s9040_s3 + $0xa8] sm:$0xff] }
0x23e2   :  { %6573 = vmatmul.mubr.msk.f32.vlgmr.msra.gmra.mxu0 %vm103_vm0, %v3435_v28  ;;  %v2500_v28 = vld [vmem:[%s9040_s3 + $0xa0] sm:$0xff] }
0x23e3   :  { %6587 = vmatpush3.msra.mxu0 %v2507_v59 }
0x23e4   :  { %6588 = vmatprep.subr.mxu0 %v2506_v22 }
0x23e5   :  { %6589 = vmatpush3.msra.mxu0 %v2506_v22 }
0x23e6   :  { %6590 = vmatprep.subr.mxu0 %v2505_v40 }
0x23e7   :  { %6591 = vmatpush3.msra.mxu0 %v2505_v40 }
0x23e8   :  { %6592 = vmatprep.subr.mxu0 %v2504_v29 }
0x23e9   :  { %6593 = vmatpush3.msra.mxu0 %v2504_v29 }
0x23ea   :  { %6594 = vmatprep.subr.mxu0 %v2503_v27 }
0x23eb   :  { %6595 = vmatpush3.msra.mxu0 %v2503_v27  ;;  %v5430_v27 = vld [vmem:[%s9040_s3 + $0x100] sm:$0xff] }
0x23ec   :  { %6596 = vmatprep.subr.mxu0 %v2502_v47  ;;  %6621 = vmatprep.subr.mxu1 %v5430_v27 }
0x23ed   :  { %6597 = vmatpush3.msra.mxu0 %v2502_v47 }
0x23ee   :  { %6598 = vmatprep.subr.mxu0 %v2501_v32 }
0x23ef   :  { %6599 = vmatpush3.msra.mxu0 %v2501_v32 }
0x23f0   :  { %6600 = vmatprep.subr.mxu0 %v2500_v28 }
0x23f1   :  { %6601 = vmatpush3.msra.mxu0 %v2500_v28 }
0x24a2   :  { %v6574_v42 = vpop.f32.mrf.mxu0 }
0x24a3   :  { %v3522_v51 = vadd.f32 %v6574_v42, %v3520_v15  ;;  %v2498_v42 = vld [vmem:[%s9040_s3 + $0x90] sm:$0xff] }
0x24a4   :  { %v3508_v17 = vpop.f32.mrf.mxu0 }
0x24a5   :  { %v3521_v25 = vadd.f32 %v3520_v15, %v3508_v17  ;;  %3527 = vrot.lane.b32.xlu1 %v3522_v51, %s7268_s4  ;;  %v2499_v15 = vld [vmem:[%s9040_s3 + $0x98] sm:$0xff]  ;;  %v2497_v51 = vld [vmem:[%s9040_s3 + $0x88] sm:$0xff]  ;;  %v2496_v17 = vld [vmem:[%s9040_s3 + $0x80] sm:$0xff] }
0x24a6   :  { %6602 = vmatprep.subr.mxu0 %v2499_v15 }
0x24a7   :  { %3525 = vrot.lane.b32.xlu0 %v3521_v25, %s7268_s4  ;;  %6603 = vmatpush3.msra.mxu0 %v2499_v15 }
0x24a8   :  { %6604 = vmatprep.subr.mxu0 %v2498_v42 }
0x24a9   :  { %6605 = vmatpush3.msra.mxu0 %v2498_v42  ;;  %v5427_v42 = vld [vmem:[%s9040_s3 + $0xe8] sm:$0xff] }
0x24aa   :  { %6606 = vmatprep.subr.mxu0 %v2497_v51 }
0x24ab   :  { %6607 = vmatpush3.msra.mxu0 %v2497_v51 }
0x24ac   :  { %6608 = vmatprep.subr.mxu0 %v2496_v17 }
0x24ad   :  { %6609 = vmatpush3.msra.mxu0 %v2496_v17 }
0x2517   :  { %v3528_v58 = vpop.permute.xlu1 %3527 }
0x2518   :  { %v3532_v13 = vadd.f32 %v3528_v58, %v8417_v50 }
0x2519   :  { %v3526_v55 = vpop.permute.xlu0 %3525 }
0x251a   :  { %v3531_v20 = vadd.f32 %v3526_v55, %v8421_v52  ;;  %3537 = vrot.lane.b32.xlu1 %v3532_v13, %s7268_s4  ;;  %v2494_v55 = vld [vmem:[%s9040_s3 + $0x70] sm:$0xff] }
0x251c   :  { %3535 = vrot.lane.b32.xlu0 %v3531_v20, %s7268_s4 }
0x258c   :  { %v3538_v53 = vpop.permute.xlu1 %3537 }
0x258d   :  { %v3545_v4 = vsel %vm3544_vm14, %v3538_v53, 0.0  ;;  %v2492_v53 = vld [vmem:[%s9040_s3 + $0x60] sm:$0xff] }
0x258e   :  { %3546 = vadd.xlane.f32.xlu1 %v3545_v4  ;;  %v3536_v41 = vpop.permute.xlu0 %3535  ;;  %v3599_v4 = vsub.s32 4, %v7404_v21 }
0x258f   :  { %v3541_v49 = vsel %vm103_vm0, %v3536_v41, 0.0 }
0x2590   :  { %3542 = vadd.xlane.f32.xlu0 %v3541_v49  ;;  %v3600_v41 = vrot.slane %v8433_v60, %v3599_v4 }
0x2617   :  { %v3547_v19 = vpop.xlane.xlu1 %3546 }
0x2618   :  { %v3550_v7 = vmul.f32 0.03125, %v3547_v19 }
0x2619   :  { %v3543_v33 = vpop.xlane.xlu0 %3542 }
0x261a   :  { %v3552_v50 = vsub.f32 %v3532_v13, %v3550_v7  ;;  %v3549_v9 = vmul.f32 0.03125, %v3543_v33  ;;  %v2495_v13 = vld [vmem:[%s9040_s3 + $0x78] sm:$0xff] }
0x261b   :  { %6610 = vmatprep.subr.mxu0 %v2495_v13 }
0x261c   :  { %v3554_v2 = vmul.f32 %v3552_v50, %v3552_v50  ;;  %v3551_v52 = vsub.f32 %v3531_v20, %v3549_v9  ;;  %6611 = vmatpush3.msra.mxu0 %v2495_v13  ;;  %v2493_v20 = vld [vmem:[%s9040_s3 + $0x68] sm:$0xff] }
0x261d   :  { %6612 = vmatprep.subr.mxu0 %v2494_v55 }
0x261e   :  { %v3553_v36 = vmul.f32 %v3551_v52, %v3551_v52  ;;  %3559 = vrot.lane.b32.xlu1 %v3554_v2, %s7268_s4  ;;  %6613 = vmatpush3.msra.mxu0 %v2494_v55  ;;  %v3765_v2 = vsub.s32 5, %v7404_v21 }
0x261f   :  { %6614 = vmatprep.subr.mxu0 %v2493_v20 }
0x2620   :  { %3557 = vrot.lane.b32.xlu0 %v3553_v36, %s7268_s4  ;;  %6615 = vmatpush3.msra.mxu0 %v2493_v20 }
0x2621   :  { %6616 = vmatprep.subr.mxu0 %v2492_v53 }
0x2622   :  { %6617 = vmatpush3.msra.mxu0 %v2492_v53 }
0x2690   :  { %v3560_v14 = vpop.permute.xlu1 %3559 }
0x2691   :  { %v3566_v16 = vsel %vm3544_vm14, %v3560_v14, 0.0 }
0x2692   :  { %3567 = vadd.xlane.f32.xlu1 %v3566_v16  ;;  %v3558_v62 = vpop.permute.xlu0 %3557 }
0x2693   :  { %v3563_v37 = vsel %vm103_vm0, %v3558_v62, 0.0 }
0x2694   :  { %3564 = vadd.xlane.f32.xlu0 %v3563_v37 }
0x26a3   :  { %3592 = vrot.lane.b32.xlu1 %v3590_v1, %s7268_s4 }
0x26aa   :  { %3582 = vrot.lane.b32.xlu0 %v3580_v35, %s7268_s4 }
0x271b   :  { %v3568_v12 = vpop.xlane.xlu1 %3567 }
0x271c   :  { %v3570_v63 = vmul.f32 0.03125, %v3568_v12 }
0x271d   :  { %v3565_v3 = vpop.xlane.xlu0 %3564 }
0x271e   :  { %v3572_v18 = vadd.f32 1e-05, %v3570_v63  ;;  %v3569_v11 = vmul.f32 0.03125, %v3565_v3 }
0x271f   :  { %v3593_v26 = vpop.permute.xlu1 %3592 }
0x2720   :  { %7100 = vrsqrt.f32 %v3572_v18  ;;  %v3571_v5 = vadd.f32 1e-05, %v3569_v11 }
0x2721   :  { %v3583_v46 = vpop.permute.xlu0 %3582 }
0x2722   :  { %7102 = vrsqrt.f32 %v3571_v5 }
0x272d   :  { %v7101_v39 = vpop.eup %7100 }
0x272e   :  { %v3576_v44 = vmul.f32 %v7101_v39, %v3552_v50 }
0x272f   :  { %v7103_v0 = vpop.eup %7102 }
0x2730   :  { %v3575_v43 = vmul.f32 %v7103_v0, %v3551_v52  ;;  %v3586_v31 = vmul.f32 %v3583_v46, %v3576_v44  ;;  %v3766_v52 = vrot.slane %v8433_v60, %v3765_v2  ;;  %v3833_v0 = vsub.s32 7, %v7404_v21 }
0x2732   :  { %v3585_v45 = vmul.f32 %v3583_v46, %v3575_v43  ;;  %v8647_v30 = vadd.f32 %v3593_v26, %v3586_v31  ;;  %v3823_v43 = vsub.s32 6, %v7404_v21 }
0x2734   :  { %v3595_v24 = vadd.f32 %v3593_v26, %v3585_v45  ;;  %3605 = vrot.lane.b32.xlu1 %v8647_v30, %s7268_s4  ;;  %v3834_v26 = vrot.slane %v8433_v60, %v3833_v0  ;;  %v3824_v31 = vrot.slane %v8433_v60, %v3823_v43  ;;  %v5429_v45 = vld [vmem:[%s9040_s3 + $0xf8] sm:$0xff] }
0x2736   :  { %3603 = vrot.lane.b32.xlu0 %v3595_v24, %s7268_s4 }
0x27a6   :  { %v3606_v58 = vpop.permute.xlu1 %3605 }
0x27a8   :  { %v3604_v25 = vpop.permute.xlu0 %3603 }
0x27a9   :  { %6583 = vmatprep.mubr.msk.f32.mxu1 %vm103_vm0, %v3604_v25 }
0x27aa   :  { %6584 = vmatmul.mubr.msk.f32.vlgmr.msra.gmra.mxu1 %vm103_vm0, %v3606_v58 }
0x27ab   :  { %6622 = vmatpush3.msra.mxu1 %v5430_v27 }
0x27ac   :  { %6623 = vmatprep.subr.mxu1 %v5429_v45 }
0x27ad   :  { %6624 = vmatpush3.msra.mxu1 %v5429_v45 }
0x286a   :  { %v6585_v49 = vpop.f32.mrf.mxu1 }
0x286b   :  { %v3683_v19 = vadd.f32 %v6585_v49, %v3600_v41 }
0x286c   :  { %v3677_v7 = vpop.f32.mrf.mxu1 }
0x286d   :  { %v3678_v33 = vadd.f32 %v3677_v7, %v3600_v41  ;;  %v3687_v9 = vmax.f32 %v3683_v19, 0.0 }
0x286f   :  { %v3686_v50 = vmax.f32 %v3678_v33, 0.0  ;;  %v8741_v33 = vld [vmem:[%s9040_s3 + $0x1c8] sm:$0xff] }
0x2871   :  { %6618 = vmatprep.mubr.f32.mxu0 %v3686_v50  ;;  %v3874_v50 = vrot.slane %v8741_v33, %v8428_v54 }
0x2872   :  { %6619 = vmatmul.mubr.f32.vlgmr.msra.gmra.mxu0 %v3687_v9 }
0x2932   :  { %v6620_v36 = vpop.f32.mrf.mxu0 }
0x2933   :  { %v3768_v14 = vadd.f32 %v6620_v36, %v3766_v52 }
0x2934   :  { %v3754_v16 = vpop.f32.mrf.mxu0 }
0x2935   :  { %v3767_v62 = vadd.f32 %v3766_v52, %v3754_v16  ;;  %3773 = vrot.lane.b32.xlu1 %v3768_v14, %s7268_s4 }
0x2937   :  { %3771 = vrot.lane.b32.xlu0 %v3767_v62, %s7268_s4 }
0x29a7   :  { %v3774_v37 = vpop.permute.xlu1 %3773 }
0x29a8   :  { %v3778_v1 = vadd.f32 %v3774_v37, %v8647_v30  ;;  %v5428_v30 = vld [vmem:[%s9040_s3 + $0xf0] sm:$0xff] }
0x29a9   :  { %v3772_v35 = vpop.permute.xlu0 %3771  ;;  %6625 = vmatprep.subr.mxu1 %v5428_v30 }
0x29aa   :  { %v3777_v56 = vadd.f32 %v3772_v35, %v3595_v24  ;;  %3783 = vrot.lane.b32.xlu1 %v3778_v1, %s7268_s4  ;;  %6626 = vmatpush3.msra.mxu1 %v5428_v30 }
0x29ab   :  { %6627 = vmatprep.subr.mxu1 %v5427_v42 }
0x29ac   :  { %3781 = vrot.lane.b32.xlu0 %v3777_v56, %s7268_s4  ;;  %6628 = vmatpush3.msra.mxu1 %v5427_v42 }
0x2a1c   :  { %v3784_v48 = vpop.permute.xlu1 %3783 }
0x2a1d   :  { %v3790_v34 = vsel %vm3544_vm14, %v3784_v48, 0.0 }
0x2a1e   :  { %3791 = vadd.xlane.f32.xlu1 %v3790_v34  ;;  %v3782_v12 = vpop.permute.xlu0 %3781 }
0x2a1f   :  { %v3787_v63 = vsel %vm103_vm0, %v3782_v12, 0.0 }
0x2a20   :  { %3788 = vadd.xlane.f32.xlu0 %v3787_v63 }
0x2aa7   :  { %v3792_v3 = vpop.xlane.xlu1 %3791 }
0x2aa8   :  { %v3794_v18 = vmul.f32 0.03125, %v3792_v3 }
0x2aa9   :  { %v3789_v11 = vpop.xlane.xlu0 %3788 }
0x2aaa   :  { %v3796_v5 = vsub.f32 %v3778_v1, %v3794_v18  ;;  %v3793_v8 = vmul.f32 0.03125, %v3789_v11 }
0x2aac   :  { %v3798_v59 = vmul.f32 %v3796_v5, %v3796_v5  ;;  %v3795_v22 = vsub.f32 %v3777_v56, %v3793_v8 }
0x2aae   :  { %v3797_v40 = vmul.f32 %v3795_v22, %v3795_v22  ;;  %3803 = vrot.lane.b32.xlu1 %v3798_v59, %s7268_s4 }
0x2ab0   :  { %3801 = vrot.lane.b32.xlu0 %v3797_v40, %s7268_s4 }
0x2b20   :  { %v3804_v39 = vpop.permute.xlu1 %3803 }
0x2b21   :  { %v3810_v46 = vsel %vm3544_vm14, %v3804_v39, 0.0 }
0x2b22   :  { %3811 = vadd.xlane.f32.xlu1 %v3810_v46  ;;  %v3802_v44 = vpop.permute.xlu0 %3801 }
0x2b23   :  { %v3807_v29 = vsel %vm103_vm0, %v3802_v44, 0.0 }
0x2b24   :  { %3808 = vadd.xlane.f32.xlu0 %v3807_v29 }
0x2b33   :  { %3836 = vrot.lane.b32.xlu1 %v3834_v26, %s7268_s4 }
0x2b3a   :  { %3826 = vrot.lane.b32.xlu0 %v3824_v31, %s7268_s4 }
0x2bab   :  { %v3812_v60 = vpop.xlane.xlu1 %3811 }
0x2bac   :  { %v3814_v47 = vmul.f32 0.03125, %v3812_v60 }
0x2bad   :  { %v3809_v24 = vpop.xlane.xlu0 %3808 }
0x2bae   :  { %v3816_v32 = vadd.f32 1e-05, %v3814_v47  ;;  %v3813_v28 = vmul.f32 0.03125, %v3809_v24 }
0x2baf   :  { %v3837_v13 = vpop.permute.xlu1 %3836 }
0x2bb0   :  { %7104 = vrsqrt.f32 %v3816_v32  ;;  %v3815_v15 = vadd.f32 1e-05, %v3813_v28 }
0x2bb1   :  { %v3827_v17 = vpop.permute.xlu0 %3826 }
0x2bb2   :  { %7106 = vrsqrt.f32 %v3815_v15 }
0x2bbd   :  { %v7105_v51 = vpop.eup %7104 }
0x2bbe   :  { %v3820_v25 = vmul.f32 %v7105_v51, %v3796_v5 }
0x2bbf   :  { %v7107_v58 = vpop.eup %7106 }
0x2bc0   :  { %v3819_v55 = vmul.f32 %v7107_v58, %v3795_v22  ;;  %v3830_v20 = vmul.f32 %v3827_v17, %v3820_v25  ;;  %v8810_v25 = vld [vmem:[%s9038_s1 + $0x8] sm:$0x3] }
0x2bc2   :  { %v3829_v53 = vmul.f32 %v3827_v17, %v3819_v55  ;;  %v8728_v41 = vadd.f32 %v3837_v13, %v3830_v20  ;;  %v8816_v20 = vld [vmem:[%s9038_s1] sm:$0xff] }
0x2bc4   :  { %v8730_v49 = vadd.f32 %v3837_v13, %v3829_v53  ;;  %3879 = vrot.lane.b32.xlu1 %v8728_v41, %s7268_s4 }
0x2bc6   :  { %3877 = vrot.lane.b32.xlu0 %v8730_v49, %s7268_s4 }
0x2c36   :  { %v3880_v7 = vpop.permute.xlu1 %3879 }
0x2c38   :  { %v3878_v19 = vpop.permute.xlu0 %3877 }
0x2c39   :  { %6629 = vmatprep.mubr.msk.f32.mxu1 %vm103_vm0, %v3878_v19 }
0x2c3a   :  { %6630 = vmatmul.mubr.msk.f32.vlgmr.msra.gmra.mxu1 %vm103_vm0, %v3880_v7 }
0x2cfa   :  { %v6631_v9 = vpop.f32.mrf.mxu1 }
0x2cfb   :  { %v8745_v52 = vadd.f32 %v6631_v9, %v3874_v50 }
0x2cfc   :  { %v3951_v36 = vpop.f32.mrf.mxu1 }
0x2cfd   :  { %v8747_v14 = vadd.f32 %v3951_v36, %v3874_v50  ;;  %3964 = vrot.lane.b32.xlu0 %v8745_v52, %s7272_s9 }
0x2cff   :  { %3962 = vrot.lane.b32.xlu1 %v8747_v14, %s7272_s9  ;;  %6636 = vmatprep.mubr.msk.f32.mxu1 %vm2604_vm8, %v8747_v14 }
0x2d6f   :  { %v3965_v16 = vpop.permute.xlu0 %3964 }
0x2d70   :  { %6632 = vmatprep.subr.msk.mxu1 %vm2604_vm8, %v3965_v16 }
0x2d71   :  { %6633 = vmatpush3.xpose.msk.msra.mxu1 %vm2604_vm8, %v3965_v16  ;;  %v3963_v62 = vpop.permute.xlu1 %3962 }
0x2d72   :  { %6634 = vmatprep.subr.msk.mxu1 %vm2604_vm8, %v3963_v62 }
0x2d75   :  { %6635 = vmatpush3.xpose.msk.msra.mxu1 %vm2604_vm8, %v3963_v62 }
0x2d78   :  { %6637 = vmatmul.mubr.msk.f32.vlgmr.msra.gmra.mxu1 %vm2604_vm8, %v8745_v52 }
0x2e38   :  { %v6638_v37 = vpop.f32.mrf.mxu1 }
0x2e39   :  { %v4046_v1 = vadd.f32 %v6638_v37, %v8470_v38 }
0x2e3a   :  { %v4040_v35 = vpop.f32.mrf.mxu1 }
0x2e3b   :  { %v4041_v56 = vadd.f32 %v4040_v35, %v8475_v61  ;;  %v4052_v48 = vsel %vm2692_vm9, %v4046_v1, -inf }
0x2e3c   :  { %4053 = vmax.xlane.f32.xlu1 %v4052_v48 }
0x2e3d   :  { %v4049_v34 = vsel %vm2688_vm10, %v4041_v56, -inf }
0x2e3e   :  { %4050 = vmax.xlane.f32.xlu0 %v4049_v34 }
0x2e4d   :  { %4073 = vrot.lane.b32.xlu1 %v8745_v52, %s7268_s4 }
0x2e51   :  { %4165 = vrot.lane.b32.xlu1 %v8745_v52, %s7273_s24 }
0x2e54   :  { %4071 = vrot.lane.b32.xlu0 %v8747_v14, %s7268_s4 }
0x2e55   :  { %4163 = vrot.lane.b32.xlu1 %v8747_v14, %s7273_s24 }
0x2e59   :  { %4159 = vrot.lane.b32.xlu1 %v8747_v14, %s7274_s25 }
0x2e5d   :  { %4364 = vrot.lane.b32.xlu1 %v8747_v14, %s7276_s30 }
0x2e61   :  { %4362 = vrot.lane.b32.xlu1 %v8745_v52, %s7277_s6 }
0x2ec5   :  { %v4054_v38 = vpop.xlane.xlu1 %4053 }
0x2ec6   :  { %v4056_v61 = vsub.f32 %v4046_v1, %v4054_v38 }
0x2ec7   :  { %v4051_v12 = vpop.xlane.xlu0 %4050 }
0x2ec8   :  { %v4059_v63 = vmul.f32 1.442695, %v4056_v61  ;;  %v4055_v3 = vsub.f32 %v4041_v56, %v4051_v12 }
0x2ec9   :  { %v4074_v18 = vpop.permute.xlu1 %4073 }
0x2eca   :  { %7108 = vpow2.f32 %v4059_v63  ;;  %v4057_v11 = vmul.f32 1.442695, %v4055_v3  ;;  %6639 = vmatprep.subr.msk.mxu1 %vm2723_vm11, %v4074_v18 }
0x2ecb   :  { %6640 = vmatpush3.msk.msra.mxu1 %vm2723_vm11, %v4074_v18  ;;  %v4072_v5 = vpop.permute.xlu0 %4071 }
0x2ecc   :  { %7110 = vpow2.f32 %v4057_v11  ;;  %6641 = vmatprep.subr.mxu1 %v4072_v5 }
0x2ecd   :  { %v4166_v8 = vpop.permute.xlu1 %4165  ;;  %6642 = vmatpush3.msra.mxu1 %v4072_v5 }
0x2ece   :  { %6646 = vmatprep.subr.msk.mxu1 %vm2604_vm8, %v4166_v8 }
0x2ed1   :  { %v4164_v46 = vpop.permute.xlu1 %4163 }
0x2ed5   :  { %v4160_v29 = vpop.permute.xlu1 %4159 }
0x2ed7   :  { %v7109_v59 = vpop.eup %7108 }
0x2ed8   :  { %v4064_v22 = vsel %vm2692_vm9, %v7109_v59, 0.0 }
0x2ed9   :  { %v7111_v40 = vpop.eup %7110  ;;  %4065 = vadd.xlane.f32.xlu0 %v4064_v22  ;;  %v4365_v27 = vpop.permute.xlu1 %4364 }
0x2eda   :  { %v4061_v39 = vsel %vm2688_vm10, %v7111_v40, 0.0 }
0x2edd   :  { %4062 = vadd.xlane.f32.xlu0 %v4061_v39  ;;  %v4363_v47 = vpop.permute.xlu1 %4362 }
0x2ef3   :  { %4366 = vrot.lane.b32.xlu0 %v8745_v52, %s7276_s30 }
0x2ef7   :  { %4161 = vrot.lane.b32.xlu0 %v8745_v52, %s7274_s25 }
0x2efb   :  { %4360 = vrot.lane.b32.xlu0 %v8747_v14, %s7277_s6 }
0x2f62   :  { %v4066_v44 = vpop.xlane.xlu0 %4065 }
0x2f63   :  { %7112 = vrcp.f32 %v4066_v44 }
0x2f66   :  { %v4063_v26 = vpop.xlane.xlu0 %4062 }
0x2f67   :  { %7114 = vrcp.f32 %v4063_v26 }
0x2f6a   :  { %v4367_v31 = vpop.permute.xlu0 %4366 }
0x2f6b   :  { %6660 = vmatprep.subr.msk.mxu0 %vm2604_vm8, %v4367_v31 }
0x2f6c   :  { %6661 = vmatpush3.xpose.msk.msra.mxu0 %vm2604_vm8, %v4367_v31 }
0x2f6d   :  { %6662 = vmatprep.subr.msk.mxu0 %vm2604_vm8, %v4365_v27 }
0x2f6e   :  { %v4162_v45 = vpop.permute.xlu0 %4161 }
0x2f70   :  { %6663 = vmatpush3.xpose.msk.msra.mxu0 %vm2604_vm8, %v4365_v27  ;;  %v7113_v60 = vpop.eup %7112 }
0x2f71   :  { %v4070_v28 = vmul.f32 %v7113_v60, %v7109_v59 }
0x2f72   :  { %v4361_v30 = vpop.permute.xlu0 %4360 }
0x2f73   :  { %6664 = vmatprep.mubr.msk.f32.mxu0 %vm2604_vm8, %v4361_v30 }
0x2f74   :  { %v7115_v24 = vpop.eup %7114  ;;  %6665 = vmatmul.mubr.msk.f32.vlgmr.msra.gmra.mxu0 %vm2604_vm8, %v4363_v47 }
0x2f75   :  { %v4069_v32 = vmul.f32 %v7115_v24, %v7111_v40 }
0x2f77   :  { %6643 = vmatprep.mubr.msk.f32.mxu1 %vm2688_vm10, %v4069_v32 }
0x2f78   :  { %6644 = vmatmul.mubr.msk.f32.vlgmr.msra.gmra.mxu1 %vm2688_vm10, %v4070_v28 }
0x2f79   :  { %6647 = vmatpush3.xpose.msk.msra.mxu1 %vm2604_vm8, %v4166_v8  ;;  %6650 = vmatprep.mubr.msk.f32.mxu1 %vm2604_vm8, %v4160_v29 }
0x2f7a   :  { %6648 = vmatprep.subr.msk.mxu1 %vm2604_vm8, %v4164_v46 }
0x2f7d   :  { %6649 = vmatpush3.xpose.msk.msra.mxu1 %vm2604_vm8, %v4164_v46 }
0x2f80   :  { %6651 = vmatmul.mubr.msk.f32.vlgmr.msra.gmra.mxu1 %vm2604_vm8, %v4162_v45 }
0x3034   :  { %v6666_v42 = vpop.f32.mrf.mxu0 }
0x3035   :  { %v4448_v9 = vadd.f32 %v8810_v25, %v6666_v42 }
0x3036   :  { %v4442_v13 = vpop.f32.mrf.mxu0 }
0x3037   :  { %v4443_v7 = vadd.f32 %v8816_v20, %v4442_v13  ;;  %v4454_v16 = vsel %vm2692_vm9, %v4448_v9, -inf }
0x3038   :  { %v8803_v15 = vpop.f32.mrf.mxu1 }
0x3039   :  { %v4451_v36 = vsel %vm2688_vm10, %v4443_v7, -inf }
0x303a   :  { %v8805_v51 = vpop.f32.mrf.mxu1 }
0x3040   :  { %v6652_v17 = vpop.f32.mrf.mxu1 }
0x3041   :  { %v4247_v58 = vadd.f32 %v8810_v25, %v6652_v17 }
0x3042   :  { %v4241_v55 = vpop.f32.mrf.mxu1 }
0x3043   :  { %v4242_v53 = vadd.f32 %v8816_v20, %v4241_v55  ;;  %v4253_v19 = vsel %vm2692_vm9, %v4247_v58, -inf }
0x3044   :  { %4254 = vmax.xlane.f32.xlu1 %v4253_v19 }
0x3045   :  { %v4250_v50 = vsel %vm2688_vm10, %v4242_v53, -inf }
0x3046   :  { %4251 = vmax.xlane.f32.xlu0 %v4250_v50 }
0x304a   :  { %4452 = vmax.xlane.f32.xlu0 %v4451_v36 }
0x304e   :  { %4455 = vmax.xlane.f32.xlu0 %v4454_v16 }
0x30cd   :  { %v4255_v3 = vpop.xlane.xlu1 %4254 }
0x30ce   :  { %v4257_v18 = vsub.f32 %v4247_v58, %v4255_v3 }
0x30cf   :  { %v4252_v62 = vpop.xlane.xlu0 %4251 }
0x30d0   :  { %v4260_v11 = vmul.f32 1.442695, %v4257_v18  ;;  %v4256_v5 = vsub.f32 %v4242_v53, %v4252_v62 }
0x30d2   :  { %v4258_v8 = vmul.f32 1.442695, %v4256_v5 }
0x30d3   :  { %v4453_v37 = vpop.xlane.xlu0 %4452 }
0x30d4   :  { %v4457_v1 = vsub.f32 %v4443_v7, %v4453_v37 }
0x30d6   :  { %v4459_v35 = vmul.f32 1.442695, %v4457_v1 }
0x30d7   :  { %v4456_v56 = vpop.xlane.xlu0 %4455 }
0x30d8   :  { %7116 = vpow2.f32 %v4459_v35  ;;  %v4458_v48 = vsub.f32 %v4448_v9, %v4456_v56 }
0x30da   :  { %v4461_v34 = vmul.f32 1.442695, %v4458_v48 }
0x30dc   :  { %7118 = vpow2.f32 %v4461_v34 }
0x30dd   :  { %7120 = vpow2.f32 %v4260_v11 }
0x30de   :  { %7122 = vpow2.f32 %v4258_v8 }
0x30e5   :  { %v7117_v38 = vpop.eup %7116 }
0x30e6   :  { %v4463_v61 = vsel %vm2688_vm10, %v7117_v38, 0.0 }
0x30e7   :  { %4464 = vadd.xlane.f32.xlu1 %v4463_v61 }
0x30e9   :  { %v7119_v12 = vpop.eup %7118 }
0x30ea   :  { %v4466_v63 = vsel %vm2692_vm9, %v7119_v12, 0.0  ;;  %v7121_v59 = vpop.eup %7120 }
0x30eb   :  { %4467 = vadd.xlane.f32.xlu0 %v4466_v63  ;;  %v4265_v22 = vsel %vm2692_vm9, %v7121_v59, 0.0  ;;  %v7123_v40 = vpop.eup %7122 }
0x30ec   :  { %v4262_v39 = vsel %vm2688_vm10, %v7123_v40, 0.0 }
0x30f8   :  { %4274 = vrot.lane.b32.xlu1 %v8745_v52, %s7275_s2 }
0x30fc   :  { %4475 = vrot.lane.b32.xlu1 %v8745_v52, %s7280_s11 }
0x3100   :  { %4473 = vrot.lane.b32.xlu1 %v8747_v14, %s7280_s11 }
0x3101   :  { %4272 = vrot.lane.b32.xlu0 %v8747_v14, %s7275_s2 }
0x3120   :  { %4266 = vadd.xlane.f32.xlu0 %v4265_v22 }
0x3124   :  { %4263 = vadd.xlane.f32.xlu1 %v4262_v39 }
0x3135   :  { %4565 = vrot.lane.b32.xlu1 %v8747_v14, %s7278_s7 }
0x3136   :  { %4567 = vrot.lane.b32.xlu0 %v8745_v52, %s7278_s7 }
0x3139   :  { %4563 = vrot.lane.b32.xlu1 %v8745_v52, %s7279_s10 }
0x313a   :  { %4561 = vrot.lane.b32.xlu0 %v8747_v14, %s7279_s10 }
0x3170   :  { %v4465_v46 = vpop.xlane.xlu1 %4464 }
0x3171   :  { %7124 = vrcp.f32 %v4465_v46  ;;  %v5433_v46 = vld [vmem:[%s9040_s3 + $0x118] sm:$0xff] }
0x3174   :  { %v4275_v44 = vpop.permute.xlu1 %4274  ;;  %v4468_v29 = vpop.xlane.xlu0 %4467 }
0x3175   :  { %6653 = vmatprep.subr.msk.mxu1 %vm2723_vm11, %v4275_v44 }
0x3176   :  { %6654 = vmatpush3.msk.msra.mxu1 %vm2723_vm11, %v4275_v44  ;;  %v5432_v44 = vld [vmem:[%s9040_s3 + $0x110] sm:$0xff] }
0x3178   :  { %v4273_v26 = vpop.permute.xlu0 %4272  ;;  %v4476_v31 = vpop.permute.xlu1 %4475 }
0x3179   :  { %6655 = vmatprep.subr.mxu1 %v4273_v26 }
0x317a   :  { %6656 = vmatpush3.msra.mxu1 %v4273_v26 }
0x317b   :  { %6667 = vmatprep.subr.msk.mxu1 %vm2723_vm11, %v4476_v31 }
0x317c   :  { %v4474_v27 = vpop.permute.xlu1 %4473 }
0x317e   :  { %v7125_v60 = vpop.eup %7124 }
0x317f   :  { %v4471_v58 = vmul.f32 %v7125_v60, %v7117_v38 }
0x31a9   :  { %v4267_v45 = vpop.xlane.xlu0 %4266 }
0x31aa   :  { %7126 = vrcp.f32 %v4267_v45 }
0x31ad   :  { %v4264_v30 = vpop.xlane.xlu1 %4263  ;;  %v4568_v28 = vpop.permute.xlu0 %4567 }
0x31ae   :  { %7128 = vrcp.f32 %v4264_v30 }
0x31af   :  { %7130 = vrcp.f32 %v4468_v29  ;;  %v5431_v29 = vld [vmem:[%s9040_s3 + $0x108] sm:$0xff] }
0x31b1   :  { %v4562_v55 = vpop.permute.xlu0 %4561  ;;  %v4566_v53 = vpop.permute.xlu1 %4565 }
0x31b5   :  { %v4564_v19 = vpop.permute.xlu1 %4563 }
0x31b7   :  { %v7127_v47 = vpop.eup %7126 }
0x31b8   :  { %v4271_v42 = vmul.f32 %v7127_v47, %v7121_v59 }
0x31bb   :  { %v7129_v24 = vpop.eup %7128 }
0x31bc   :  { %v4270_v32 = vmul.f32 %v7129_v24, %v7123_v40  ;;  %v7131_v17 = vpop.eup %7130 }
0x31bd   :  { %v4472_v13 = vmul.f32 %v7131_v17, %v7119_v12 }
0x31be   :  { %6657 = vmatprep.mubr.msk.f32.mxu1 %vm2688_vm10, %v4270_v32 }
0x31bf   :  { %6658 = vmatmul.mubr.msk.f32.vlgmr.msra.gmra.mxu1 %vm2688_vm10, %v4271_v42 }
0x31c0   :  { %6668 = vmatpush3.msk.msra.mxu1 %vm2723_vm11, %v4476_v31  ;;  %6671 = vmatprep.mubr.msk.f32.mxu1 %vm2688_vm10, %v4471_v58 }
0x31c1   :  { %6669 = vmatprep.subr.mxu1 %v4474_v27 }
0x31c2   :  { %6670 = vmatpush3.msra.mxu1 %v4474_v27 }
0x31c3   :  { %6674 = vmatprep.subr.msk.mxu1 %vm2604_vm8, %v4568_v28  ;;  %6672 = vmatmul.mubr.msk.f32.vlgmr.msra.gmra.mxu1 %vm2688_vm10, %v4472_v13 }
0x31c4   :  { %6675 = vmatpush3.xpose.msk.msra.mxu1 %vm2604_vm8, %v4568_v28  ;;  %6678 = vmatprep.mubr.msk.f32.mxu1 %vm2604_vm8, %v4562_v55 }
0x31c5   :  { %6676 = vmatprep.subr.msk.mxu1 %vm2604_vm8, %v4566_v53 }
0x31c8   :  { %6677 = vmatpush3.xpose.msk.msra.mxu1 %vm2604_vm8, %v4566_v53 }
0x31cb   :  { %6679 = vmatmul.mubr.msk.f32.vlgmr.msra.gmra.mxu1 %vm2604_vm8, %v4564_v19 }
0x327f   :  { %v6659_v7 = vpop.f32.mrf.mxu1 }
0x3281   :  { %v4351_v50 = vpop.f32.mrf.mxu1 }
0x3283   :  { %v6673_v9 = vpop.f32.mrf.mxu1 }
0x3285   :  { %v4552_v36 = vpop.f32.mrf.mxu1 }
0x328b   :  { %v6680_v16 = vpop.f32.mrf.mxu1 }
0x328c   :  { %v4649_v62 = vadd.f32 %v8810_v25, %v6680_v16 }
0x328d   :  { %v4643_v37 = vpop.f32.mrf.mxu1 }
0x328e   :  { %v4644_v1 = vadd.f32 %v8816_v20, %v4643_v37  ;;  %v4655_v35 = vsel %vm2692_vm9, %v4649_v62, -inf }
0x328f   :  { %4656 = vmax.xlane.f32.xlu1 %v4655_v35 }
0x3290   :  { %v4652_v56 = vsel %vm2688_vm10, %v4644_v1, -inf }
0x3291   :  { %4653 = vmax.xlane.f32.xlu0 %v4652_v56 }
0x32a0   :  { %4676 = vrot.lane.b32.xlu1 %v8745_v52, %s7281_s12 }
0x32a4   :  { %4764 = vrot.lane.b32.xlu1 %v4351_v50, %s7266_s22 }
0x32a8   :  { %4766 = vrot.lane.b32.xlu1 %v6659_v7, %s7266_s22 }
0x32ac   :  { %4774 = vrot.lane.b32.xlu1 %v6673_v9, %s7282_s20 }
0x3318   :  { %v4657_v48 = vpop.xlane.xlu1 %4656 }
0x3319   :  { %v4659_v25 = vsub.f32 %v4649_v62, %v4657_v48 }
0x331a   :  { %v4654_v34 = vpop.xlane.xlu0 %4653 }
0x331b   :  { %v4662_v38 = vmul.f32 1.442695, %v4659_v25  ;;  %v4658_v20 = vsub.f32 %v4644_v1, %v4654_v34 }
0x331c   :  { %v4677_v61 = vpop.permute.xlu1 %4676 }
0x331d   :  { %7132 = vpow2.f32 %v4662_v38  ;;  %v4660_v12 = vmul.f32 1.442695, %v4658_v20  ;;  %6681 = vmatprep.subr.msk.mxu0 %vm2723_vm11, %v4677_v61 }
0x331e   :  { %6682 = vmatpush3.msk.msra.mxu0 %vm2723_vm11, %v4677_v61 }
0x331f   :  { %7134 = vpow2.f32 %v4660_v12 }
0x3320   :  { %v4765_v27 = vpop.permute.xlu1 %4764 }
0x3321   :  { %v4786_v47 = vsel %vm2604_vm8, %v8805_v51, %v4765_v27  ;;  %v4876_v51 = vrot.slane %v8741_v33, %v8594_v6  ;;  %v5451_v27 = vld [vmem:[%s9040_s3 + $0x1a8] sm:$0xff] }
0x3324   :  { %v4767_v45 = vpop.permute.xlu1 %4766 }
0x3325   :  { %v4787_v32 = vsel %vm2604_vm8, %v8803_v15, %v4767_v45 }
0x3328   :  { %v4775_v30 = vpop.permute.xlu1 %4774 }
0x3329   :  { %v4789_v17 = vsel %vm3430_vm12, %v4787_v32, %v4775_v30 }
0x332a   :  { %v7133_v52 = vpop.eup %7132 }
0x332b   :  { %v4667_v63 = vsel %vm2692_vm9, %v7133_v52, 0.0 }
0x332c   :  { %v7135_v3 = vpop.eup %7134  ;;  %4668 = vadd.xlane.f32.xlu0 %v4667_v63  ;;  %v4944_v63 = vrot.slane %v8741_v33, %v3589_v57  ;;  %v5436_v57 = vld [vmem:[%s9040_s3 + $0x130] sm:$0xff] }
0x332d   :  { %v4664_v18 = vsel %vm2688_vm10, %v7135_v3, 0.0 }
0x3330   :  { %4665 = vadd.xlane.f32.xlu0 %v4664_v18  ;;  %v5438_v18 = vld [vmem:[%s9040_s3 + $0x140] sm:$0xff] }
0x3331   :  { %6699 = vmatprep.subr.mxu1 %v5438_v18 }
0x3332   :  { %6700 = vmatpush3.msra.mxu1 %v5438_v18 }
0x3346   :  { %4674 = vrot.lane.b32.xlu0 %v8747_v14, %s7281_s12  ;;  %v5434_v14 = vld [vmem:[%s9040_s3 + $0x120] sm:$0xff] }
0x334a   :  { %4772 = vrot.lane.b32.xlu0 %v4552_v36, %s7282_s20 }
0x33b5   :  { %v4669_v11 = vpop.xlane.xlu0 %4668 }
0x33b6   :  { %7136 = vrcp.f32 %v4669_v11  ;;  %v5437_v11 = vld [vmem:[%s9040_s3 + $0x138] sm:$0xff] }
0x33b7   :  { %6701 = vmatprep.subr.mxu1 %v5437_v11 }
0x33b8   :  { %6702 = vmatpush3.msra.mxu1 %v5437_v11 }
0x33b9   :  { %v4666_v5 = vpop.xlane.xlu0 %4665  ;;  %6703 = vmatprep.subr.mxu1 %v5436_v57 }
0x33ba   :  { %7138 = vrcp.f32 %v4666_v5  ;;  %6704 = vmatpush3.msra.mxu1 %v5436_v57 }
0x33bd   :  { %v4675_v8 = vpop.permute.xlu0 %4674 }
0x33be   :  { %6683 = vmatprep.subr.mxu0 %v4675_v8 }
0x33bf   :  { %6684 = vmatpush3.msra.mxu0 %v4675_v8 }
0x33c0   :  { %6688 = vmatprep.subr.mxu0 %v5434_v14 }
0x33c1   :  { %v4773_v60 = vpop.permute.xlu0 %4772 }
0x33c2   :  { %v4788_v28 = vsel %vm3430_vm12, %v4786_v47, %v4773_v60 }
0x33c3   :  { %v7137_v59 = vpop.eup %7136 }
0x33c4   :  { %v4673_v39 = vmul.f32 %v7137_v59, %v7133_v52 }
0x33c7   :  { %v7139_v22 = vpop.eup %7138 }
0x33c8   :  { %v4672_v40 = vmul.f32 %v7139_v22, %v7135_v3  ;;  %v4934_v3 = vrot.slane %v8741_v33, %v3579_v10 }
0x33ca   :  { %6685 = vmatprep.mubr.msk.f32.mxu0 %vm2688_vm10, %v4672_v40 }
0x33cb   :  { %6686 = vmatmul.mubr.msk.f32.vlgmr.msra.gmra.mxu0 %vm2688_vm10, %v4673_v39  ;;  %v5435_v39 = vld [vmem:[%s9040_s3 + $0x128] sm:$0xff] }
0x33cc   :  { %6689 = vmatpush3.msra.mxu0 %v5434_v14  ;;  %6705 = vmatprep.subr.mxu1 %v5435_v39  ;;  %v5454_v14 = vld [vmem:[%s9040_s3 + $0x1c0] sm:$0xff] }
0x33cd   :  { %6690 = vmatprep.subr.mxu0 %v5433_v46  ;;  %6706 = vmatpush3.msra.mxu1 %v5435_v39 }
0x33ce   :  { %6691 = vmatpush3.msra.mxu0 %v5433_v46  ;;  %6745 = vmatprep.subr.mxu1 %v7270_v23  ;;  %v5453_v46 = vld [vmem:[%s9040_s3 + $0x1b8] sm:$0xff] }
0x33cf   :  { %6692 = vmatprep.subr.mxu0 %v5432_v44 }
0x33d0   :  { %6693 = vmatpush3.msra.mxu0 %v5432_v44  ;;  %v5452_v44 = vld [vmem:[%s9040_s3 + $0x1b0] sm:$0xff] }
0x33d1   :  { %6694 = vmatprep.subr.mxu0 %v5431_v29 }
0x33d2   :  { %6695 = vmatpush3.msra.mxu0 %v5431_v29 }
0x33d3   :  { %6710 = vmatprep.subr.mxu0 %v5454_v14 }
0x348b   :  { %v6687_v26 = vpop.f32.mrf.mxu0 }
0x348c   :  { %4782 = vrot.lane.b32.xlu1 %v6687_v26, %s7283_s21 }
0x348d   :  { %v4753_v31 = vpop.f32.mrf.mxu0 }
0x348e   :  { %4780 = vrot.lane.b32.xlu0 %v4753_v31, %s7283_s21 }
0x34fe   :  { %v4783_v24 = vpop.permute.xlu1 %4782 }
0x34ff   :  { %v4791_v13 = vsel %vm3433_vm13, %v4789_v17, %v4783_v24  ;;  %v5450_v24 = vld [vmem:[%s9040_s3 + $0x1a0] sm:$0xff] }
0x3500   :  { %v4781_v42 = vpop.permute.xlu0 %4780 }
0x3501   :  { %v4790_v58 = vsel %vm3433_vm13, %v4788_v28, %v4781_v42  ;;  %v5449_v42 = vld [vmem:[%s9040_s3 + $0x198] sm:$0xff] }
0x3502   :  { %6696 = vmatprep.mubr.msk.f32.mxu0 %vm103_vm0, %v4790_v58  ;;  %v5448_v58 = vld [vmem:[%s9040_s3 + $0x190] sm:$0xff] }
0x3503   :  { %6697 = vmatmul.mubr.msk.f32.vlgmr.msra.gmra.mxu0 %vm103_vm0, %v4791_v13  ;;  %v5447_v13 = vld [vmem:[%s9040_s3 + $0x188] sm:$0xff] }
0x3504   :  { %6711 = vmatpush3.msra.mxu0 %v5454_v14 }
0x3505   :  { %6712 = vmatprep.subr.mxu0 %v5453_v46 }
0x3506   :  { %6713 = vmatpush3.msra.mxu0 %v5453_v46 }
0x3507   :  { %6714 = vmatprep.subr.mxu0 %v5452_v44 }
0x3508   :  { %6715 = vmatpush3.msra.mxu0 %v5452_v44 }
0x3509   :  { %6716 = vmatprep.subr.mxu0 %v5451_v27 }
0x350a   :  { %6717 = vmatpush3.msra.mxu0 %v5451_v27  ;;  %v5182_v27 = vld [vmem:[#allocation4 + $0x88] sm:$0xff] }
0x350b   :  { %6718 = vmatprep.subr.mxu0 %v5450_v24 }
0x350c   :  { %6719 = vmatpush3.msra.mxu0 %v5450_v24  ;;  %v5177_v24 = vld [vmem:[#allocation4 + $0x60] sm:$0xff] }
0x350d   :  { %6720 = vmatprep.subr.mxu0 %v5449_v42 }
0x350e   :  { %6721 = vmatpush3.msra.mxu0 %v5449_v42  ;;  %v5174_v42 = vld [vmem:[#allocation4 + $0x48] sm:$0xff] }
0x350f   :  { %6722 = vmatprep.subr.mxu0 %v5448_v58 }
0x3510   :  { %6723 = vmatpush3.msra.mxu0 %v5448_v58  ;;  %v5172_v58 = vld [vmem:[#allocation4 + $0x38] sm:$0xff] }
0x3511   :  { %6724 = vmatprep.subr.mxu0 %v5447_v13 }
0x3512   :  { %6725 = vmatpush3.msra.mxu0 %v5447_v13  ;;  %v5171_v13 = vld [vmem:[#allocation4 + $0x30] sm:$0xff] }
0x35c3   :  { %v6698_v55 = vpop.f32.mrf.mxu0 }
0x35c4   :  { %v4878_v53 = vadd.f32 %v6698_v55, %v4876_v51  ;;  %v5445_v55 = vld [vmem:[%s9040_s3 + $0x178] sm:$0xff] }
0x35c5   :  { %v4864_v19 = vpop.f32.mrf.mxu0 }
0x35c6   :  { %v4877_v15 = vadd.f32 %v4876_v51, %v4864_v19  ;;  %4883 = vrot.lane.b32.xlu1 %v4878_v53, %s7268_s4  ;;  %v5446_v51 = vld [vmem:[%s9040_s3 + $0x180] sm:$0xff]  ;;  %v5444_v53 = vld [vmem:[%s9040_s3 + $0x170] sm:$0xff]  ;;  %v5443_v19 = vld [vmem:[%s9040_s3 + $0x168] sm:$0xff] }
0x35c7   :  { %6726 = vmatprep.subr.mxu0 %v5446_v51 }
0x35c8   :  { %4881 = vrot.lane.b32.xlu0 %v4877_v15, %s7268_s4  ;;  %6727 = vmatpush3.msra.mxu0 %v5446_v51  ;;  %v5170_v51 = vld [vmem:[#allocation4 + $0x28] sm:$0xff] }
0x35c9   :  { %6728 = vmatprep.subr.mxu0 %v5445_v55 }
0x35ca   :  { %6729 = vmatpush3.msra.mxu0 %v5445_v55  ;;  %v5169_v55 = vld [vmem:[#allocation4 + $0x20] sm:$0xff] }
0x35cb   :  { %6730 = vmatprep.subr.mxu0 %v5444_v53 }
0x35cc   :  { %6731 = vmatpush3.msra.mxu0 %v5444_v53  ;;  %v5185_v53 = vld [vmem:[#allocation4 + $0xa0] sm:$0xff] }
0x35cd   :  { %6732 = vmatprep.subr.mxu0 %v5443_v19 }
0x35ce   :  { %6733 = vmatpush3.msra.mxu0 %v5443_v19  ;;  %v5189_v19 = vrot.slane %v5185_v53, %v8428_v54 }
0x3638   :  { %v4884_v7 = vpop.permute.xlu1 %4883 }
0x3639   :  { %v4888_v50 = vadd.f32 %v4884_v7, %v8728_v41 }
0x363a   :  { %v4882_v9 = vpop.permute.xlu0 %4881 }
0x363b   :  { %v4887_v36 = vadd.f32 %v4882_v9, %v8730_v49  ;;  %4893 = vrot.lane.b32.xlu1 %v4888_v50, %s7268_s4  ;;  %v5441_v9 = vld [vmem:[%s9040_s3 + $0x158] sm:$0xff] }
0x363d   :  { %4891 = vrot.lane.b32.xlu0 %v4887_v36, %s7268_s4 }
0x36ad   :  { %v4894_v16 = vpop.permute.xlu1 %4893 }
0x36ae   :  { %v4900_v62 = vsel %vm3544_vm14, %v4894_v16, 0.0  ;;  %v5439_v16 = vld [vmem:[%s9040_s3 + $0x148] sm:$0xff] }
0x36af   :  { %4901 = vadd.xlane.f32.xlu1 %v4900_v62  ;;  %v4892_v37 = vpop.permute.xlu0 %4891  ;;  %v4954_v62 = vrot.slane %v8741_v33, %v3599_v4 }
0x36b0   :  { %v4897_v1 = vsel %vm103_vm0, %v4892_v37, 0.0 }
0x36b1   :  { %4898 = vadd.xlane.f32.xlu0 %v4897_v1 }
0x3738   :  { %v4902_v35 = vpop.xlane.xlu1 %4901 }
0x3739   :  { %v4904_v56 = vmul.f32 0.03125, %v4902_v35 }
0x373a   :  { %v4899_v48 = vpop.xlane.xlu0 %4898 }
0x373b   :  { %v4906_v25 = vsub.f32 %v4888_v50, %v4904_v56  ;;  %v4903_v41 = vmul.f32 0.03125, %v4899_v48  ;;  %v5442_v50 = vld [vmem:[%s9040_s3 + $0x160] sm:$0xff] }
0x373c   :  { %6734 = vmatprep.subr.mxu0 %v5442_v50 }
0x373d   :  { %v4908_v34 = vmul.f32 %v4906_v25, %v4906_v25  ;;  %v4905_v38 = vsub.f32 %v4887_v36, %v4903_v41  ;;  %6735 = vmatpush3.msra.mxu0 %v5442_v50  ;;  %v5440_v36 = vld [vmem:[%s9040_s3 + $0x150] sm:$0xff]  ;;  %v5119_v41 = vrot.slane %v8741_v33, %v3765_v2 }
0x373e   :  { %6736 = vmatprep.subr.mxu0 %v5441_v9 }
0x373f   :  { %v4907_v49 = vmul.f32 %v4905_v38, %v4905_v38  ;;  %4913 = vrot.lane.b32.xlu1 %v4908_v34, %s7268_s4  ;;  %6737 = vmatpush3.msra.mxu0 %v5441_v9 }
0x3740   :  { %6738 = vmatprep.subr.mxu0 %v5440_v36 }
0x3741   :  { %4911 = vrot.lane.b32.xlu0 %v4907_v49, %s7268_s4  ;;  %6739 = vmatpush3.msra.mxu0 %v5440_v36  ;;  %v5269_v36 = vrot.slane %v5185_v53, %v8594_v6 }
0x3742   :  { %6740 = vmatprep.subr.mxu0 %v5439_v16 }
0x3743   :  { %6741 = vmatpush3.msra.mxu0 %v5439_v16 }
0x37b1   :  { %v4914_v20 = vpop.permute.xlu1 %4913 }
0x37b2   :  { %v4920_v61 = vsel %vm3544_vm14, %v4914_v20, 0.0 }
0x37b3   :  { %4921 = vadd.xlane.f32.xlu1 %v4920_v61  ;;  %v4912_v12 = vpop.permute.xlu0 %4911 }
0x37b4   :  { %v4917_v52 = vsel %vm103_vm0, %v4912_v12, 0.0 }
0x37b5   :  { %4918 = vadd.xlane.f32.xlu0 %v4917_v52  ;;  %v5150_v52 = vrot.slane %v8741_v33, %v3823_v43  ;;  %v5167_v43 = vld [vmem:[#allocation4 + $0x10] sm:$0xff] }
0x37c4   :  { %4946 = vrot.lane.b32.xlu1 %v4944_v63, %s7268_s4 }
0x37cb   :  { %4936 = vrot.lane.b32.xlu0 %v4934_v3, %s7268_s4 }
0x383c   :  { %v4922_v10 = vpop.xlane.xlu1 %4921 }
0x383d   :  { %v4924_v5 = vmul.f32 0.03125, %v4922_v10  ;;  %v5159_v10 = vrot.slane %v8741_v33, %v3833_v0 }
0x383e   :  { %v4919_v8 = vpop.xlane.xlu0 %4918 }
0x383f   :  { %v4926_v59 = vadd.f32 1e-05, %v4924_v5  ;;  %v4923_v22 = vmul.f32 0.03125, %v4919_v8  ;;  %v5168_v5 = vld [vmem:[#allocation4 + $0x18] sm:$0xff]  ;;  %v5166_v8 = vld [vmem:[#allocation4 + $0x8] sm:$0xff] }
0x3840   :  { %v4947_v30 = vpop.permute.xlu1 %4946 }
0x3841   :  { %7140 = vrsqrt.f32 %v4926_v59  ;;  %v4925_v40 = vadd.f32 1e-05, %v4923_v22  ;;  %v5165_v59 = vld [vmem:[#allocation4] sm:$0xff] }
0x3842   :  { %v4937_v26 = vpop.permute.xlu0 %4936 }
0x3843   :  { %7142 = vrsqrt.f32 %v4925_v40 }
0x384e   :  { %v7141_v29 = vpop.eup %7140 }
0x384f   :  { %v4930_v31 = vmul.f32 %v7141_v29, %v4906_v25  ;;  %v5184_v29 = vld [vmem:[#allocation4 + $0x98] sm:$0xff] }
0x3850   :  { %v7143_v45 = vpop.eup %7142 }
0x3851   :  { %v4929_v60 = vmul.f32 %v7143_v45, %v4905_v38  ;;  %v4940_v47 = vmul.f32 %v4937_v26, %v4930_v31  ;;  %v5183_v31 = vld [vmem:[#allocation4 + $0x90] sm:$0xff]  ;;  %v5181_v45 = vld [vmem:[#allocation4 + $0x80] sm:$0xff] }
0x3853   :  { %v4939_v32 = vmul.f32 %v4937_v26, %v4929_v60  ;;  %v4950_v28 = vadd.f32 %v4947_v30, %v4940_v47  ;;  %v5179_v60 = vld [vmem:[#allocation4 + $0x70] sm:$0xff]  ;;  %v5178_v47 = vld [vmem:[#allocation4 + $0x68] sm:$0xff] }
0x3855   :  { %v4949_v17 = vadd.f32 %v4947_v30, %v4939_v32  ;;  %4959 = vrot.lane.b32.xlu1 %v4950_v28, %s7268_s4  ;;  %v5180_v30 = vld [vmem:[#allocation4 + $0x78] sm:$0xff]  ;;  %v5175_v28 = vld [vmem:[#allocation4 + $0x50] sm:$0xff] }
0x3856   :  { %v5176_v32 = vld [vmem:[#allocation4 + $0x58] sm:$0xff] }
0x3857   :  { %4957 = vrot.lane.b32.xlu0 %v4949_v17, %s7268_s4 }
0x38c7   :  { %v4960_v7 = vpop.permute.xlu1 %4959 }
0x38c9   :  { %v4958_v15 = vpop.permute.xlu0 %4957 }
0x38ca   :  { %6707 = vmatprep.mubr.msk.f32.mxu1 %vm103_vm0, %v4958_v15 }
0x38cb   :  { %6708 = vmatmul.mubr.msk.f32.vlgmr.msra.gmra.mxu1 %vm103_vm0, %v4960_v7 }
0x38cc   :  { %6746 = vmatpush3.msra.mxu1 %v5168_v5  ;;  %6753 = vmatprep.mubr.msk.f32.mxu1 %vm7284_vm15, %v7270_v23 }
0x38cd   :  { %6747 = vmatprep.subr.mxu1 %v7270_v23 }
0x38ce   :  { %6748 = vmatpush3.msra.mxu1 %v5167_v43 }
0x38cf   :  { %6749 = vmatprep.subr.mxu1 %v7270_v23 }
0x38d0   :  { %6750 = vmatpush3.msra.mxu1 %v5166_v8 }
0x38d1   :  { %6751 = vmatprep.subr.mxu1 %v7270_v23 }
0x38d2   :  { %6752 = vmatpush3.msra.mxu1 %v5165_v59 }
0x38d3   :  { %6756 = vmatprep.subr.mxu1 %v7270_v23 }
0x398b   :  { %v6709_v37 = vpop.f32.mrf.mxu1 }
0x398c   :  { %v5037_v1 = vadd.f32 %v6709_v37, %v4954_v62 }
0x398d   :  { %v5031_v35 = vpop.f32.mrf.mxu1 }
0x398e   :  { %v5032_v56 = vadd.f32 %v5031_v35, %v4954_v62  ;;  %v5041_v25 = vmax.f32 %v5037_v1, 0.0 }
0x3990   :  { %v5040_v48 = vmax.f32 %v5032_v56, 0.0 }
0x3992   :  { %6742 = vmatprep.mubr.f32.mxu0 %v5040_v48 }
0x3993   :  { %6743 = vmatmul.mubr.f32.vlgmr.msra.gmra.mxu0 %v5041_v25 }
0x3a53   :  { %v6744_v34 = vpop.f32.mrf.mxu0 }
0x3a55   :  { %v5108_v38 = vpop.f32.mrf.mxu0 }
0x3a56   :  { %v5120_v49 = vadd.f32 %v5119_v41, %v5108_v38 }
0x3a58   :  { %5122 = vrot.lane.b32.xlu0 %v5120_v49, %s7268_s4 }
0x3aca   :  { %v5123_v20 = vpop.permute.xlu0 %5122 }
0x3acb   :  { %v5125_v61 = vadd.f32 %v5123_v20, %v4949_v17  ;;  %v5173_v17 = vld [vmem:[#allocation4 + $0x40] sm:$0xff] }
0x3acd   :  { %5127 = vrot.lane.b32.xlu1 %v5125_v61, %s7268_s4 }
0x3b3f   :  { %v5128_v4 = vpop.permute.xlu1 %5127 }
0x3b40   :  { %v5130_v12 = vsel %vm103_vm0, %v5128_v4, 0.0 }
0x3b41   :  { %5131 = vadd.xlane.f32.xlu0 %v5130_v12 }
0x3b57   :  { %5152 = vrot.lane.b32.xlu0 %v5150_v52, %s7268_s4 }
0x3bca   :  { %v5132_v2 = vpop.xlane.xlu0 %5131 }
0x3bcb   :  { %v5133_v63 = vmul.f32 0.03125, %v5132_v2 }
0x3bcd   :  { %v5134_v3 = vsub.f32 %v5125_v61, %v5133_v63 }
0x3bce   :  { %v5153_v40 = vpop.permute.xlu0 %5152 }
0x3bcf   :  { %v5135_v18 = vmul.f32 %v5134_v3, %v5134_v3 }
0x3bd1   :  { %5137 = vrot.lane.b32.xlu1 %v5135_v18, %s7268_s4 }
0x3c43   :  { %v5138_v11 = vpop.permute.xlu1 %5137 }
0x3c44   :  { %v5140_v57 = vsel %vm103_vm0, %v5138_v11, 0.0 }
0x3c45   :  { %5141 = vadd.xlane.f32.xlu1 %v5140_v57 }
0x3c56   :  { %5161 = vrot.lane.b32.xlu1 %v5159_v10, %s7268_s4 }
0x3cce   :  { %v5142_v21 = vpop.xlane.xlu1 %5141 }
0x3ccf   :  { %v5143_v0 = vmul.f32 0.03125, %v5142_v21 }
0x3cd1   :  { %v5144_v33 = vadd.f32 1e-05, %v5143_v0 }
0x3cd2   :  { %v5162_v14 = vpop.permute.xlu1 %5161 }
0x3cd3   :  { %7144 = vrsqrt.f32 %v5144_v33 }
0x3ce0   :  { %v7145_v22 = vpop.eup %7144 }
0x3ce1   :  { %v5146_v39 = vmul.f32 %v7145_v22, %v5134_v3 }
0x3ce3   :  { %v5155_v46 = vmul.f32 %v5153_v40, %v5146_v39 }
0x3ce5   :  { %v5164_v44 = vadd.f32 %v5162_v14, %v5155_v46 }
0x3ce7   :  { %5191 = vrot.lane.b32.xlu0 %v5164_v44, %s7268_s4 }
0x3d59   :  { %v5192_v26 = vpop.permute.xlu0 %5191 }
0x3d5a   :  { %6754 = vmatmul.mubr.msk.f32.vlgmr.msra.gmra.mxu1 %vm103_vm0, %v5192_v26 }
0x3d5b   :  { %6757 = vmatpush3.msra.mxu1 %v5184_v29  ;;  %6788 = vmatprep.mubr.msk.f32.mxu1 %vm7284_vm15, %v7270_v23 }
0x3d5c   :  { %6758 = vmatprep.subr.mxu1 %v7270_v23 }
0x3d5d   :  { %6759 = vmatpush3.msra.mxu1 %v5183_v31 }
0x3d5e   :  { %6760 = vmatprep.subr.mxu1 %v7270_v23 }
0x3d5f   :  { %6761 = vmatpush3.msra.mxu1 %v5182_v27 }
0x3d60   :  { %6762 = vmatprep.subr.mxu1 %v7270_v23 }
0x3d61   :  { %6763 = vmatpush3.msra.mxu1 %v5181_v45 }
0x3d62   :  { %6764 = vmatprep.subr.mxu1 %v7270_v23 }
0x3d63   :  { %6765 = vmatpush3.msra.mxu1 %v5180_v30 }
0x3d64   :  { %6766 = vmatprep.subr.mxu1 %v7270_v23 }
0x3d65   :  { %6767 = vmatpush3.msra.mxu1 %v5179_v60 }
0x3d66   :  { %6768 = vmatprep.subr.mxu1 %v7270_v23 }
0x3d67   :  { %6769 = vmatpush3.msra.mxu1 %v5178_v47 }
0x3d68   :  { %6770 = vmatprep.subr.mxu1 %v7270_v23 }
0x3d69   :  { %6771 = vmatpush3.msra.mxu1 %v5177_v24 }
0x3d6a   :  { %6772 = vmatprep.subr.mxu1 %v7270_v23 }
0x3d6b   :  { %6773 = vmatpush3.msra.mxu1 %v5176_v32 }
0x3d6c   :  { %6774 = vmatprep.subr.mxu1 %v7270_v23 }
0x3d6d   :  { %6775 = vmatpush3.msra.mxu1 %v5175_v28 }
0x3d6e   :  { %6776 = vmatprep.subr.mxu1 %v7270_v23 }
0x3d6f   :  { %6777 = vmatpush3.msra.mxu1 %v5174_v42 }
0x3d70   :  { %6778 = vmatprep.subr.mxu1 %v7270_v23 }
0x3d71   :  { %6779 = vmatpush3.msra.mxu1 %v5173_v17 }
0x3d72   :  { %6780 = vmatprep.subr.mxu1 %v7270_v23 }
0x3d73   :  { %6781 = vmatpush3.msra.mxu1 %v5172_v58 }
0x3d74   :  { %6782 = vmatprep.subr.mxu1 %v7270_v23 }
0x3d75   :  { %6783 = vmatpush3.msra.mxu1 %v5171_v13 }
0x3d76   :  { %6784 = vmatprep.subr.mxu1 %v7270_v23 }
0x3d77   :  { %6785 = vmatpush3.msra.mxu1 %v5170_v51 }
0x3d78   :  { %6786 = vmatprep.subr.mxu1 %v7270_v23 }
0x3d79   :  { %6787 = vmatpush3.msra.mxu1 %v5169_v55 }
0x3e1a   :  { %v5261_v15 = vpop.f32.mrf.mxu1 }
0x3e1b   :  { %v5262_v7 = vadd.f32 %v5261_v15, %v5189_v19 }
0x3e1c   :  { %v6755_v50 = vpop.f32.mrf.mxu1 }
0x3e1d   :  { %v5265_v9 = vmax.f32 %v5262_v7, 0.0 }
0x3e1f   :  { %6789 = vmatmul.mubr.f32.vlgmr.msra.gmra.mxu1 %v5265_v9 }
0x3edf   :  { %v5336_v16 = vpop.f32.mrf.mxu1 }
0x3ee0   :  { %v5337_v62 = vadd.f32 %v5336_v16, %v5269_v36 }
0x3ee1   :  { %v6790_v37 = vpop.f32.mrf.mxu1 }
0x3ee2   :  { %5340 = vst [vmem:[%s9042_s5] sm:$0x3] %v5337_v62 }
0x3ee3   :  { %5345 = vsyncpa [#allocation3], 1 }
0x3ee4   :  { %5346 = vsyncpa [#allocation5], 1 }

</bundles_post_ra>
